<compile_context>
chip_gen: v7x
topology: tpu7x:2x2x1
jax: 0.10.0
libtpu: 0.0.40
codegen_flags: <defaults>
</compile_context>

<pallas_src>
import functools

import jax
import jax.numpy as jnp
from jax.experimental import pallas as pl
from jax.experimental.pallas import tpu as pltpu

C_STEM, C_EXP, C_SE, C_HEAD, N_CLASSES = 32, 128, 8, 128, 2
K_STEM = 3 * 3 * 3                     # im2col patch length of the RGB 3x3 stem

_PARALLEL = pltpu.CompilerParams(dimension_semantics=("parallel",))
_VMEM = pl.BlockSpec(memory_space=pltpu.MemorySpace.VMEM)


def _swish(x):
    return x * jax.nn.sigmoid(x)


def _stem_expand(p, sw, sb, ew, eb):
    """Stem 3x3 conv (as im2col matmul) + swish, then 1x1 expand + swish."""
    f = _swish(jnp.dot(p, sw, preferred_element_type=jnp.float32) + sb)
    return _swish(jnp.dot(f, ew, preferred_element_type=jnp.float32) + eb)


# ---------------------------------------------------------------------------
# Sweep 1: stem + expand + depthwise 3x3 (+swish) + SE-pool partial sums.
# ---------------------------------------------------------------------------
def _stem_dw_kernel(pc_ref, pu_ref, pd_ref,
                    sw_ref, sb_ref, ew_ref, eb_ref, dwk_ref,
                    d_ref, psum_ref, xp_ref, *, bh, Wo):
    i = pl.program_id(0)
    nb = pl.num_programs(0)
    bm = bh * Wo
    n_rows = (bh + 2) * Wo
    C = d_ref.shape[-1]

    sw, sb = sw_ref[...], sb_ref[...]
    ew, eb = ew_ref[...], eb_ref[...]

    # Expanded activation for this tile plus one halo feature-row above/below,
    # assembled in flattened row-major (h, w) layout in f32 VMEM scratch.
    # Halo rows outside the image are zeroed (conv zero padding).
    xp_ref[pl.ds(Wo, bm), :] = _stem_expand(
        pc_ref[...].astype(jnp.float32), sw, sb, ew, eb)
    top_ok = (i > 0).astype(jnp.float32)
    bot_ok = (i < nb - 1).astype(jnp.float32)
    xp_ref[pl.ds(0, Wo), :] = top_ok * _stem_expand(
        pu_ref[...].astype(jnp.float32), sw, sb, ew, eb)
    xp_ref[pl.ds(Wo + bm, Wo), :] = bot_ok * _stem_expand(
        pd_ref[...].astype(jnp.float32), sw, sb, ew, eb)

    xp = xp_ref[...]                                    # ((bh+2)*Wo, C) f32

    # +-1 shifts along W via sublane rolls (XLU) + W-border masking; the element
    # that wraps across a row boundary lands exactly on a masked border column.
    col = jax.lax.broadcasted_iota(jnp.int32, (n_rows, 1), 0) % Wo
    x_m1 = jnp.where(col != 0,
                     pltpu.roll(xp, shift=1, axis=0), 0.0)            # col w-1
    x_p1 = jnp.where(col != Wo - 1,
                     pltpu.roll(xp, shift=n_rows - 1, axis=0), 0.0)   # col w+1
    taps_w = (x_m1, xp, x_p1)                           # kernel dx = 0, 1, 2

    wk = dwk_ref[...]                                   # (9, C) f32
    acc = jnp.zeros((bm, C), jnp.float32)
    for dy in range(3):                                 # 9 static taps; every
        base = dy * Wo                                  # slice start is a
        for dx in range(3):                             # multiple of Wo
            acc = acc + taps_w[dx][base:base + bm, :] * wk[3 * dy + dx][None, :]
    out = acc * jax.nn.sigmoid(acc)                     # swish

    d_ref[...] = out.astype(d_ref.dtype)
    psum_ref[...] = jnp.sum(out, axis=0, keepdims=True)  # SE pool partial sum


def _sweep1(patches, params, Ho, Wo, bh):
    HW = patches.shape[0]
    nb = Ho // bh
    bm = bh * Wo
    kern = functools.partial(_stem_dw_kernel, bh=bh, Wo=Wo)
    full2 = lambda r, c: pl.BlockSpec((r, c), lambda i: (0, 0))
    return pl.pallas_call(
        kern,
        out_shape=(jax.ShapeDtypeStruct((HW, C_EXP), jnp.bfloat16),
                   jax.ShapeDtypeStruct((nb, C_EXP), jnp.float32)),
        grid=(nb,),
        in_specs=[
            pl.BlockSpec((bm, K_STEM), lambda i: (i, 0)),
            pl.BlockSpec((Wo, K_STEM),
                         lambda i: (jnp.maximum(i * bh - 1, 0), 0)),
            pl.BlockSpec((Wo, K_STEM),
                         lambda i: (jnp.minimum((i + 1) * bh, Ho - 1), 0)),
            full2(K_STEM, C_STEM), full2(1, C_STEM),
            full2(C_STEM, C_EXP), full2(1, C_EXP),
            full2(9, C_EXP),
        ],
        out_specs=(pl.BlockSpec((bm, C_EXP), lambda i: (i, 0)),
                   pl.BlockSpec((1, C_EXP), lambda i: (i, 0))),
        scratch_shapes=[pltpu.VMEM(((bh + 2) * Wo, C_EXP), jnp.float32)],
        compiler_params=_PARALLEL,
    )(patches, patches, patches,
      params["stem_w"], params["stem_b"], params["exp_w"], params["exp_b"],
      params["dw_w"])


# ---------------------------------------------------------------------------
# Sweep 2: SE scale + project (+stem residual) + head 1x1 + head-pool partials.
# ---------------------------------------------------------------------------
def _se_proj_head_kernel(d_ref, p_ref, psum_ref,
                         sw_ref, sb_ref, s1w_ref, s1b_ref, s2w_ref, s2b_ref,
                         pw_ref, pb_ref, hw_ref, hb_ref, hsum_ref, *, inv_hw):
    # SE gate from the global pooled vector (tiny FCs recomputed per tile —
    # ~3K MACs — keeps the spatial grid axis fully parallel / megacore-safe).
    pooled = jnp.sum(psum_ref[...], axis=0, keepdims=True) * inv_hw
    g = _swish(jnp.dot(pooled, s1w_ref[...],
                       preferred_element_type=jnp.float32) + s1b_ref[...])
    gate = jax.nn.sigmoid(jnp.dot(g, s2w_ref[...],
                                  preferred_element_type=jnp.float32) + s2b_ref[...])

    x = d_ref[...].astype(jnp.float32) * gate                       # SE scale
    # Recompute the 32-channel stem activation for the residual (cheaper than
    # round-tripping a sub-128-lane tensor through HBM).
    f = _swish(jnp.dot(p_ref[...].astype(jnp.float32), sw_ref[...],
                       preferred_element_type=jnp.float32) + sb_ref[...])
    pj = jnp.dot(x, pw_ref[...], preferred_element_type=jnp.float32) + pb_ref[...] + f
    h = _swish(jnp.dot(pj, hw_ref[...],
                       preferred_element_type=jnp.float32) + hb_ref[...])
    hsum_ref[...] = jnp.sum(h, axis=0, keepdims=True)   # head-pool partial sum


def _sweep2(d, patches, psum, params, Ho, Wo, bh):
    HW = d.shape[0]
    nb = Ho // bh
    bm = bh * Wo
    kern = functools.partial(_se_proj_head_kernel, inv_hw=1.0 / HW)
    full2 = lambda r, c: pl.BlockSpec((r, c), lambda i: (0, 0))
    return pl.pallas_call(
        kern,
        out_shape=jax.ShapeDtypeStruct((nb, C_HEAD), jnp.float32),
        grid=(nb,),
        in_specs=[
            pl.BlockSpec((bm, C_EXP), lambda i: (i, 0)),
            pl.BlockSpec((bm, K_STEM), lambda i: (i, 0)),
            full2(nb, C_EXP),
            full2(K_STEM, C_STEM), full2(1, C_STEM),
            full2(C_EXP, C_SE), full2(1, C_SE),
            full2(C_SE, C_EXP), full2(1, C_EXP),
            full2(C_EXP, C_STEM), full2(1, C_STEM),
            full2(C_STEM, C_HEAD), full2(1, C_HEAD),
        ],
        out_specs=pl.BlockSpec((1, C_HEAD), lambda i: (i, 0)),
        compiler_params=_PARALLEL,
    )(d, patches, psum,
      params["stem_w"], params["stem_b"],
      params["se_w1"], params["se_b1"], params["se_w2"], params["se_b2"],
      params["proj_w"], params["proj_b"],
      params["head_w"], params["head_b"])


# ---------------------------------------------------------------------------
# Finalize: global average pool -> FC -> softmax (tiny).
# ---------------------------------------------------------------------------
def _pool_fc_softmax_kernel(hsum_ref, fw_ref, fb_ref, o_ref, *, inv_hw):
    pooled = jnp.sum(hsum_ref[...], axis=0, keepdims=True) * inv_hw
    logits = jnp.dot(pooled, fw_ref[...],
                     preferred_element_type=jnp.float32) + fb_ref[...]
    m = jnp.max(logits, axis=-1, keepdims=True)
    e = jnp.exp(logits - m)
    o_ref[...] = e / jnp.sum(e, axis=-1, keepdims=True)


def _head(hsum, fc_w, fc_b, inv_hw):
    kern = functools.partial(_pool_fc_softmax_kernel, inv_hw=inv_hw)
    return pl.pallas_call(
        kern,
        out_shape=jax.ShapeDtypeStruct((1, N_CLASSES), jnp.float32),
        in_specs=[_VMEM, _VMEM, _VMEM],
        out_specs=_VMEM,
    )(hsum, fc_w, fc_b)


# ---------------------------------------------------------------------------
# Glue: im2col for the strided stem conv (tiny vs the 128-channel activations)
# ---------------------------------------------------------------------------
def _im2col_3x3_s2(img_hwc):
    H, W, _ = img_hwc.shape
    Ho = (H - 1) // 2 + 1
    Wo = (W - 1) // 2 + 1
    xp = jnp.pad(img_hwc, ((1, 1), (1, 1), (0, 0)))
    cols = [xp[dy:dy + 2 * Ho:2, dx:dx + 2 * Wo:2, :]
            for dy in range(3) for dx in range(3)]
    patches = jnp.stack(cols, axis=-2)                  # (Ho, Wo, 9, 3)
    return patches.reshape(Ho * Wo, 9 * 3), Ho, Wo


def _pick_bh(Ho, Wo, target_rows=2048):
    """Feature-map rows per tile: ~2048 spatial positions, exact divisor of Ho."""
    want = max(1, min(Ho, target_rows // max(Wo, 1)))
    bh = Ho
    for cand in range(want, 0, -1):
        if Ho % cand == 0:
            bh = cand
            break
    if (bh * Wo) % 8 != 0 and bh != Ho:    # keep tile rows sublane-aligned
        bh = Ho
    return bh


# ---------------------------------------------------------------------------
# Model (deterministic synthetic parameters) and forward pass
# ---------------------------------------------------------------------------
def init_params(key):
    ks = jax.random.split(key, 8)

    def nrm(k, shape, fan_in):
        return (jax.random.normal(k, shape, jnp.float32)
                / jnp.sqrt(jnp.float32(fan_in)))

    z = lambda n: jnp.zeros((1, n), jnp.float32)
    return dict(
        # The /255.0 input scaling of the original forward is folded into the
        # stem weights once here (mathematically identical, free).
        stem_w=nrm(ks[0], (K_STEM, C_STEM), K_STEM) * (1.0 / 255.0),
        stem_b=z(C_STEM),
        exp_w=nrm(ks[1], (C_STEM, C_EXP), C_STEM),   exp_b=z(C_EXP),
        dw_w=nrm(ks[2], (9, C_EXP), 9),
        se_w1=nrm(ks[3], (C_EXP, C_SE), C_EXP),      se_b1=z(C_SE),
        se_w2=nrm(ks[4], (C_SE, C_EXP), C_SE),       se_b2=z(C_EXP),
        proj_w=nrm(ks[5], (C_EXP, C_STEM), C_EXP),   proj_b=z(C_STEM),
        head_w=nrm(ks[6], (C_STEM, C_HEAD), C_STEM), head_b=z(C_HEAD),
        fc_w=nrm(ks[7], (C_HEAD, N_CLASSES), C_HEAD), fc_b=z(N_CLASSES),
    )


def predictor_image_forward(img_bgr, params):
    """Mirrors Predictor_image.forward: preprocess -> CNN -> softmax -> argmax."""
    # cv2.cvtColor(BGR2RGB) == reverse channel axis; /255 is folded into stem_w.
    img = img_bgr[..., ::-1].astype(jnp.bfloat16)
    # TODO(synk): cv2.resize(..., (256,256), INTER_AREA) has no clean Pallas
    # equivalent; the input is assumed already at the target resolution.

    patches, Ho, Wo = _im2col_3x3_s2(img)               # (HW, 27) bf16
    HW = Ho * Wo
    bh = _pick_bh(Ho, Wo)

    # Sweep 1: stem + expand + depthwise 3x3 (+swish) + SE-pool partial sums.
    d, psum = _sweep1(patches, params, Ho, Wo, bh)      # (HW,128) bf16, (nb,128) f32
    # Sweep 2: SE scale + project(+residual) + head 1x1 + head-pool partials.
    hsum = _sweep2(d, patches, psum, params, Ho, Wo, bh)  # (nb, 128) f32
    # Finalize: global average pool -> FC -> softmax.
    probs = _head(hsum, params["fc_w"], params["fc_b"], 1.0 / HW)   # (1, 2)
    cls = jnp.argmax(probs)     # == torch.argmax(result); stays on device
    return cls, probs


if __name__ == "__main__":
    key = jax.random.PRNGKey(0)
    k_img, k_par = jax.random.split(key)

    H = W = 32  # small spatial size consistent with an HxWx3 BGR image input
    img_bgr = jax.random.uniform(k_img, (H, W, 3), jnp.float32, 0.0, 255.0)
    params = init_params(k_par)

    predict = jax.jit(predictor_image_forward)
    cls, probs = predict(img_bgr, params)
    jax.block_until_ready((cls, probs))

    assert probs.shape == (1, N_CLASSES)
    assert abs(float(jnp.sum(probs)) - 1.0) < 1e-3
    assert int(cls) in (0, 1)
    print("KERNEL_OK")
</pallas_src>

<mosaic_0001>
module attributes {stable_mosaic.version = 11 : i64} {
  func.func @_stem_dw_kernel(%arg0: i32, %arg1: memref<256x27xbf16, #tpu.memory_space<vmem>>, %arg2: memref<16x27xbf16, #tpu.memory_space<vmem>>, %arg3: memref<16x27xbf16, #tpu.memory_space<vmem>>, %arg4: memref<27x32xf32, #tpu.memory_space<vmem>>, %arg5: memref<1x32xf32, #tpu.memory_space<vmem>>, %arg6: memref<32x128xf32, #tpu.memory_space<vmem>>, %arg7: memref<1x128xf32, #tpu.memory_space<vmem>>, %arg8: memref<9x128xf32, #tpu.memory_space<vmem>>, %arg9: memref<256x128xbf16, #tpu.memory_space<vmem>>, %arg10: memref<1x128xf32, #tpu.memory_space<vmem>>, %arg11: memref<288x128xf32, #tpu.memory_space<vmem>>) attributes {dimension_semantics = [#tpu.dimension_semantics<parallel>], iteration_bounds = array<i64: 1>, scalar_prefetch = 0 : i64, scratch_operands = 1 : i64, tpu.core_type = #tpu.core_type<tc>, window_params = [{transform_indices = @transform_0, window_bounds = array<i64: 256, 27>}, {transform_indices = @transform_1, window_bounds = array<i64: 16, 27>}, {transform_indices = @transform_2, window_bounds = array<i64: 16, 27>}, {pipeline_mode = #tpu.pipeline_mode<synchronous>, transform_indices = @transform_3, window_bounds = array<i64: 27, 32>}, {pipeline_mode = #tpu.pipeline_mode<synchronous>, transform_indices = @transform_4, window_bounds = array<i64: 1, 32>}, {pipeline_mode = #tpu.pipeline_mode<synchronous>, transform_indices = @transform_5, window_bounds = array<i64: 32, 128>}, {pipeline_mode = #tpu.pipeline_mode<synchronous>, transform_indices = @transform_6, window_bounds = array<i64: 1, 128>}, {pipeline_mode = #tpu.pipeline_mode<synchronous>, transform_indices = @transform_7, window_bounds = array<i64: 9, 128>}, {transform_indices = @transform_8, window_bounds = array<i64: 256, 128>}, {transform_indices = @transform_9, window_bounds = array<i64: 1, 128>}]} {
    %c0 = arith.constant 0 : index
    %c0_0 = arith.constant 0 : index
    %0 = vector.load %arg4[%c0, %c0_0] : memref<27x32xf32, #tpu.memory_space<vmem>>, vector<27x32xf32>
    %c0_1 = arith.constant 0 : index
    %c0_2 = arith.constant 0 : index
    %1 = vector.load %arg5[%c0_1, %c0_2] : memref<1x32xf32, #tpu.memory_space<vmem>>, vector<1x32xf32>
    %c0_3 = arith.constant 0 : index
    %c0_4 = arith.constant 0 : index
    %2 = vector.load %arg6[%c0_3, %c0_4] : memref<32x128xf32, #tpu.memory_space<vmem>>, vector<32x128xf32>
    %c0_5 = arith.constant 0 : index
    %c0_6 = arith.constant 0 : index
    %3 = vector.load %arg7[%c0_5, %c0_6] : memref<1x128xf32, #tpu.memory_space<vmem>>, vector<1x128xf32>
    %c0_7 = arith.constant 0 : index
    %c0_8 = arith.constant 0 : index
    %4 = vector.load %arg1[%c0_7, %c0_8] : memref<256x27xbf16, #tpu.memory_space<vmem>>, vector<256x27xbf16>
    %5 = arith.extf %4 : vector<256x27xbf16> to vector<256x27xf32>
    %cst = arith.constant dense<0.000000e+00> : vector<256x32xf32>
    %6 = tpu.matmul %5, %0, %cst {dimension_numbers = #tpu.dot_dimension_numbers<[1], [0], [0], [1], [0, 0, 1, 1], [], []>} : vector<256x27xf32>, vector<27x32xf32>, vector<256x32xf32> -> vector<256x32xf32>
    %7 = vector.broadcast %1 : vector<1x32xf32> to vector<256x32xf32>
    %8 = arith.addf %6, %7 : vector<256x32xf32>
    %9 = arith.negf %8 : vector<256x32xf32>
    %10 = math.exp %9 : vector<256x32xf32>
    %cst_9 = arith.constant 1.000000e+00 : f32
    %11 = vector.broadcast %cst_9 : f32 to vector<256x32xf32>
    %12 = arith.addf %11, %10 : vector<256x32xf32>
    %13 = arith.divf %11, %12 : vector<256x32xf32>
    %14 = arith.mulf %8, %13 : vector<256x32xf32>
    %cst_10 = arith.constant dense<0.000000e+00> : vector<256x128xf32>
    %15 = tpu.matmul %14, %2, %cst_10 {dimension_numbers = #tpu.dot_dimension_numbers<[1], [0], [0], [1], [0, 0, 1, 1], [], []>} : vector<256x32xf32>, vector<32x128xf32>, vector<256x128xf32> -> vector<256x128xf32>
    %16 = vector.broadcast %3 : vector<1x128xf32> to vector<256x128xf32>
    %17 = arith.addf %15, %16 : vector<256x128xf32>
    %18 = arith.negf %17 : vector<256x128xf32>
    %19 = math.exp %18 : vector<256x128xf32>
    %cst_11 = arith.constant 1.000000e+00 : f32
    %20 = vector.broadcast %cst_11 : f32 to vector<256x128xf32>
    %21 = arith.addf %20, %19 : vector<256x128xf32>
    %22 = arith.divf %20, %21 : vector<256x128xf32>
    %23 = arith.mulf %17, %22 : vector<256x128xf32>
    %c16 = arith.constant 16 : index
    %c0_12 = arith.constant 0 : index
    %24 = vector.load %arg11[%c16, %c0_12] : memref<288x128xf32, #tpu.memory_space<vmem>>, vector<256x128xf32>
    tpu.vector_store %arg11[%c16, %c0_12], %23 {strides = array<i32>} : memref<288x128xf32, #tpu.memory_space<vmem>>, vector<256x128xf32>,
    %c0_i32 = arith.constant 0 : i32
    %25 = arith.cmpi sgt, %arg0, %c0_i32 : i32
    %26 = arith.extui %25 : i1 to i32
    %27 = arith.sitofp %26 : i32 to f32
    %c0_i32_13 = arith.constant 0 : i32
    %28 = arith.cmpi slt, %arg0, %c0_i32_13 : i32
    %29 = arith.extui %28 : i1 to i32
    %30 = arith.sitofp %29 : i32 to f32
    %c0_14 = arith.constant 0 : index
    %c0_15 = arith.constant 0 : index
    %31 = vector.load %arg2[%c0_14, %c0_15] : memref<16x27xbf16, #tpu.memory_space<vmem>>, vector<16x27xbf16>
    %32 = arith.extf %31 : vector<16x27xbf16> to vector<16x27xf32>
    %cst_16 = arith.constant dense<0.000000e+00> : vector<16x32xf32>
    %33 = tpu.matmul %32, %0, %cst_16 {dimension_numbers = #tpu.dot_dimension_numbers<[1], [0], [0], [1], [0, 0, 1, 1], [], []>} : vector<16x27xf32>, vector<27x32xf32>, vector<16x32xf32> -> vector<16x32xf32>
    %34 = vector.broadcast %1 : vector<1x32xf32> to vector<16x32xf32>
    %35 = arith.addf %33, %34 : vector<16x32xf32>
    %36 = arith.negf %35 : vector<16x32xf32>
    %37 = math.exp %36 : vector<16x32xf32>
    %cst_17 = arith.constant 1.000000e+00 : f32
    %38 = vector.broadcast %cst_17 : f32 to vector<16x32xf32>
    %39 = arith.addf %38, %37 : vector<16x32xf32>
    %40 = arith.divf %38, %39 : vector<16x32xf32>
    %41 = arith.mulf %35, %40 : vector<16x32xf32>
    %cst_18 = arith.constant dense<0.000000e+00> : vector<16x128xf32>
    %42 = tpu.matmul %41, %2, %cst_18 {dimension_numbers = #tpu.dot_dimension_numbers<[1], [0], [0], [1], [0, 0, 1, 1], [], []>} : vector<16x32xf32>, vector<32x128xf32>, vector<16x128xf32> -> vector<16x128xf32>
    %43 = vector.broadcast %3 : vector<1x128xf32> to vector<16x128xf32>
    %44 = arith.addf %42, %43 : vector<16x128xf32>
    %45 = arith.negf %44 : vector<16x128xf32>
    %46 = math.exp %45 : vector<16x128xf32>
    %cst_19 = arith.constant 1.000000e+00 : f32
    %47 = vector.broadcast %cst_19 : f32 to vector<16x128xf32>
    %48 = arith.addf %47, %46 : vector<16x128xf32>
    %49 = arith.divf %47, %48 : vector<16x128xf32>
    %50 = arith.mulf %44, %49 : vector<16x128xf32>
    %51 = vector.broadcast %27 : f32 to vector<16x128xf32>
    %52 = arith.mulf %51, %50 : vector<16x128xf32>
    %c0_20 = arith.constant 0 : index
    %c0_21 = arith.constant 0 : index
    %53 = vector.load %arg11[%c0_20, %c0_21] : memref<288x128xf32, #tpu.memory_space<vmem>>, vector<16x128xf32>
    tpu.vector_store %arg11[%c0_20, %c0_21], %52 {strides = array<i32>} : memref<288x128xf32, #tpu.memory_space<vmem>>, vector<16x128xf32>,
    %c0_22 = arith.constant 0 : index
    %c0_23 = arith.constant 0 : index
    %54 = vector.load %arg3[%c0_22, %c0_23] : memref<16x27xbf16, #tpu.memory_space<vmem>>, vector<16x27xbf16>
    %55 = arith.extf %54 : vector<16x27xbf16> to vector<16x27xf32>
    %cst_24 = arith.constant dense<0.000000e+00> : vector<16x32xf32>
    %56 = tpu.matmul %55, %0, %cst_24 {dimension_numbers = #tpu.dot_dimension_numbers<[1], [0], [0], [1], [0, 0, 1, 1], [], []>} : vector<16x27xf32>, vector<27x32xf32>, vector<16x32xf32> -> vector<16x32xf32>
    %57 = vector.broadcast %1 : vector<1x32xf32> to vector<16x32xf32>
    %58 = arith.addf %56, %57 : vector<16x32xf32>
    %59 = arith.negf %58 : vector<16x32xf32>
    %60 = math.exp %59 : vector<16x32xf32>
    %cst_25 = arith.constant 1.000000e+00 : f32
    %61 = vector.broadcast %cst_25 : f32 to vector<16x32xf32>
    %62 = arith.addf %61, %60 : vector<16x32xf32>
    %63 = arith.divf %61, %62 : vector<16x32xf32>
    %64 = arith.mulf %58, %63 : vector<16x32xf32>
    %cst_26 = arith.constant dense<0.000000e+00> : vector<16x128xf32>
    %65 = tpu.matmul %64, %2, %cst_26 {dimension_numbers = #tpu.dot_dimension_numbers<[1], [0], [0], [1], [0, 0, 1, 1], [], []>} : vector<16x32xf32>, vector<32x128xf32>, vector<16x128xf32> -> vector<16x128xf32>
    %66 = vector.broadcast %3 : vector<1x128xf32> to vector<16x128xf32>
    %67 = arith.addf %65, %66 : vector<16x128xf32>
    %68 = arith.negf %67 : vector<16x128xf32>
    %69 = math.exp %68 : vector<16x128xf32>
    %cst_27 = arith.constant 1.000000e+00 : f32
    %70 = vector.broadcast %cst_27 : f32 to vector<16x128xf32>
    %71 = arith.addf %70, %69 : vector<16x128xf32>
    %72 = arith.divf %70, %71 : vector<16x128xf32>
    %73 = arith.mulf %67, %72 : vector<16x128xf32>
    %74 = vector.broadcast %30 : f32 to vector<16x128xf32>
    %75 = arith.mulf %74, %73 : vector<16x128xf32>
    %c272 = arith.constant 272 : index
    %c0_28 = arith.constant 0 : index
    %76 = vector.load %arg11[%c272, %c0_28] : memref<288x128xf32, #tpu.memory_space<vmem>>, vector<16x128xf32>
    tpu.vector_store %arg11[%c272, %c0_28], %75 {strides = array<i32>} : memref<288x128xf32, #tpu.memory_space<vmem>>, vector<16x128xf32>,
    %c0_29 = arith.constant 0 : index
    %c0_30 = arith.constant 0 : index
    %77 = vector.load %arg11[%c0_29, %c0_30] : memref<288x128xf32, #tpu.memory_space<vmem>>, vector<288x128xf32>
    %78 = tpu.iota {dimensions = array<i32: 0>} : vector<288x1xi32>
    %c16_i32 = arith.constant 16 : i32
    %c0_i32_31 = arith.constant 0 : i32
    %79 = arith.cmpi eq, %c16_i32, %c0_i32_31 : i32
    %c1_i32 = arith.constant 1 : i32
    %80 = arith.select %79, %c1_i32, %c16_i32 : i32
    %81 = vector.broadcast %80 : i32 to vector<288x1xi32>
    %82 = arith.remsi %78, %81 : vector<288x1xi32>
    %c0_i32_32 = arith.constant 0 : i32
    %83 = vector.broadcast %c0_i32_32 : i32 to vector<288x1xi32>
    %84 = arith.cmpi ne, %82, %83 : vector<288x1xi32>
    %c0_i32_33 = arith.constant 0 : i32
    %85 = vector.broadcast %c0_i32_33 : i32 to vector<288x1xi32>
    %86 = arith.cmpi slt, %82, %85 : vector<288x1xi32>
    %c0_i32_34 = arith.constant 0 : i32
    %87 = arith.cmpi slt, %80, %c0_i32_34 : i32
    %88 = vector.broadcast %87 : i1 to vector<288x1xi1>
    %89 = vector.broadcast %88 : vector<288x1xi1> to vector<288x1xi1>
    %90 = arith.xori %86, %89 : vector<288x1xi1>
    %91 = arith.andi %90, %84 : vector<288x1xi1>
    %92 = vector.broadcast %80 : i32 to vector<288x1xi32>
    %93 = arith.addi %82, %92 : vector<288x1xi32>
    %94 = arith.select %91, %93, %82 : vector<288x1xi1>, vector<288x1xi32>
    %c0_i32_35 = arith.constant 0 : i32
    %95 = vector.broadcast %c0_i32_35 : i32 to vector<288x1xi32>
    %96 = arith.cmpi ne, %94, %95 : vector<288x1xi32>
    %c1_i32_36 = arith.constant 1 : i32
    %97 = tpu.dynamic_rotate %77 by %c1_i32_36 dim 0 : vector<288x128xf32>, i32 -> vector<288x128xf32>
    %cst_37 = arith.constant 0.000000e+00 : f32
    %98 = vector.shape_cast %96 : vector<288x1xi1> to vector<288x1xi1>
    %99 = vector.broadcast %98 : vector<288x1xi1> to vector<288x128xi1>
    %100 = vector.broadcast %cst_37 : f32 to vector<288x128xf32>
    %101 = arith.select %99, %97, %100 : vector<288x128xi1>, vector<288x128xf32>
    %c15_i32 = arith.constant 15 : i32
    %102 = vector.broadcast %c15_i32 : i32 to vector<288x1xi32>
    %103 = arith.cmpi ne, %94, %102 : vector<288x1xi32>
    %c287_i32 = arith.constant 287 : i32
    %104 = tpu.dynamic_rotate %77 by %c287_i32 dim 0 : vector<288x128xf32>, i32 -> vector<288x128xf32>
    %cst_38 = arith.constant 0.000000e+00 : f32
    %105 = vector.shape_cast %103 : vector<288x1xi1> to vector<288x1xi1>
    %106 = vector.broadcast %105 : vector<288x1xi1> to vector<288x128xi1>
    %107 = vector.broadcast %cst_38 : f32 to vector<288x128xf32>
    %108 = arith.select %106, %104, %107 : vector<288x128xi1>, vector<288x128xf32>
    %c0_39 = arith.constant 0 : index
    %c0_40 = arith.constant 0 : index
    %109 = vector.load %arg8[%c0_39, %c0_40] : memref<9x128xf32, #tpu.memory_space<vmem>>, vector<9x128xf32>
    %cst_41 = arith.constant 0.000000e+00 : f32
    %110 = vector.broadcast %cst_41 : f32 to vector<256x128xf32>
    %111 = vector.extract_strided_slice %101 {offsets = [0, 0], sizes = [256, 128], strides = [1, 1]} : vector<288x128xf32> to vector<256x128xf32>
    %112 = vector.extract_strided_slice %109 {offsets = [0, 0], sizes = [1, 128], strides = [1, 1]} : vector<9x128xf32> to vector<1x128xf32>
    %113 = vector.shape_cast %112 : vector<1x128xf32> to vector<128xf32>
    %114 = vector.shape_cast %113 : vector<128xf32> to vector<1x128xf32>
    %115 = vector.broadcast %114 : vector<1x128xf32> to vector<256x128xf32>
    %116 = arith.mulf %111, %115 : vector<256x128xf32>
    %117 = arith.addf %110, %116 : vector<256x128xf32>
    %118 = vector.extract_strided_slice %77 {offsets = [0, 0], sizes = [256, 128], strides = [1, 1]} : vector<288x128xf32> to vector<256x128xf32>
    %119 = vector.extract_strided_slice %109 {offsets = [1, 0], sizes = [1, 128], strides = [1, 1]} : vector<9x128xf32> to vector<1x128xf32>
    %120 = vector.shape_cast %119 : vector<1x128xf32> to vector<128xf32>
    %121 = vector.shape_cast %120 : vector<128xf32> to vector<1x128xf32>
    %122 = vector.broadcast %121 : vector<1x128xf32> to vector<256x128xf32>
    %123 = arith.mulf %118, %122 : vector<256x128xf32>
    %124 = arith.addf %117, %123 : vector<256x128xf32>
    %125 = vector.extract_strided_slice %108 {offsets = [0, 0], sizes = [256, 128], strides = [1, 1]} : vector<288x128xf32> to vector<256x128xf32>
    %126 = vector.extract_strided_slice %109 {offsets = [2, 0], sizes = [1, 128], strides = [1, 1]} : vector<9x128xf32> to vector<1x128xf32>
    %127 = vector.shape_cast %126 : vector<1x128xf32> to vector<128xf32>
    %128 = vector.shape_cast %127 : vector<128xf32> to vector<1x128xf32>
    %129 = vector.broadcast %128 : vector<1x128xf32> to vector<256x128xf32>
    %130 = arith.mulf %125, %129 : vector<256x128xf32>
    %131 = arith.addf %124, %130 : vector<256x128xf32>
    %132 = vector.extract_strided_slice %101 {offsets = [16, 0], sizes = [256, 128], strides = [1, 1]} : vector<288x128xf32> to vector<256x128xf32>
    %133 = vector.extract_strided_slice %109 {offsets = [3, 0], sizes = [1, 128], strides = [1, 1]} : vector<9x128xf32> to vector<1x128xf32>
    %134 = vector.shape_cast %133 : vector<1x128xf32> to vector<128xf32>
    %135 = vector.shape_cast %134 : vector<128xf32> to vector<1x128xf32>
    %136 = vector.broadcast %135 : vector<1x128xf32> to vector<256x128xf32>
    %137 = arith.mulf %132, %136 : vector<256x128xf32>
    %138 = arith.addf %131, %137 : vector<256x128xf32>
    %139 = vector.extract_strided_slice %77 {offsets = [16, 0], sizes = [256, 128], strides = [1, 1]} : vector<288x128xf32> to vector<256x128xf32>
    %140 = vector.extract_strided_slice %109 {offsets = [4, 0], sizes = [1, 128], strides = [1, 1]} : vector<9x128xf32> to vector<1x128xf32>
    %141 = vector.shape_cast %140 : vector<1x128xf32> to vector<128xf32>
    %142 = vector.shape_cast %141 : vector<128xf32> to vector<1x128xf32>
    %143 = vector.broadcast %142 : vector<1x128xf32> to vector<256x128xf32>
    %144 = arith.mulf %139, %143 : vector<256x128xf32>
    %145 = arith.addf %138, %144 : vector<256x128xf32>
    %146 = vector.extract_strided_slice %108 {offsets = [16, 0], sizes = [256, 128], strides = [1, 1]} : vector<288x128xf32> to vector<256x128xf32>
    %147 = vector.extract_strided_slice %109 {offsets = [5, 0], sizes = [1, 128], strides = [1, 1]} : vector<9x128xf32> to vector<1x128xf32>
    %148 = vector.shape_cast %147 : vector<1x128xf32> to vector<128xf32>
    %149 = vector.shape_cast %148 : vector<128xf32> to vector<1x128xf32>
    %150 = vector.broadcast %149 : vector<1x128xf32> to vector<256x128xf32>
    %151 = arith.mulf %146, %150 : vector<256x128xf32>
    %152 = arith.addf %145, %151 : vector<256x128xf32>
    %153 = vector.extract_strided_slice %101 {offsets = [32, 0], sizes = [256, 128], strides = [1, 1]} : vector<288x128xf32> to vector<256x128xf32>
    %154 = vector.extract_strided_slice %109 {offsets = [6, 0], sizes = [1, 128], strides = [1, 1]} : vector<9x128xf32> to vector<1x128xf32>
    %155 = vector.shape_cast %154 : vector<1x128xf32> to vector<128xf32>
    %156 = vector.shape_cast %155 : vector<128xf32> to vector<1x128xf32>
    %157 = vector.broadcast %156 : vector<1x128xf32> to vector<256x128xf32>
    %158 = arith.mulf %153, %157 : vector<256x128xf32>
    %159 = arith.addf %152, %158 : vector<256x128xf32>
    %160 = vector.extract_strided_slice %77 {offsets = [32, 0], sizes = [256, 128], strides = [1, 1]} : vector<288x128xf32> to vector<256x128xf32>
    %161 = vector.extract_strided_slice %109 {offsets = [7, 0], sizes = [1, 128], strides = [1, 1]} : vector<9x128xf32> to vector<1x128xf32>
    %162 = vector.shape_cast %161 : vector<1x128xf32> to vector<128xf32>
    %163 = vector.shape_cast %162 : vector<128xf32> to vector<1x128xf32>
    %164 = vector.broadcast %163 : vector<1x128xf32> to vector<256x128xf32>
    %165 = arith.mulf %160, %164 : vector<256x128xf32>
    %166 = arith.addf %159, %165 : vector<256x128xf32>
    %167 = vector.extract_strided_slice %108 {offsets = [32, 0], sizes = [256, 128], strides = [1, 1]} : vector<288x128xf32> to vector<256x128xf32>
    %168 = vector.extract_strided_slice %109 {offsets = [8, 0], sizes = [1, 128], strides = [1, 1]} : vector<9x128xf32> to vector<1x128xf32>
    %169 = vector.shape_cast %168 : vector<1x128xf32> to vector<128xf32>
    %170 = vector.shape_cast %169 : vector<128xf32> to vector<1x128xf32>
    %171 = vector.broadcast %170 : vector<1x128xf32> to vector<256x128xf32>
    %172 = arith.mulf %167, %171 : vector<256x128xf32>
    %173 = arith.addf %166, %172 : vector<256x128xf32>
    %174 = arith.negf %173 : vector<256x128xf32>
    %175 = math.exp %174 : vector<256x128xf32>
    %cst_42 = arith.constant 1.000000e+00 : f32
    %176 = vector.broadcast %cst_42 : f32 to vector<256x128xf32>
    %177 = arith.addf %176, %175 : vector<256x128xf32>
    %178 = arith.divf %176, %177 : vector<256x128xf32>
    %179 = arith.mulf %173, %178 : vector<256x128xf32>
    %180 = arith.truncf %179 : vector<256x128xf32> to vector<256x128xbf16>
    %c0_43 = arith.constant 0 : index
    %c0_44 = arith.constant 0 : index
    %181 = vector.load %arg9[%c0_43, %c0_44] : memref<256x128xbf16, #tpu.memory_space<vmem>>, vector<256x128xbf16>
    tpu.vector_store %arg9[%c0_43, %c0_44], %180 {strides = array<i32>} : memref<256x128xbf16, #tpu.memory_space<vmem>>, vector<256x128xbf16>,
    %cst_45 = arith.constant dense<0.000000e+00> : vector<128xf32>
    %182 = vector.multi_reduction <add>, %179, %cst_45 [0] : vector<256x128xf32> to vector<128xf32>
    %183 = vector.shape_cast %182 : vector<128xf32> to vector<1x128xf32>
    %c0_46 = arith.constant 0 : index
    %c0_47 = arith.constant 0 : index
    %184 = vector.load %arg10[%c0_46, %c0_47] : memref<1x128xf32, #tpu.memory_space<vmem>>, vector<1x128xf32>
    tpu.vector_store %arg10[%c0_46, %c0_47], %183 {strides = array<i32>} : memref<1x128xf32, #tpu.memory_space<vmem>>, vector<1x128xf32>,
    return
  }
  func.func @transform_0(%arg0: i32) -> (i32, i32) {
    %c0_i32 = arith.constant 0 : i32
    %c0_i32_0 = arith.constant 0 : i32
    return %arg0, %c0_i32 : i32, i32
  }
  func.func @transform_1(%arg0: i32) -> (i32, i32) {
    %c16_i32 = arith.constant 16 : i32
    %0 = arith.muli %arg0, %c16_i32 : i32
    %c1_i32 = arith.constant 1 : i32
    %1 = arith.subi %0, %c1_i32 : i32
    %c0_i32 = arith.constant 0 : i32
    %2 = arith.maxsi %1, %c0_i32 : i32
    %c0_i32_0 = arith.constant 0 : i32
    %c0_i32_1 = arith.constant 0 : i32
    return %2, %c0_i32_0 : i32, i32
  }
  func.func @transform_2(%arg0: i32) -> (i32, i32) {
    %c1_i32 = arith.constant 1 : i32
    %0 = arith.addi %arg0, %c1_i32 : i32
    %c16_i32 = arith.constant 16 : i32
    %1 = arith.muli %0, %c16_i32 : i32
    %c15_i32 = arith.constant 15 : i32
    %2 = arith.minsi %1, %c15_i32 : i32
    %c0_i32 = arith.constant 0 : i32
    %c0_i32_0 = arith.constant 0 : i32
    return %2, %c0_i32 : i32, i32
  }
  func.func @transform_3(%arg0: i32) -> (i32, i32) {
    %c0_i32 = arith.constant 0 : i32
    %c0_i32_0 = arith.constant 0 : i32
    %c0_i32_1 = arith.constant 0 : i32
    return %c0_i32, %c0_i32_0 : i32, i32
  }
  func.func @transform_4(%arg0: i32) -> (i32, i32) {
    %c0_i32 = arith.constant 0 : i32
    %c0_i32_0 = arith.constant 0 : i32
    %c0_i32_1 = arith.constant 0 : i32
    return %c0_i32, %c0_i32_0 : i32, i32
  }
  func.func @transform_5(%arg0: i32) -> (i32, i32) {
    %c0_i32 = arith.constant 0 : i32
    %c0_i32_0 = arith.constant 0 : i32
    %c0_i32_1 = arith.constant 0 : i32
    return %c0_i32, %c0_i32_0 : i32, i32
  }
  func.func @transform_6(%arg0: i32) -> (i32, i32) {
    %c0_i32 = arith.constant 0 : i32
    %c0_i32_0 = arith.constant 0 : i32
    %c0_i32_1 = arith.constant 0 : i32
    return %c0_i32, %c0_i32_0 : i32, i32
  }
  func.func @transform_7(%arg0: i32) -> (i32, i32) {
    %c0_i32 = arith.constant 0 : i32
    %c0_i32_0 = arith.constant 0 : i32
    %c0_i32_1 = arith.constant 0 : i32
    return %c0_i32, %c0_i32_0 : i32, i32
  }
  func.func @transform_8(%arg0: i32) -> (i32, i32) {
    %c0_i32 = arith.constant 0 : i32
    %c0_i32_0 = arith.constant 0 : i32
    return %arg0, %c0_i32 : i32, i32
  }
  func.func @transform_9(%arg0: i32) -> (i32, i32) {
    %c0_i32 = arith.constant 0 : i32
    %c0_i32_0 = arith.constant 0 : i32
    return %arg0, %c0_i32 : i32, i32
  }
}

module attributes {stable_mosaic.version = 11 : i64} {
  func.func @_se_proj_head_kernel(%arg0: i32, %arg1: memref<256x128xbf16, #tpu.memory_space<vmem>>, %arg2: memref<256x27xbf16, #tpu.memory_space<vmem>>, %arg3: memref<1x128xf32, #tpu.memory_space<vmem>>, %arg4: memref<27x32xf32, #tpu.memory_space<vmem>>, %arg5: memref<1x32xf32, #tpu.memory_space<vmem>>, %arg6: memref<128x8xf32, #tpu.memory_space<vmem>>, %arg7: memref<1x8xf32, #tpu.memory_space<vmem>>, %arg8: memref<8x128xf32, #tpu.memory_space<vmem>>, %arg9: memref<1x128xf32, #tpu.memory_space<vmem>>, %arg10: memref<128x32xf32, #tpu.memory_space<vmem>>, %arg11: memref<1x32xf32, #tpu.memory_space<vmem>>, %arg12: memref<32x128xf32, #tpu.memory_space<vmem>>, %arg13: memref<1x128xf32, #tpu.memory_space<vmem>>, %arg14: memref<1x128xf32, #tpu.memory_space<vmem>>) attributes {dimension_semantics = [#tpu.dimension_semantics<parallel>], iteration_bounds = array<i64: 1>, scalar_prefetch = 0 : i64, scratch_operands = 0 : i64, tpu.core_type = #tpu.core_type<tc>, window_params = [{transform_indices = @transform_0, window_bounds = array<i64: 256, 128>}, {transform_indices = @transform_1, window_bounds = array<i64: 256, 27>}, {pipeline_mode = #tpu.pipeline_mode<synchronous>, transform_indices = @transform_2, window_bounds = array<i64: 1, 128>}, {pipeline_mode = #tpu.pipeline_mode<synchronous>, transform_indices = @transform_3, window_bounds = array<i64: 27, 32>}, {pipeline_mode = #tpu.pipeline_mode<synchronous>, transform_indices = @transform_4, window_bounds = array<i64: 1, 32>}, {pipeline_mode = #tpu.pipeline_mode<synchronous>, transform_indices = @transform_5, window_bounds = array<i64: 128, 8>}, {pipeline_mode = #tpu.pipeline_mode<synchronous>, transform_indices = @transform_6, window_bounds = array<i64: 1, 8>}, {pipeline_mode = #tpu.pipeline_mode<synchronous>, transform_indices = @transform_7, window_bounds = array<i64: 8, 128>}, {pipeline_mode = #tpu.pipeline_mode<synchronous>, transform_indices = @transform_8, window_bounds = array<i64: 1, 128>}, {pipeline_mode = #tpu.pipeline_mode<synchronous>, transform_indices = @transform_9, window_bounds = array<i64: 128, 32>}, {pipeline_mode = #tpu.pipeline_mode<synchronous>, transform_indices = @transform_10, window_bounds = array<i64: 1, 32>}, {pipeline_mode = #tpu.pipeline_mode<synchronous>, transform_indices = @transform_11, window_bounds = array<i64: 32, 128>}, {pipeline_mode = #tpu.pipeline_mode<synchronous>, transform_indices = @transform_12, window_bounds = array<i64: 1, 128>}, {transform_indices = @transform_13, window_bounds = array<i64: 1, 128>}]} {
    %c0 = arith.constant 0 : index
    %c0_0 = arith.constant 0 : index
    %0 = vector.load %arg3[%c0, %c0_0] : memref<1x128xf32, #tpu.memory_space<vmem>>, vector<1x128xf32>
    %cst = arith.constant dense<0.000000e+00> : vector<128xf32>
    %1 = vector.multi_reduction <add>, %0, %cst [0] : vector<1x128xf32> to vector<128xf32>
    %2 = vector.shape_cast %1 : vector<128xf32> to vector<1x128xf32>
    %cst_1 = arith.constant 3.906250e-03 : f32
    %3 = vector.broadcast %cst_1 : f32 to vector<1x128xf32>
    %4 = arith.mulf %2, %3 : vector<1x128xf32>
    %c0_2 = arith.constant 0 : index
    %c0_3 = arith.constant 0 : index
    %5 = vector.load %arg6[%c0_2, %c0_3] : memref<128x8xf32, #tpu.memory_space<vmem>>, vector<128x8xf32>
    %cst_4 = arith.constant dense<0.000000e+00> : vector<1x8xf32>
    %6 = tpu.matmul %4, %5, %cst_4 {dimension_numbers = #tpu.dot_dimension_numbers<[1], [0], [0], [1], [0, 0, 1, 1], [], []>} : vector<1x128xf32>, vector<128x8xf32>, vector<1x8xf32> -> vector<1x8xf32>
    %c0_5 = arith.constant 0 : index
    %c0_6 = arith.constant 0 : index
    %7 = vector.load %arg7[%c0_5, %c0_6] : memref<1x8xf32, #tpu.memory_space<vmem>>, vector<1x8xf32>
    %8 = arith.addf %6, %7 : vector<1x8xf32>
    %9 = arith.negf %8 : vector<1x8xf32>
    %10 = math.exp %9 : vector<1x8xf32>
    %cst_7 = arith.constant 1.000000e+00 : f32
    %11 = vector.broadcast %cst_7 : f32 to vector<1x8xf32>
    %12 = arith.addf %11, %10 : vector<1x8xf32>
    %13 = arith.divf %11, %12 : vector<1x8xf32>
    %14 = arith.mulf %8, %13 : vector<1x8xf32>
    %c0_8 = arith.constant 0 : index
    %c0_9 = arith.constant 0 : index
    %15 = vector.load %arg8[%c0_8, %c0_9] : memref<8x128xf32, #tpu.memory_space<vmem>>, vector<8x128xf32>
    %cst_10 = arith.constant dense<0.000000e+00> : vector<1x128xf32>
    %16 = tpu.matmul %14, %15, %cst_10 {dimension_numbers = #tpu.dot_dimension_numbers<[1], [0], [0], [1], [0, 0, 1, 1], [], []>} : vector<1x8xf32>, vector<8x128xf32>, vector<1x128xf32> -> vector<1x128xf32>
    %c0_11 = arith.constant 0 : index
    %c0_12 = arith.constant 0 : index
    %17 = vector.load %arg9[%c0_11, %c0_12] : memref<1x128xf32, #tpu.memory_space<vmem>>, vector<1x128xf32>
    %18 = arith.addf %16, %17 : vector<1x128xf32>
    %19 = arith.negf %18 : vector<1x128xf32>
    %20 = math.exp %19 : vector<1x128xf32>
    %cst_13 = arith.constant 1.000000e+00 : f32
    %21 = vector.broadcast %cst_13 : f32 to vector<1x128xf32>
    %22 = arith.addf %21, %20 : vector<1x128xf32>
    %23 = arith.divf %21, %22 : vector<1x128xf32>
    %c0_14 = arith.constant 0 : index
    %c0_15 = arith.constant 0 : index
    %24 = vector.load %arg1[%c0_14, %c0_15] : memref<256x128xbf16, #tpu.memory_space<vmem>>, vector<256x128xbf16>
    %25 = arith.extf %24 : vector<256x128xbf16> to vector<256x128xf32>
    %26 = vector.broadcast %23 : vector<1x128xf32> to vector<256x128xf32>
    %27 = arith.mulf %25, %26 : vector<256x128xf32>
    %c0_16 = arith.constant 0 : index
    %c0_17 = arith.constant 0 : index
    %28 = vector.load %arg2[%c0_16, %c0_17] : memref<256x27xbf16, #tpu.memory_space<vmem>>, vector<256x27xbf16>
    %29 = arith.extf %28 : vector<256x27xbf16> to vector<256x27xf32>
    %c0_18 = arith.constant 0 : index
    %c0_19 = arith.constant 0 : index
    %30 = vector.load %arg4[%c0_18, %c0_19] : memref<27x32xf32, #tpu.memory_space<vmem>>, vector<27x32xf32>
    %cst_20 = arith.constant dense<0.000000e+00> : vector<256x32xf32>
    %31 = tpu.matmul %29, %30, %cst_20 {dimension_numbers = #tpu.dot_dimension_numbers<[1], [0], [0], [1], [0, 0, 1, 1], [], []>} : vector<256x27xf32>, vector<27x32xf32>, vector<256x32xf32> -> vector<256x32xf32>
    %c0_21 = arith.constant 0 : index
    %c0_22 = arith.constant 0 : index
    %32 = vector.load %arg5[%c0_21, %c0_22] : memref<1x32xf32, #tpu.memory_space<vmem>>, vector<1x32xf32>
    %33 = vector.broadcast %32 : vector<1x32xf32> to vector<256x32xf32>
    %34 = arith.addf %31, %33 : vector<256x32xf32>
    %35 = arith.negf %34 : vector<256x32xf32>
    %36 = math.exp %35 : vector<256x32xf32>
    %cst_23 = arith.constant 1.000000e+00 : f32
    %37 = vector.broadcast %cst_23 : f32 to vector<256x32xf32>
    %38 = arith.addf %37, %36 : vector<256x32xf32>
    %39 = arith.divf %37, %38 : vector<256x32xf32>
    %40 = arith.mulf %34, %39 : vector<256x32xf32>
    %c0_24 = arith.constant 0 : index
    %c0_25 = arith.constant 0 : index
    %41 = vector.load %arg10[%c0_24, %c0_25] : memref<128x32xf32, #tpu.memory_space<vmem>>, vector<128x32xf32>
    %cst_26 = arith.constant dense<0.000000e+00> : vector<256x32xf32>
    %42 = tpu.matmul %27, %41, %cst_26 {dimension_numbers = #tpu.dot_dimension_numbers<[1], [0], [0], [1], [0, 0, 1, 1], [], []>} : vector<256x128xf32>, vector<128x32xf32>, vector<256x32xf32> -> vector<256x32xf32>
    %c0_27 = arith.constant 0 : index
    %c0_28 = arith.constant 0 : index
    %43 = vector.load %arg11[%c0_27, %c0_28] : memref<1x32xf32, #tpu.memory_space<vmem>>, vector<1x32xf32>
    %44 = vector.broadcast %43 : vector<1x32xf32> to vector<256x32xf32>
    %45 = arith.addf %42, %44 : vector<256x32xf32>
    %46 = arith.addf %45, %40 : vector<256x32xf32>
    %c0_29 = arith.constant 0 : index
    %c0_30 = arith.constant 0 : index
    %47 = vector.load %arg12[%c0_29, %c0_30] : memref<32x128xf32, #tpu.memory_space<vmem>>, vector<32x128xf32>
    %cst_31 = arith.constant dense<0.000000e+00> : vector<256x128xf32>
    %48 = tpu.matmul %46, %47, %cst_31 {dimension_numbers = #tpu.dot_dimension_numbers<[1], [0], [0], [1], [0, 0, 1, 1], [], []>} : vector<256x32xf32>, vector<32x128xf32>, vector<256x128xf32> -> vector<256x128xf32>
    %c0_32 = arith.constant 0 : index
    %c0_33 = arith.constant 0 : index
    %49 = vector.load %arg13[%c0_32, %c0_33] : memref<1x128xf32, #tpu.memory_space<vmem>>, vector<1x128xf32>
    %50 = vector.broadcast %49 : vector<1x128xf32> to vector<256x128xf32>
    %51 = arith.addf %48, %50 : vector<256x128xf32>
    %52 = arith.negf %51 : vector<256x128xf32>
    %53 = math.exp %52 : vector<256x128xf32>
    %cst_34 = arith.constant 1.000000e+00 : f32
    %54 = vector.broadcast %cst_34 : f32 to vector<256x128xf32>
    %55 = arith.addf %54, %53 : vector<256x128xf32>
    %56 = arith.divf %54, %55 : vector<256x128xf32>
    %57 = arith.mulf %51, %56 : vector<256x128xf32>
    %cst_35 = arith.constant dense<0.000000e+00> : vector<128xf32>
    %58 = vector.multi_reduction <add>, %57, %cst_35 [0] : vector<256x128xf32> to vector<128xf32>
    %59 = vector.shape_cast %58 : vector<128xf32> to vector<1x128xf32>
    %c0_36 = arith.constant 0 : index
    %c0_37 = arith.constant 0 : index
    %60 = vector.load %arg14[%c0_36, %c0_37] : memref<1x128xf32, #tpu.memory_space<vmem>>, vector<1x128xf32>
    tpu.vector_store %arg14[%c0_36, %c0_37], %59 {strides = array<i32>} : memref<1x128xf32, #tpu.memory_space<vmem>>, vector<1x128xf32>,
    return
  }
  func.func @transform_0(%arg0: i32) -> (i32, i32) {
    %c0_i32 = arith.constant 0 : i32
    %c0_i32_0 = arith.constant 0 : i32
    return %arg0, %c0_i32 : i32, i32
  }
  func.func @transform_1(%arg0: i32) -> (i32, i32) {
    %c0_i32 = arith.constant 0 : i32
    %c0_i32_0 = arith.constant 0 : i32
    return %arg0, %c0_i32 : i32, i32
  }
  func.func @transform_2(%arg0: i32) -> (i32, i32) {
    %c0_i32 = arith.constant 0 : i32
    %c0_i32_0 = arith.constant 0 : i32
    %c0_i32_1 = arith.constant 0 : i32
    return %c0_i32, %c0_i32_0 : i32, i32
  }
  func.func @transform_3(%arg0: i32) -> (i32, i32) {
    %c0_i32 = arith.constant 0 : i32
    %c0_i32_0 = arith.constant 0 : i32
    %c0_i32_1 = arith.constant 0 : i32
    return %c0_i32, %c0_i32_0 : i32, i32
  }
  func.func @transform_4(%arg0: i32) -> (i32, i32) {
    %c0_i32 = arith.constant 0 : i32
    %c0_i32_0 = arith.constant 0 : i32
    %c0_i32_1 = arith.constant 0 : i32
    return %c0_i32, %c0_i32_0 : i32, i32
  }
  func.func @transform_5(%arg0: i32) -> (i32, i32) {
    %c0_i32 = arith.constant 0 : i32
    %c0_i32_0 = arith.constant 0 : i32
    %c0_i32_1 = arith.constant 0 : i32
    return %c0_i32, %c0_i32_0 : i32, i32
  }
  func.func @transform_6(%arg0: i32) -> (i32, i32) {
    %c0_i32 = arith.constant 0 : i32
    %c0_i32_0 = arith.constant 0 : i32
    %c0_i32_1 = arith.constant 0 : i32
    return %c0_i32, %c0_i32_0 : i32, i32
  }
  func.func @transform_7(%arg0: i32) -> (i32, i32) {
    %c0_i32 = arith.constant 0 : i32
    %c0_i32_0 = arith.constant 0 : i32
    %c0_i32_1 = arith.constant 0 : i32
    return %c0_i32, %c0_i32_0 : i32, i32
  }
  func.func @transform_8(%arg0: i32) -> (i32, i32) {
    %c0_i32 = arith.constant 0 : i32
    %c0_i32_0 = arith.constant 0 : i32
    %c0_i32_1 = arith.constant 0 : i32
    return %c0_i32, %c0_i32_0 : i32, i32
  }
  func.func @transform_9(%arg0: i32) -> (i32, i32) {
    %c0_i32 = arith.constant 0 : i32
    %c0_i32_0 = arith.constant 0 : i32
    %c0_i32_1 = arith.constant 0 : i32
    return %c0_i32, %c0_i32_0 : i32, i32
  }
  func.func @transform_10(%arg0: i32) -> (i32, i32) {
    %c0_i32 = arith.constant 0 : i32
    %c0_i32_0 = arith.constant 0 : i32
    %c0_i32_1 = arith.constant 0 : i32
    return %c0_i32, %c0_i32_0 : i32, i32
  }
  func.func @transform_11(%arg0: i32) -> (i32, i32) {
    %c0_i32 = arith.constant 0 : i32
    %c0_i32_0 = arith.constant 0 : i32
    %c0_i32_1 = arith.constant 0 : i32
    return %c0_i32, %c0_i32_0 : i32, i32
  }
  func.func @transform_12(%arg0: i32) -> (i32, i32) {
    %c0_i32 = arith.constant 0 : i32
    %c0_i32_0 = arith.constant 0 : i32
    %c0_i32_1 = arith.constant 0 : i32
    return %c0_i32, %c0_i32_0 : i32, i32
  }
  func.func @transform_13(%arg0: i32) -> (i32, i32) {
    %c0_i32 = arith.constant 0 : i32
    %c0_i32_0 = arith.constant 0 : i32
    return %arg0, %c0_i32 : i32, i32
  }
}

module attributes {stable_mosaic.version = 11 : i64} {
  func.func @_pool_fc_softmax_kernel(%arg0: memref<1x128xf32, #tpu.memory_space<vmem>>, %arg1: memref<128x2xf32, #tpu.memory_space<vmem>>, %arg2: memref<1x2xf32, #tpu.memory_space<vmem>>, %arg3: memref<1x2xf32, #tpu.memory_space<vmem>>) attributes {dimension_semantics = [], scalar_prefetch = 0 : i64, scratch_operands = 0 : i64, tpu.core_type = #tpu.core_type<tc>} {
    %c0 = arith.constant 0 : index
    %c0_0 = arith.constant 0 : index
    %0 = vector.load %arg0[%c0, %c0_0] : memref<1x128xf32, #tpu.memory_space<vmem>>, vector<1x128xf32>
    %cst = arith.constant dense<0.000000e+00> : vector<128xf32>
    %1 = vector.multi_reduction <add>, %0, %cst [0] : vector<1x128xf32> to vector<128xf32>
    %2 = vector.shape_cast %1 : vector<128xf32> to vector<1x128xf32>
    %cst_1 = arith.constant 3.906250e-03 : f32
    %3 = vector.broadcast %cst_1 : f32 to vector<1x128xf32>
    %4 = arith.mulf %2, %3 : vector<1x128xf32>
    %c0_2 = arith.constant 0 : index
    %c0_3 = arith.constant 0 : index
    %5 = vector.load %arg1[%c0_2, %c0_3] : memref<128x2xf32, #tpu.memory_space<vmem>>, vector<128x2xf32>
    %cst_4 = arith.constant dense<0.000000e+00> : vector<1x2xf32>
    %6 = tpu.matmul %4, %5, %cst_4 {dimension_numbers = #tpu.dot_dimension_numbers<[1], [0], [0], [1], [0, 0, 1, 1], [], []>} : vector<1x128xf32>, vector<128x2xf32>, vector<1x2xf32> -> vector<1x2xf32>
    %c0_5 = arith.constant 0 : index
    %c0_6 = arith.constant 0 : index
    %7 = vector.load %arg2[%c0_5, %c0_6] : memref<1x2xf32, #tpu.memory_space<vmem>>, vector<1x2xf32>
    %8 = arith.addf %6, %7 : vector<1x2xf32>
    %cst_7 = arith.constant dense<0xFF800000> : vector<1xf32>
    %9 = vector.multi_reduction <maximumf>, %8, %cst_7 [1] : vector<1x2xf32> to vector<1xf32>
    %10 = vector.shape_cast %9 : vector<1xf32> to vector<1x1xf32>
    %11 = vector.broadcast %10 : vector<1x1xf32> to vector<1x2xf32>
    %12 = arith.subf %8, %11 : vector<1x2xf32>
    %13 = math.exp %12 : vector<1x2xf32>
    %cst_8 = arith.constant dense<0.000000e+00> : vector<1xf32>
    %14 = vector.multi_reduction <add>, %13, %cst_8 [1] : vector<1x2xf32> to vector<1xf32>
    %15 = vector.shape_cast %14 : vector<1xf32> to vector<1x1xf32>
    %16 = vector.broadcast %15 : vector<1x1xf32> to vector<1x2xf32>
    %17 = arith.divf %13, %16 : vector<1x2xf32>
    %c0_9 = arith.constant 0 : index
    %c0_10 = arith.constant 0 : index
    %18 = vector.load %arg3[%c0_9, %c0_10] : memref<1x2xf32, #tpu.memory_space<vmem>>, vector<1x2xf32>
    tpu.vector_store %arg3[%c0_9, %c0_10], %17 {strides = array<i32>} : memref<1x2xf32, #tpu.memory_space<vmem>>, vector<1x2xf32>,
    return
  }
}

</mosaic_0001>

<bundles_post_ra>
// kernel: predictor_image_forward.5
= control target key start
LH: loop header
LB: loop body
LE: loop exit
PB: predicated region body
PF: predicated region fallthrough
CT: control target
= control target key end

     0   :  { %v204_v0 = vmov 0.0|0.0   ;;  %vm205_vm0 = vmmov 0   ;;  %v206_v4 = vmov 0.0   ;;  %vm104_vm1 = vcmask 8192   ;;  %s287_s1 = inlined_call_operand.vmem [shape: f32[128,2], index: 1, kind: input, shape index: {}]   ;;  %s288_s0 = inlined_call_operand.vmem [shape: f32[1,128], index: 0, kind: input, shape index: {}]   ;;  %s289_s2 = inlined_call_operand.vmem [shape: f32[1,2], index: 2, kind: input, shape index: {}]   ;;  %s290_s3 = inlined_call_operand.vmem [shape: f32[1,2], index: 3, kind: output, shape index: {}]  }
   0x1   :  { %173 = vmatprep.subr.bf16.mxu0 %v204_v0  ;;  %v17_v1 = vld [vmem:[%s287_s1] sm:$0xff]  ;;  %v18_v2 = vld [vmem:[%s287_s1 + $0x8] sm:$0xff]  ;;  %v19_v3 = vld [vmem:[%s287_s1 + $0x10] sm:$0xff]  ;;  %170 = vmatprep.mubr.msk.f32.mxu0 %vm205_vm0, %v206_v4 }
   0x2   :  { %v174_v5 = vpack.c.bf16 %v18_v2, %v17_v1  ;;  %v20_v6 = vld [vmem:[%s287_s1 + $0x18] sm:$0xff]  ;;  %v21_v8 = vld [vmem:[%s287_s1 + $0x20] sm:$0xff]  ;;  %v22_v9 = vld [vmem:[%s287_s1 + $0x28] sm:$0xff] }
   0x3   :  { %v177_v7 = vpack.c.bf16 %v20_v6, %v19_v3  ;;  %v180_v10 = vpack.c.bf16 %v22_v9, %v21_v8  ;;  %v23_v11 = vld [vmem:[%s287_s1 + $0x30] sm:$0xff]  ;;  %v24_v12 = vld [vmem:[%s287_s1 + $0x38] sm:$0xff]  ;;  %v25_v14 = vld [vmem:[%s287_s1 + $0x40] sm:$0xff] }
   0x4   :  { %175 = vmatpush3.bf16.msra.mxu0 %v174_v5  ;;  %v183_v13 = vpack.c.bf16 %v24_v12, %v23_v11  ;;  %v26_v15 = vld [vmem:[%s287_s1 + $0x48] sm:$0xff]  ;;  %v27_v17 = vld [vmem:[%s287_s1 + $0x50] sm:$0xff]  ;;  %v28_v18 = vld [vmem:[%s287_s1 + $0x58] sm:$0xff] }
   0x5   :  { %176 = vmatprep.subr.bf16.mxu0 %v204_v0  ;;  %v186_v16 = vpack.c.bf16 %v26_v15, %v25_v14  ;;  %v189_v19 = vpack.c.bf16 %v28_v18, %v27_v17  ;;  %v29_v20 = vld [vmem:[%s287_s1 + $0x60] sm:$0xff]  ;;  %v30_v21 = vld [vmem:[%s287_s1 + $0x68] sm:$0xff]  ;;  %v31_v23 = vld [vmem:[%s287_s1 + $0x70] sm:$0xff] }
   0x6   :  { %v192_v22 = vpack.c.bf16 %v30_v21, %v29_v20  ;;  %v32_v24 = vld [vmem:[%s287_s1 + $0x78] sm:$0xff]  ;;  %v14_v26 = vld [vmem:[%s288_s0] sm:$0x1] }
   0x7   :  { %v195_v25 = vpack.c.bf16 %v32_v24, %v31_v23  ;;  %v16_v27 = vmul.f32 0.00390625, %v14_v26  ;;  %v33_v28 = vld [vmem:[%s289_s2] sm:$0x1] }
   0x8   :  { %178 = vmatpush3.bf16.msra.mxu0 %v177_v7 }
   0x9   :  { %179 = vmatprep.subr.bf16.mxu0 %v204_v0 }
   0xc   :  { %181 = vmatpush3.bf16.msra.mxu0 %v180_v10 }
   0xd   :  { %182 = vmatprep.subr.bf16.mxu0 %v204_v0 }
  0x10   :  { %184 = vmatpush3.bf16.msra.mxu0 %v183_v13 }
  0x11   :  { %185 = vmatprep.subr.bf16.mxu0 %v204_v0 }
  0x14   :  { %187 = vmatpush3.bf16.msra.mxu0 %v186_v16 }
  0x15   :  { %188 = vmatprep.subr.bf16.mxu0 %v204_v0 }
  0x18   :  { %190 = vmatpush3.bf16.msra.mxu0 %v189_v19 }
  0x19   :  { %191 = vmatprep.subr.bf16.mxu0 %v204_v0 }
  0x1c   :  { %193 = vmatpush3.bf16.msra.mxu0 %v192_v22 }
  0x1d   :  { %194 = vmatprep.subr.bf16.mxu0 %v204_v0 }
  0x20   :  { %196 = vmatpush3.bf16.msra.mxu0 %v195_v25 }
  0x23   :  { %171 = vmatmul.mubr.f32.vlgmr.msra.gmra.mrb[0].mxu0 %v16_v27 }
  0xf6   :  { %v100_v29 = vpop.f32.mrb[0].mxu0 }
  0xf7   :  { %v101_v30 = vadd.f32 %v100_v29, %v33_v28  ;;  %v172_v31 = vpop.f32.mrb[1].mxu0 }
  0xf9   :  { %v105_v32 = vsel %vm104_vm1, %v101_v30, -inf }
  0xfa   :  { %106 = vmax.xlane.f32.xlu0 %v105_v32 }
 0x187   :  { %v107_v33 = vpop.xlane.xlu0 %106 }
 0x188   :  { %v108_v34 = vsub.f32 %v101_v30, %v107_v33 }
 0x18a   :  { %v109_v35 = vmul.f32 1.442695, %v108_v34 }
 0x18c   :  { %200 = vpow2.f32 %v109_v35 }
 0x196   :  { %v201_v36 = vpop.eup %200 }
 0x197   :  { %v111_v37 = vsel %vm104_vm1, %v201_v36, 0.0 }
 0x198   :  { %112 = vadd.xlane.f32.xlu0 %v111_v37 }
 0x225   :  { %v113_v38 = vpop.xlane.xlu0 %112 }
 0x226   :  { %202 = vrcp.f32 %v113_v38 }
 0x230   :  { %v203_v39 = vpop.eup %202 }
 0x231   :  { %v115_v40 = vmul.f32 %v203_v39, %v201_v36 }
 0x233   :  { %116 = vst.msk [vmem:[%s290_s3] sm:$0x1] %vm104_vm1, %v115_v40 }

// kernel: predictor_image_forward.4
= control target key start
LH: loop header
LB: loop body
LE: loop exit
PB: predicated region body
PF: predicated region fallthrough
CT: control target
= control target key end

     0   :  { %v2837_v0 = vmov 0.0|0.0   ;;  %vm2838_vm0 = vmmov 0   ;;  %v2839_v4 = vmov 0.0   ;;  %vm495_vm1 = vcmask 1042432   ;;  %s3703_s5 = inlined_call_operand.vmem [shape: f32[128,8], index: 5, kind: input, shape index: {}]   ;;  %s3704_s2 = inlined_call_operand.vmem [shape: f32[1,128], index: 2, kind: input, shape index: {}]   ;;  %s3705_s7 = inlined_call_operand.vmem [shape: f32[8,128], index: 7, kind: input, shape index: {}]   ;;  %s3706_s3 = inlined_call_operand.vmem [shape: f32[27,32], index: 3, kind: input, shape index: {}]   ;;  %s3707_s6 = inlined_call_operand.vmem [shape: f32[1,8], index: 6, kind: input, shape index: {}]   ;;  %s3708_s1 = inlined_call_operand.vmem [shape: bf16[256,27], index: 1, kind: input, shape index: {}]   ;;  %s3709_s9 = inlined_call_operand.vmem [shape: f32[128,32], index: 9, kind: input, shape index: {}]   ;;  %s3710_s11 = inlined_call_operand.vmem [shape: f32[32,128], index: 11, kind: input, shape index: {}]   ;;  %s3711_s8 = inlined_call_operand.vmem [shape: f32[1,128], index: 8, kind: input, shape index: {}]   ;;  %s3712_s0 = inlined_call_operand.vmem [shape: bf16[256,128], index: 0, kind: input, shape index: {}]   ;;  %s3713_s4 = inlined_call_operand.vmem [shape: f32[1,32], index: 4, kind: input, shape index: {}]   ;;  %s3714_s10 = inlined_call_operand.vmem [shape: f32[1,32], index: 10, kind: input, shape index: {}]   ;;  %s3715_s12 = inlined_call_operand.vmem [shape: f32[1,128], index: 12, kind: input, shape index: {}]   ;;  %s3716_s13 = inlined_call_operand.vmem [shape: f32[1,128], index: 13, kind: output, shape index: {}]  }
   0x1   :  { %2491 = vmatprep.subr.bf16.mxu0 %v2837_v0  ;;  %v47_v1 = vld [vmem:[%s3703_s5] sm:$0xff]  ;;  %v48_v2 = vld [vmem:[%s3703_s5 + $0x8] sm:$0xff]  ;;  %v49_v3 = vld [vmem:[%s3703_s5 + $0x10] sm:$0xff]  ;;  %2291 = vmatprep.mubr.msk.f32.mxu0 %vm2838_vm0, %v2839_v4  ;;  %vm143_vm2 = vcmask 64512   ;;  %vm398_vm3 = vcmask 220160   ;;  %vm2840_vm4 = vmmov 1  }
   0x2   :  { %v2492_v5 = vpack.c.bf16 %v48_v2, %v47_v1  ;;  %v50_v6 = vld [vmem:[%s3703_s5 + $0x18] sm:$0xff]  ;;  %2294 = vmatprep.subr.mxu1 %v2839_v4  ;;  %2296 = vmatprep.mubr.msk.f32.mxu1 %vm2838_vm0, %v2839_v4  ;;  %v51_v8 = vld [vmem:[%s3703_s5 + $0x20] sm:$0xff]  ;;  %v52_v9 = vld [vmem:[%s3703_s5 + $0x28] sm:$0xff]  ;;  %vm1239_vm6 = vcmask 261120  }
   0x3   :  { %v2495_v7 = vpack.c.bf16 %v50_v6, %v49_v3  ;;  %v2498_v10 = vpack.c.bf16 %v52_v9, %v51_v8  ;;  %v53_v11 = vld [vmem:[%s3703_s5 + $0x30] sm:$0xff]  ;;  %v54_v12 = vld [vmem:[%s3703_s5 + $0x38] sm:$0xff]  ;;  %v55_v14 = vld [vmem:[%s3703_s5 + $0x40] sm:$0xff] }
   0x4   :  { %2493 = vmatpush3.bf16.msra.mxu0 %v2492_v5  ;;  %v2501_v13 = vpack.c.bf16 %v54_v12, %v53_v11  ;;  %v56_v15 = vld [vmem:[%s3703_s5 + $0x48] sm:$0xff]  ;;  %v57_v17 = vld [vmem:[%s3703_s5 + $0x50] sm:$0xff]  ;;  %v58_v18 = vld [vmem:[%s3703_s5 + $0x58] sm:$0xff] }
   0x5   :  { %2494 = vmatprep.subr.bf16.mxu0 %v2837_v0  ;;  %v2504_v16 = vpack.c.bf16 %v56_v15, %v55_v14  ;;  %v2507_v19 = vpack.c.bf16 %v58_v18, %v57_v17  ;;  %v59_v20 = vld [vmem:[%s3703_s5 + $0x60] sm:$0xff]  ;;  %v60_v21 = vld [vmem:[%s3703_s5 + $0x68] sm:$0xff]  ;;  %v61_v23 = vld [vmem:[%s3703_s5 + $0x70] sm:$0xff] }
   0x6   :  { %v2510_v22 = vpack.c.bf16 %v60_v21, %v59_v20  ;;  %v62_v24 = vld [vmem:[%s3703_s5 + $0x78] sm:$0xff]  ;;  %v44_v26 = vld [vmem:[%s3704_s2] sm:$0x1]  ;;  %v388_v30 = vld [vmem:[%s3706_s3 + $0x8] sm:$0xff] }
   0x7   :  { %v2513_v25 = vpack.c.bf16 %v62_v24, %v61_v23  ;;  %v46_v27 = vmul.f32 0.00390625, %v44_v26  ;;  %v141_v28 = vld [vmem:[%s3705_s7] sm:$0xff]  ;;  %v389_v40 = vld [vmem:[%s3706_s3 + $0x10] sm:$0xff]  ;;  %v390_v41 = vld [vmem:[%s3706_s3 + $0x18] sm:$0x7] }
   0x8   :  { %2496 = vmatpush3.bf16.msra.mxu0 %v2495_v7  ;;  %2295 = vmatpush3.msra.mxu1 %v141_v28  ;;  %v387_v29 = vld [vmem:[%s3706_s3] sm:$0xff]  ;;  %v2519_v45 = vpack.c.bf16 %v390_v41, %v389_v40  ;;  %vm2520_vm5 = vmpackc.low %vm495_vm1, %vm2840_vm4  ;;  %v2105_v46 = vld [vmem:[%s3708_s1 + $0x8] sm:$0xff]  }
   0x9   :  { %2497 = vmatprep.subr.bf16.mxu0 %v2837_v0  ;;  %v2515_v31 = vpack.c.bf16 %v388_v30, %v387_v29  ;;  %v63_v32 = vld [vmem:[%s3707_s6] sm:$0x1]  ;;  %v2032_v48 = vunpack.c.l.bf16 %v2105_v46  ;;  %v2106_v49 = vld [vmem:[%s3708_s1 + $0x10] sm:$0xff]   ;;  %v2033_v50 = vunpack.c.h.bf16 %v2105_v46  ;;  %v2107_v52 = vld [vmem:[%s3708_s1 + $0x18] sm:$0xff]  }
   0xa   :  { %v2027_v39 = vld [vmem:[%s3708_s1] sm:$0xff]   ;;  %v2036_v51 = vunpack.c.l.bf16 %v2106_v49  ;;  %v2037_v53 = vunpack.c.h.bf16 %v2106_v49  ;;  %v2040_v54 = vunpack.c.l.bf16 %v2107_v52  ;;  %v2041_v56 = vunpack.c.h.bf16 %v2107_v52  ;;  %v2109_v58 = vld [vmem:[%s3708_s1 + $0x28] sm:$0xff]   ;;  %v2110_v62 = vld [vmem:[%s3708_s1 + $0x30] sm:$0xff]  }
   0xb   :  { %2516 = vmatprep.subr.bf16.mxu1 %v2515_v31  ;;  %v2028_v43 = vunpack.c.l.bf16 %v2027_v39  ;;  %v2029_v47 = vunpack.c.h.bf16 %v2027_v39  ;;  %v2108_v55 = vld [vmem:[%s3708_s1 + $0x20] sm:$0xff]   ;;  %v2048_v60 = vunpack.c.l.bf16 %v2109_v58  ;;  %v2049_v61 = vunpack.c.h.bf16 %v2109_v58  ;;  %v2111_v4 = vld [vmem:[%s3708_s1 + $0x38] sm:$0xff]   ;;  %v950_v5 = vld [vmem:[%s3709_s9 + $0x10] sm:$0xff] }
   0xc   :  { %2499 = vmatpush3.bf16.msra.mxu0 %v2498_v10  ;;  %v2044_v57 = vunpack.c.l.bf16 %v2108_v55  ;;  %v2045_v59 = vunpack.c.h.bf16 %v2108_v55  ;;  %v948_v63 = vld [vmem:[%s3709_s9] sm:$0xff]  ;;  %v2052_v1 = vunpack.c.l.bf16 %v2110_v62  ;;  %v2053_v3 = vunpack.c.h.bf16 %v2110_v62  ;;  %v951_v6 = vld [vmem:[%s3709_s9 + $0x18] sm:$0xff]  ;;  %v953_v12 = vld [vmem:[%s3709_s9 + $0x28] sm:$0xff] }
   0xd   :  { %2500 = vmatprep.subr.bf16.mxu0 %v2837_v0  ;;  %v2056_v7 = vunpack.c.l.bf16 %v2111_v4  ;;  %v2529_v8 = vpack.c.bf16 %v951_v6, %v950_v5  ;;  %v2057_v9 = vunpack.c.h.bf16 %v2111_v4  ;;  %v2112_v10 = vld [vmem:[%s3708_s1 + $0x40] sm:$0xff]   ;;  %v954_v17 = vld [vmem:[%s3709_s9 + $0x30] sm:$0xff]  ;;  %v955_v18 = vld [vmem:[%s3709_s9 + $0x38] sm:$0xff]  ;;  %v287_v6 = vlaneseq }
   0xe   :  { %v952_v11 = vld [vmem:[%s3709_s9 + $0x20] sm:$0xff]  ;;  %v2061_v15 = vunpack.c.h.bf16 %v2112_v10  ;;  %v2537_v20 = vpack.c.bf16 %v955_v18, %v954_v17  ;;  %v957_v24 = vld [vmem:[%s3709_s9 + $0x48] sm:$0xff]  ;;  %v2115_v28 = vld [vmem:[%s3708_s1 + $0x58] sm:$0xff]  }
   0xf   :  { %v2533_v14 = vpack.c.bf16 %v953_v12, %v952_v11  ;;  %v956_v23 = vld [vmem:[%s3709_s9 + $0x40] sm:$0xff]  ;;  %v958_v29 = vld [vmem:[%s3709_s9 + $0x50] sm:$0xff]  ;;  %v959_v30 = vld [vmem:[%s3709_s9 + $0x58] sm:$0xff] }
  0x10   :  { %2502 = vmatpush3.bf16.msra.mxu0 %v2501_v13  ;;  %v2060_v13 = vunpack.c.l.bf16 %v2112_v10  ;;  %v2541_v26 = vpack.c.bf16 %v957_v24, %v956_v23  ;;  %v2117_v40 = vld [vmem:[%s3708_s1 + $0x68] sm:$0xff]   ;;  %v962_v41 = vld [vmem:[%s3709_s9 + $0x70] sm:$0xff]  ;;  %v2119_v49 = vld [vmem:[%s3708_s1 + $0x78] sm:$0xff]  }
  0x11   :  { %2503 = vmatprep.subr.bf16.mxu0 %v2837_v0  ;;  %v2118_v46 = vld [vmem:[%s3708_s1 + $0x70] sm:$0xff]   ;;  %v1228_v52 = vld [vmem:[%s3710_s11] sm:$0xff] }
  0x12   :  { %v1230_v55 = vld [vmem:[%s3710_s11 + $0x10] sm:$0xff]  ;;  %v142_v58 = vld [vmem:[%s3711_s8] sm:$0x1] }
  0x13   :  { %v1963_v11 = vld [vmem:[%s3712_s0] sm:$0xff]   ;;  %v2091_v23 = vld [vmem:[%s3712_s0 + $0x10] sm:$0xff]  }
  0x14   :  { %2505 = vmatpush3.bf16.msra.mxu0 %v2504_v16  ;;  %v2113_v16 = vld [vmem:[%s3708_s1 + $0x48] sm:$0xff]   ;;  %v1965_v17 = vunpack.c.h.bf16 %v1963_v11 }
  0x15   :  { %2506 = vmatprep.subr.bf16.mxu0 %v2837_v0  ;;  %v2065_v21 = vunpack.c.h.bf16 %v2113_v16 }
  0x18   :  { %2508 = vmatpush3.bf16.msra.mxu0 %v2507_v19  ;;  %v2064_v19 = vunpack.c.l.bf16 %v2113_v16  ;;  %v1964_v16 = vunpack.c.l.bf16 %v1963_v11 }
  0x19   :  { %2509 = vmatprep.subr.bf16.mxu0 %v2837_v0 }
  0x1c   :  { %2511 = vmatpush3.bf16.msra.mxu0 %v2510_v22  ;;  %v2114_v22 = vld [vmem:[%s3708_s1 + $0x50] sm:$0xff]  }
  0x1d   :  { %2512 = vmatprep.subr.bf16.mxu0 %v2837_v0  ;;  %v949_v0 = vld [vmem:[%s3709_s9 + $0x8] sm:$0xff] }
  0x1e   :  { %v2525_v2 = vpack.c.bf16 %v949_v0, %v948_v63 }
  0x20   :  { %2514 = vmatpush3.bf16.msra.mxu0 %v2513_v25  ;;  %v2068_v25 = vunpack.c.l.bf16 %v2114_v22 }
  0x21   :  { %2526 = vmatprep.subr.bf16.mxu0 %v2525_v2 }
  0x23   :  { %2292 = vmatmul.mubr.f32.vlgmr.msra.gmra.mrb[0].mxu0 %v46_v27  ;;  %v2069_v27 = vunpack.c.h.bf16 %v2114_v22 }
  0x24   :  { %2528 = vmatpush3.bf16.msra.mxu0 %v2525_v2 }
  0x25   :  { %2530 = vmatprep.subr.bf16.mxu0 %v2529_v8 }
  0x28   :  { %2532 = vmatpush3.bf16.msra.mxu0 %v2529_v8 }
  0x29   :  { %2534 = vmatprep.subr.bf16.mxu0 %v2533_v14 }
  0x2c   :  { %2536 = vmatpush3.bf16.msra.mxu0 %v2533_v14 }
  0x2d   :  { %2538 = vmatprep.subr.bf16.mxu0 %v2537_v20 }
  0x30   :  { %2540 = vmatpush3.bf16.msra.mxu0 %v2537_v20 }
  0x31   :  { %2542 = vmatprep.subr.bf16.mxu0 %v2541_v26 }
  0x34   :  { %2544 = vmatpush3.bf16.msra.mxu0 %v2541_v26 }
  0xf6   :  { %v130_v33 = vpop.f32.mrb[0].mxu0 }
  0xf7   :  { %v131_v34 = vadd.f32 %v130_v33, %v63_v32  ;;  %v2293_v35 = vpop.f32.mrb[1].mxu0  ;;  %v2545_v32 = vpack.c.bf16 %v959_v30, %v958_v29  ;;  %v2073_v33 = vunpack.c.h.bf16 %v2115_v28  ;;  %v2092_v29 = vld [vmem:[%s3712_s0 + $0x18] sm:$0xff]  }
  0xf8   :  { %v960_v35 = vld [vmem:[%s3709_s9 + $0x60] sm:$0xff] }
  0xf9   :  { %v1827_v36 = vmul.f32 -1.442695, %v131_v34  ;;  %2546 = vmatprep.subr.bf16.mxu0 %v2545_v32 }
  0xfa   :  { %2548 = vmatpush3.bf16.msra.mxu0 %v2545_v32 }
  0xfb   :  { %2573 = vpow2.f32 %v1827_v36  ;;  %v961_v36 = vld [vmem:[%s3709_s9 + $0x68] sm:$0xff] }
 0x105   :  { %v2574_v37 = vpop.eup %2573 }
 0x106   :  { %v137_v38 = vadd.f32 1.0, %v2574_v37 }
 0x108   :  { %2575 = vrcp.f32 %v137_v38  ;;  %v2549_v38 = vpack.c.bf16 %v961_v36, %v960_v35  ;;  %v1977_v36 = vunpack.c.h.bf16 %v2092_v29 }
 0x10a   :  { %2550 = vmatprep.subr.bf16.mxu0 %v2549_v38 }
 0x10b   :  { %2552 = vmatpush3.bf16.msra.mxu0 %v2549_v38 }
 0x112   :  { %v2576_v42 = vpop.eup %2575 }
 0x113   :  { %v140_v44 = vmul.f32 %v2576_v42, %v131_v34  ;;  %v2116_v34 = vld [vmem:[%s3708_s1 + $0x60] sm:$0xff]   ;;  %v963_v42 = vld [vmem:[%s3709_s9 + $0x78] sm:$0xff] }
 0x114   :  { %v2076_v37 = vunpack.c.l.bf16 %v2116_v34  ;;  %v2077_v39 = vunpack.c.h.bf16 %v2116_v34  ;;  %v2093_v34 = vld [vmem:[%s3712_s0 + $0x20] sm:$0xff]  }
 0x115   :  { %2297 = vmatmul.mubr.msk.f32.vlgmr.msra.gmra.mrb[0].mxu1 %vm143_vm2, %v140_v44  ;;  %v2553_v44 = vpack.c.bf16 %v963_v42, %v962_v41  ;;  %v1980_v38 = vunpack.c.l.bf16 %v2093_v34  ;;  %v1981_v41 = vunpack.c.h.bf16 %v2093_v34 }
 0x116   :  { %2518 = vmatpush3.bf16.msra.mxu1 %v2515_v31  ;;  %2307 = vmatprep.mubr.msk.f32.mxu1 %vm398_vm3, %v2028_v43  ;;  %v2072_v31 = vunpack.c.l.bf16 %v2115_v28  ;;  %v2080_v43 = vunpack.c.l.bf16 %v2117_v40  ;;  %v1972_v28 = vunpack.c.l.bf16 %v2091_v23 }
 0x117   :  { %2521 = vmatprep.subr.msk.bf16.mxu1 %vm2520_vm5, %v2519_v45  ;;  %2554 = vmatprep.subr.bf16.mxu0 %v2553_v44 }
 0x118   :  { %2556 = vmatpush3.bf16.msra.mxu0 %v2553_v44  ;;  %v2095_v44 = vld [vmem:[%s3712_s0 + $0x30] sm:$0xff]  }
 0x11a   :  { %2524 = vmatpush3.bf16.msk.msra.mxu1 %vm2520_vm5, %v2519_v45  ;;  %v2081_v45 = vunpack.c.h.bf16 %v2117_v40 }
 0x11d   :  { %2308 = vmatmul.mubr.msk.f32.vlgmr.msra.gmra.mrb[2].mxu1 %vm398_vm3, %v2029_v47  ;;  %v2084_v47 = vunpack.c.l.bf16 %v2118_v46 }
 0x11e   :  { %2310 = vmatprep.mubr.msk.f32.mxu1 %vm398_vm3, %v2032_v48  ;;  %v2085_v48 = vunpack.c.h.bf16 %v2118_v46 }
 0x121   :  { %2311 = vmatmul.mubr.msk.f32.gmra.mrb[4].mxu1 %vm398_vm3, %v2033_v50  ;;  %v2088_v50 = vunpack.c.l.bf16 %v2119_v49 }
 0x122   :  { %2313 = vmatprep.mubr.msk.f32.mxu1 %vm398_vm3, %v2036_v51  ;;  %v2089_v51 = vunpack.c.h.bf16 %v2119_v49  ;;  %v2096_v49 = vld [vmem:[%s3712_s0 + $0x38] sm:$0xff]  }
 0x125   :  { %2314 = vmatmul.mubr.msk.f32.gmra.mrb[6].mxu1 %vm398_vm3, %v2037_v53  ;;  %v1229_v53 = vld [vmem:[%s3710_s11 + $0x8] sm:$0xff] }
 0x126   :  { %2316 = vmatprep.mubr.msk.f32.mxu1 %vm398_vm3, %v2040_v54  ;;  %v2557_v54 = vpack.c.bf16 %v1229_v53, %v1228_v52  ;;  %v1992_v53 = vunpack.c.l.bf16 %v2096_v49 }
 0x128   :  { %2558 = vmatprep.subr.bf16.mxu0 %v2557_v54  ;;  %2565 = vmatprep.subr.bf16.mxu1 %v2557_v54 }
 0x129   :  { %2317 = vmatmul.mubr.msk.f32.gmra.mrb[8].mxu1 %vm398_vm3, %v2041_v56  ;;  %v1231_v56 = vld [vmem:[%s3710_s11 + $0x18] sm:$0xff] }
 0x12a   :  { %2319 = vmatprep.mubr.msk.f32.mxu1 %vm398_vm3, %v2044_v57  ;;  %2567 = vmatpush3.bf16.msra.mxu1 %v2557_v54  ;;  %v2561_v57 = vpack.c.bf16 %v1231_v56, %v1230_v55  ;;  %v1993_v56 = vunpack.c.h.bf16 %v2096_v49 }
 0x12c   :  { %2566 = vmatprep.subr.bf16.mxu1 %v2561_v57 }
 0x12d   :  { %2320 = vmatmul.mubr.msk.f32.gmra.mrb[10].mxu1 %vm398_vm3, %v2045_v59 }
 0x12e   :  { %2322 = vmatprep.mubr.msk.f32.mxu1 %vm398_vm3, %v2048_v60  ;;  %2568 = vmatpush3.bf16.msra.mxu1 %v2561_v57 }
 0x131   :  { %2323 = vmatmul.mubr.msk.f32.gmra.mrb[12].mxu1 %vm398_vm3, %v2049_v61 }
 0x132   :  { %2325 = vmatprep.mubr.msk.f32.mxu1 %vm398_vm3, %v2052_v1 }
 0x135   :  { %2326 = vmatmul.mubr.msk.f32.gmra.mrb[14].mxu1 %vm398_vm3, %v2053_v3 }
 0x136   :  { %2328 = vmatprep.mubr.msk.f32.mxu1 %vm398_vm3, %v2056_v7 }
 0x139   :  { %2329 = vmatmul.mubr.msk.f32.gmra.mrb[16].mxu1 %vm398_vm3, %v2057_v9  ;;  %v288_v9 = vshrl.u32 %v287_v6, 7 }
 0x13a   :  { %2331 = vmatprep.mubr.msk.f32.mxu1 %vm398_vm3, %v2060_v13 }
 0x13b   :  { %v289_v13 = vsub.s32 0, %v288_v9 }
 0x13d   :  { %2332 = vmatmul.mubr.msk.f32.gmra.mrb[18].mxu1 %vm398_vm3, %v2061_v15  ;;  %v2090_v15 = vld [vmem:[%s3712_s0 + $0x8] sm:$0xff]  }
 0x13e   :  { %2334 = vmatprep.mubr.msk.f32.mxu1 %vm398_vm3, %v2064_v19  ;;  %v1969_v26 = vunpack.c.h.bf16 %v2090_v15 }
 0x141   :  { %2335 = vmatmul.mubr.msk.f32.gmra.mrb[20].mxu1 %vm398_vm3, %v2065_v21  ;;  %v1968_v21 = vunpack.c.l.bf16 %v2090_v15  ;;  %v2100_v15 = vld [vmem:[%s3712_s0 + $0x58] sm:$0xff]  }
 0x142   :  { %2337 = vmatprep.mubr.msk.f32.mxu1 %vm398_vm3, %v2068_v25 }
 0x145   :  { %2338 = vmatmul.mubr.msk.f32.gmra.mrb[22].mxu1 %vm398_vm3, %v2069_v27 }
 0x146   :  { %2340 = vmatprep.mubr.msk.f32.mxu1 %vm398_vm3, %v2072_v31  ;;  %v1973_v31 = vunpack.c.h.bf16 %v2091_v23  ;;  %v2101_v23 = vld [vmem:[%s3712_s0 + $0x60] sm:$0xff]  }
 0x149   :  { %2341 = vmatmul.mubr.msk.f32.gmra.mrb[24].mxu1 %vm398_vm3, %v2073_v33  ;;  %v1976_v33 = vunpack.c.l.bf16 %v2092_v29 }
 0x14a   :  { %2343 = vmatprep.mubr.msk.f32.mxu1 %vm398_vm3, %v2076_v37 }
 0x14d   :  { %2344 = vmatmul.mubr.msk.f32.gmra.mrb[26].mxu1 %vm398_vm3, %v2077_v39  ;;  %v2094_v39 = vld [vmem:[%s3712_s0 + $0x28] sm:$0xff]  }
 0x14e   :  { %2346 = vmatprep.mubr.msk.f32.mxu1 %vm398_vm3, %v2080_v43  ;;  %v1984_v43 = vunpack.c.l.bf16 %v2094_v39  ;;  %v1985_v46 = vunpack.c.h.bf16 %v2094_v39 }
 0x151   :  { %2347 = vmatmul.mubr.msk.f32.gmra.mrb[28].mxu1 %vm398_vm3, %v2081_v45 }
 0x152   :  { %2349 = vmatprep.mubr.msk.f32.mxu1 %vm398_vm3, %v2084_v47 }
 0x155   :  { %2350 = vmatmul.mubr.msk.f32.gmra.mrb[30].mxu1 %vm398_vm3, %v2085_v48  ;;  %v1988_v48 = vunpack.c.l.bf16 %v2095_v44 }
 0x156   :  { %2352 = vmatprep.mubr.msk.f32.mxu1 %vm398_vm3, %v2088_v50 }
 0x159   :  { %2353 = vmatmul.mubr.msk.f32.gmra.mrb[32].mxu1 %vm398_vm3, %v2089_v51  ;;  %v1989_v51 = vunpack.c.h.bf16 %v2095_v44 }
 0x1e8   :  { %v213_v59 = vpop.f32.mrb[0].mxu1 }
 0x1e9   :  { %v214_v60 = vadd.f32 %v213_v59, %v142_v58  ;;  %v2298_v61 = vpop.f32.mrb[1].mxu1  ;;  %v2098_v59 = vld [vmem:[%s3712_s0 + $0x48] sm:$0xff]  }
 0x1ea   :  { %v2001_v9 = vunpack.c.h.bf16 %v2098_v59 }
 0x1eb   :  { %v1829_v62 = vmul.f32 -1.442695, %v214_v60 }
 0x1ed   :  { %2577 = vpow2.f32 %v1829_v62 }
 0x1f0   :  { %v3123_v63 = vpop.f32.mrb[2].mxu1 }
 0x1f1   :  { %v3125_v0 = vpop.f32.mrb[3].mxu1 }
 0x1f4   :  { %v3127_v1 = vpop.f32.mrb[4].mxu1 }
 0x1f5   :  { %v3129_v2 = vpop.f32.mrb[5].mxu1 }
 0x1f7   :  { %v2578_v3 = vpop.eup %2577 }
 0x1f8   :  { %v220_v4 = vadd.f32 1.0, %v2578_v3  ;;  %v3131_v5 = vpop.f32.mrb[6].mxu1  ;;  %v2000_v3 = vunpack.c.l.bf16 %v2098_v59 }
 0x1f9   :  { %v3133_v7 = vpop.f32.mrb[7].mxu1 }
 0x1fa   :  { %2579 = vrcp.f32 %v220_v4  ;;  %v2099_v4 = vld [vmem:[%s3712_s0 + $0x50] sm:$0xff]  }
 0x1fc   :  { %v3135_v8 = vpop.f32.mrb[8].mxu1 }
 0x1fd   :  { %v3137_v10 = vpop.f32.mrb[9].mxu1 }
 0x200   :  { %v3142_v12 = vpop.f32.mrb[10].mxu1 }
 0x201   :  { %v3144_v14 = vpop.f32.mrb[11].mxu1 }
 0x204   :  { %v2580_v18 = vpop.eup %2579  ;;  %v3149_v19 = vpop.f32.mrb[12].mxu1 }
 0x205   :  { %v3151_v20 = vrot.slane %v2580_v18, %v289_v13  ;;  %v3153_v22 = vpop.f32.mrb[13].mxu1  ;;  %v2004_v13 = vunpack.c.l.bf16 %v2099_v4 }
 0x207   :  { %v291_v24 = vmul.f32 %v1964_v16, %v3151_v20  ;;  %v292_v25 = vmul.f32 %v1965_v17, %v3151_v20  ;;  %v293_v27 = vmul.f32 %v1968_v21, %v3151_v20  ;;  %v294_v30 = vmul.f32 %v1969_v26, %v3151_v20 }
 0x208   :  { %v295_v32 = vmul.f32 %v1972_v28, %v3151_v20  ;;  %v296_v35 = vmul.f32 %v1973_v31, %v3151_v20  ;;  %v297_v37 = vmul.f32 %v1976_v33, %v3151_v20  ;;  %v298_v40 = vmul.f32 %v1977_v36, %v3151_v20  ;;  %v2102_v28 = vld [vmem:[%s3712_s0 + $0x68] sm:$0xff]   ;;  %v2103_v33 = vld [vmem:[%s3712_s0 + $0x70] sm:$0xff]  }
 0x209   :  { %2387 = vmatprep.mubr.f32.mxu0 %v291_v24  ;;  %v299_v42 = vmul.f32 %v1980_v38, %v3151_v20  ;;  %v300_v45 = vmul.f32 %v1981_v41, %v3151_v20  ;;  %v301_v47 = vmul.f32 %v1984_v43, %v3151_v20  ;;  %v302_v50 = vmul.f32 %v1985_v46, %v3151_v20  ;;  %v2104_v38 = vld [vmem:[%s3712_s0 + $0x78] sm:$0xff]   ;;  %v3226_v43 = vpop.f32.mrb[14].mxu1 }
 0x20a   :  { %2388 = vmatmul.mubr.f32.vlgmr.msra.gmra.mrb[2].mxu0 %v292_v25  ;;  %v303_v52 = vmul.f32 %v1988_v48, %v3151_v20  ;;  %v304_v55 = vmul.f32 %v1989_v51, %v3151_v20  ;;  %v306_v60 = vmul.f32 %v1993_v56, %v3151_v20  ;;  %v309_v11 = vmul.f32 %v2000_v3, %v3151_v20  ;;  %v3228_v44 = vpop.f32.mrb[15].mxu1 }
 0x20b   :  { %2390 = vmatprep.mubr.f32.mxu0 %v293_v27  ;;  %2560 = vmatpush3.bf16.msra.mxu0 %v2557_v54  ;;  %v2097_v54 = vld [vmem:[%s3712_s0 + $0x40] sm:$0xff]   ;;  %v310_v16 = vmul.f32 %v2001_v9, %v3151_v20  ;;  %v2005_v17 = vunpack.c.h.bf16 %v2099_v4  ;;  %v311_v18 = vmul.f32 %v2004_v13, %v3151_v20  ;;  %v2008_v21 = vunpack.c.l.bf16 %v2100_v15 }
 0x20c   :  { %2562 = vmatprep.subr.bf16.mxu0 %v2561_v57  ;;  %v1996_v58 = vunpack.c.l.bf16 %v2097_v54  ;;  %v1997_v61 = vunpack.c.h.bf16 %v2097_v54  ;;  %v2009_v25 = vunpack.c.h.bf16 %v2100_v15  ;;  %v2012_v27 = vunpack.c.l.bf16 %v2101_v23  ;;  %v3232_v48 = vpop.f32.mrb[16].mxu1  ;;  %v3272_v9 = vld [vmem:[%s3713_s4] ss:$0 sm:$0xff] }
 0x20d   :  { %v312_v24 = vmul.f32 %v2005_v17, %v3151_v20  ;;  %v313_v26 = vmul.f32 %v2008_v21, %v3151_v20  ;;  %v2025_v46 = vunpack.c.h.bf16 %v2104_v38  ;;  %v3234_v49 = vpop.f32.mrb[17].mxu1  ;;  %v3280_v13 = vadd.f32 %v3272_v9, %v3125_v0 }
 0x20e   :  { %2391 = vmatmul.mubr.f32.gmra.mrb[4].mxu0 %v294_v30  ;;  %v307_v62 = vmul.f32 %v1996_v58, %v3151_v20  ;;  %v308_v6 = vmul.f32 %v1997_v61, %v3151_v20  ;;  %v314_v29 = vmul.f32 %v2009_v25, %v3151_v20  ;;  %v2013_v30 = vunpack.c.h.bf16 %v2101_v23 }
 0x20f   :  { %2393 = vmatprep.mubr.f32.mxu0 %v295_v32  ;;  %2564 = vmatpush3.bf16.msra.mxu0 %v2561_v57  ;;  %v305_v57 = vmul.f32 %v1992_v53, %v3151_v20  ;;  %v315_v31 = vmul.f32 %v2012_v27, %v3151_v20  ;;  %v2016_v32 = vunpack.c.l.bf16 %v2102_v28  ;;  %v1864_v17 = vmul.f32 -1.442695, %v3280_v13 }
 0x210   :  { %v316_v34 = vmul.f32 %v2013_v30, %v3151_v20  ;;  %v3237_v51 = vpop.f32.mrb[18].mxu1  ;;  %v3291_v21 = vadd.f32 %v3272_v9, %v3129_v2  ;;  %v3304_v23 = vadd.f32 %v3135_v8, %v3272_v9  ;;  %v3309_v2 = vadd.f32 %v3272_v9, %v3137_v10 }
 0x211   :  { %v317_v36 = vmul.f32 %v2016_v32, %v3151_v20  ;;  %v3320_v27 = vadd.f32 %v3272_v9, %v3144_v14  ;;  %v3330_v32 = vadd.f32 %v3272_v9, %v3153_v22 }
 0x212   :  { %2394 = vmatmul.mubr.f32.gmra.mrb[6].mxu0 %v296_v35  ;;  %v2017_v35 = vunpack.c.h.bf16 %v2102_v28  ;;  %v1866_v0 = vmul.f32 -1.442695, %v3291_v21  ;;  %v1871_v25 = vmul.f32 -1.442695, %v3304_v23  ;;  %v1870_v8 = vmul.f32 -1.442695, %v3309_v2 }
 0x213   :  { %2396 = vmatprep.mubr.f32.mxu0 %v297_v37  ;;  %v2020_v37 = vunpack.c.l.bf16 %v2103_v33 }
 0x214   :  { %v318_v39 = vmul.f32 %v2017_v35, %v3151_v20 }
 0x215   :  { %v319_v41 = vmul.f32 %v2020_v37, %v3151_v20  ;;  %v3340_v37 = vadd.f32 %v3272_v9, %v3228_v44 }
 0x216   :  { %2397 = vmatmul.mubr.f32.gmra.mrb[8].mxu0 %v298_v40  ;;  %v2021_v40 = vunpack.c.h.bf16 %v2103_v33 }
 0x217   :  { %2399 = vmatprep.mubr.f32.mxu0 %v299_v42  ;;  %v2024_v42 = vunpack.c.l.bf16 %v2104_v38 }
 0x21a   :  { %2400 = vmatmul.mubr.f32.gmra.mrb[10].mxu0 %v300_v45  ;;  %v320_v45 = vmul.f32 %v2021_v40, %v3151_v20 }
 0x21b   :  { %2402 = vmatprep.mubr.f32.mxu0 %v301_v47  ;;  %v321_v47 = vmul.f32 %v2024_v42, %v3151_v20  ;;  %v1876_v42 = vmul.f32 -1.442695, %v3340_v37 }
 0x21e   :  { %2403 = vmatmul.mubr.f32.gmra.mrb[12].mxu0 %v302_v50  ;;  %v322_v50 = vmul.f32 %v2025_v46, %v3151_v20 }
 0x21f   :  { %2405 = vmatprep.mubr.f32.mxu0 %v303_v52  ;;  %v3239_v52 = vpop.f32.mrb[19].mxu1 }
 0x220   :  { %v3241_v53 = vpop.f32.mrb[20].mxu1 }
 0x221   :  { %v3243_v54 = vpop.f32.mrb[21].mxu1 }
 0x222   :  { %2406 = vmatmul.mubr.f32.gmra.mrb[14].mxu0 %v304_v55  ;;  %v3245_v55 = vpop.f32.mrb[22].mxu1 }
 0x223   :  { %2408 = vmatprep.mubr.f32.mxu0 %v305_v57  ;;  %v3247_v56 = vpop.f32.mrb[23].mxu1 }
 0x224   :  { %v3249_v57 = vpop.f32.mrb[24].mxu1 }
 0x225   :  { %v3251_v58 = vpop.f32.mrb[25].mxu1 }
 0x226   :  { %2409 = vmatmul.mubr.f32.gmra.mrb[16].mxu0 %v306_v60  ;;  %v3253_v59 = vpop.f32.mrb[26].mxu1 }
 0x227   :  { %2411 = vmatprep.mubr.f32.mxu0 %v307_v62  ;;  %v3255_v20 = vpop.f32.mrb[27].mxu1 }
 0x228   :  { %v3257_v60 = vpop.f32.mrb[28].mxu1 }
 0x229   :  { %v3259_v61 = vpop.f32.mrb[29].mxu1 }
 0x22a   :  { %2412 = vmatmul.mubr.f32.gmra.mrb[18].mxu0 %v308_v6  ;;  %v3261_v62 = vpop.f32.mrb[30].mxu1 }
 0x22b   :  { %2414 = vmatprep.mubr.f32.mxu0 %v309_v11  ;;  %v3263_v3 = vpop.f32.mrb[31].mxu1  ;;  %v3276_v11 = vadd.f32 %v3123_v63, %v3272_v9  ;;  %v3295_v63 = vadd.f32 %v3131_v5, %v3272_v9 }
 0x22c   :  { %v3265_v4 = vpop.f32.mrb[32].mxu1 }
 0x22d   :  { %v3267_v6 = vpop.f32.mrb[33].mxu1  ;;  %v1865_v15 = vmul.f32 -1.442695, %v3276_v11 }
 0x22e   :  { %2415 = vmatmul.mubr.f32.gmra.mrb[20].mxu0 %v310_v16  ;;  %v3285_v16 = vadd.f32 %v3127_v1, %v3272_v9  ;;  %v3300_v1 = vadd.f32 %v3272_v9, %v3133_v7  ;;  %v3315_v7 = vadd.f32 %v3142_v12, %v3272_v9  ;;  %v1872_v12 = vmul.f32 -1.442695, %v3320_v27 }
 0x22f   :  { %2417 = vmatprep.mubr.f32.mxu0 %v311_v18  ;;  %2581 = vpow2.f32 %v1865_v15  ;;  %v3354_v15 = vadd.f32 %v3237_v51, %v3272_v9 }
 0x230   :  { %v1867_v18 = vmul.f32 -1.442695, %v3285_v16  ;;  %2583 = vpow2.f32 %v1864_v17  ;;  %v1868_v5 = vmul.f32 -1.442695, %v3300_v1  ;;  %v1873_v30 = vmul.f32 -1.442695, %v3315_v7 }
 0x231   :  { %v1881_v51 = vmul.f32 -1.442695, %v3354_v15 }
 0x232   :  { %2418 = vmatmul.mubr.f32.gmra.mrb[22].mxu0 %v312_v24  ;;  %2585 = vpow2.f32 %v1867_v18  ;;  %v1869_v24 = vmul.f32 -1.442695, %v3295_v63 }
 0x233   :  { %2420 = vmatprep.mubr.f32.mxu0 %v313_v26  ;;  %2587 = vpow2.f32 %v1866_v0 }
 0x234   :  { %2589 = vpow2.f32 %v1869_v24 }
 0x235   :  { %2591 = vpow2.f32 %v1868_v5 }
 0x236   :  { %2421 = vmatmul.mubr.f32.gmra.mrb[24].mxu0 %v314_v29  ;;  %2593 = vpow2.f32 %v1871_v25 }
 0x237   :  { %2423 = vmatprep.mubr.f32.mxu0 %v315_v31  ;;  %v3325_v31 = vadd.f32 %v3149_v19, %v3272_v9  ;;  %2595 = vpow2.f32 %v1870_v8  ;;  %v1874_v19 = vmul.f32 -1.442695, %v3330_v32 }
 0x239   :  { %v2582_v26 = vpop.eup %2581  ;;  %v1875_v35 = vmul.f32 -1.442695, %v3325_v31 }
 0x23a   :  { %2424 = vmatmul.mubr.f32.gmra.mrb[26].mxu0 %v316_v34  ;;  %v2584_v10 = vpop.eup %2583  ;;  %v821_v28 = vadd.f32 1.0, %v2582_v26  ;;  %v3365_v26 = vadd.f32 %v3241_v53, %v3272_v9 }
 0x23b   :  { %2426 = vmatprep.mubr.f32.mxu0 %v317_v36  ;;  %v820_v14 = vadd.f32 1.0, %v2584_v10  ;;  %v3335_v36 = vadd.f32 %v3226_v43, %v3272_v9  ;;  %v3346_v43 = vadd.f32 %v3232_v48, %v3272_v9 }
 0x23c   :  { %v2586_v29 = vpop.eup %2585  ;;  %2597 = vrcp.f32 %v821_v28  ;;  %v3370_v28 = vld [vmem:[%s3714_s10] ss:$0 sm:$0xff] }
 0x23d   :  { %v823_v33 = vadd.f32 1.0, %v2586_v29  ;;  %v2588_v34 = vpop.eup %2587  ;;  %2599 = vpow2.f32 %v1873_v30  ;;  %v1877_v40 = vmul.f32 -1.442695, %v3335_v36  ;;  %v1879_v18 = vmul.f32 -1.442695, %v3346_v43 }
 0x23e   :  { %2427 = vmatmul.mubr.f32.gmra.mrb[28].mxu0 %v318_v39  ;;  %2601 = vpow2.f32 %v1872_v12  ;;  %v2590_v22 = vpop.eup %2589  ;;  %v822_v38 = vadd.f32 1.0, %v2588_v34 }
 0x23f   :  { %2429 = vmatprep.mubr.f32.mxu0 %v319_v41  ;;  %2603 = vrcp.f32 %v820_v14  ;;  %v2592_v39 = vpop.eup %2591 }
 0x240   :  { %2605 = vrcp.f32 %v823_v33  ;;  %v2594_v41 = vpop.eup %2593  ;;  %v824_v44 = vadd.f32 1.0, %v2592_v39  ;;  %v3377_v33 = vadd.f32 %v3272_v9, %v3243_v54 }
 0x241   :  { %2607 = vpow2.f32 %v1875_v35  ;;  %v2596_v46 = vpop.eup %2595  ;;  %v1883_v35 = vmul.f32 -1.442695, %v3365_v26 }
 0x242   :  { %2430 = vmatmul.mubr.f32.gmra.mrb[30].mxu0 %v320_v45  ;;  %2609 = vpow2.f32 %v1874_v19  ;;  %v825_v45 = vadd.f32 1.0, %v2590_v22  ;;  %v826_v0 = vadd.f32 1.0, %v2596_v46  ;;  %v3382_v19 = vadd.f32 %v3245_v55, %v3272_v9 }
 0x243   :  { %2432 = vmatprep.mubr.f32.mxu0 %v321_v47  ;;  %2611 = vrcp.f32 %v822_v38  ;;  %v3350_v47 = vadd.f32 %v3272_v9, %v3234_v49  ;;  %v3360_v49 = vadd.f32 %v3272_v9, %v3239_v52  ;;  %v1882_v55 = vmul.f32 -1.442695, %v3377_v33 }
 0x244   :  { %2613 = vpow2.f32 %v1877_v40  ;;  %v3390_v46 = vadd.f32 %v3272_v9, %v3247_v56 }
 0x245   :  { %2615 = vpow2.f32 %v1876_v42  ;;  %v1878_v5 = vmul.f32 -1.442695, %v3350_v47  ;;  %v1880_v53 = vmul.f32 -1.442695, %v3360_v49 }
 0x246   :  { %2433 = vmatmul.mubr.f32.gmra.mrb[32].mxu0 %v322_v50  ;;  %v827_v50 = vadd.f32 1.0, %v2594_v41  ;;  %v2598_v17 = vpop.eup %2597  ;;  %2617 = vrcp.f32 %v825_v45 }
 0x247   :  { %v2600_v48 = vpop.eup %2599  ;;  %2619 = vrcp.f32 %v824_v44  ;;  %v917_v52 = vmul.f32 %v2598_v17, %v3276_v11  ;;  %v1885_v17 = vmul.f32 -1.442695, %v3382_v19 }
 0x248   :  { %v2602_v24 = vpop.eup %2601  ;;  %2621 = vrcp.f32 %v827_v50  ;;  %v829_v10 = vadd.f32 1.0, %v2600_v48 }
 0x249   :  { %v2604_v25 = vpop.eup %2603  ;;  %2623 = vpow2.f32 %v1879_v18  ;;  %v828_v30 = vadd.f32 1.0, %v2602_v24  ;;  %v3395_v18 = vadd.f32 %v3249_v57, %v3272_v9 }
 0x24a   :  { %v2606_v8 = vpop.eup %2605  ;;  %2625 = vrcp.f32 %v826_v0  ;;  %v916_v14 = vmul.f32 %v2604_v25, %v3280_v13 }
 0x24b   :  { %v2608_v29 = vpop.eup %2607  ;;  %2627 = vpow2.f32 %v1878_v5  ;;  %v919_v13 = vmul.f32 %v2606_v8, %v3285_v16 }
 0x24c   :  { %v2610_v12 = vpop.eup %2609  ;;  %2629 = vpow2.f32 %v1881_v51  ;;  %v831_v39 = vadd.f32 1.0, %v2608_v29  ;;  %v1884_v29 = vmul.f32 -1.442695, %v3390_v46 }
 0x24d   :  { %v2612_v38 = vpop.eup %2611  ;;  %2631 = vrcp.f32 %v829_v10  ;;  %v830_v41 = vadd.f32 1.0, %v2610_v12 }
 0x24e   :  { %v2614_v54 = vpop.eup %2613  ;;  %2633 = vrcp.f32 %v828_v30  ;;  %v918_v5 = vmul.f32 %v2612_v38, %v3291_v21 }
 0x24f   :  { %v2616_v45 = vpop.eup %2615  ;;  %2635 = vpow2.f32 %v1880_v53  ;;  %v833_v25 = vadd.f32 1.0, %v2614_v54  ;;  %v1887_v53 = vmul.f32 -1.442695, %v3395_v18 }
 0x250   :  { %v2618_v16 = vpop.eup %2617  ;;  %2637 = vpow2.f32 %v1883_v35  ;;  %v832_v8 = vadd.f32 1.0, %v2616_v45 }
 0x251   :  { %v2620_v24 = vpop.eup %2619  ;;  %2639 = vrcp.f32 %v831_v39 }
 0x252   :  { %v2622_v51 = vpop.eup %2621  ;;  %2641 = vrcp.f32 %v830_v41 }
 0x253   :  { %v2624_v57 = vpop.eup %2623  ;;  %2643 = vpow2.f32 %v1882_v55  ;;  %v923_v55 = vmul.f32 %v2622_v51, %v3304_v23  ;;  %v3431_v23 = vadd.f32 %v3257_v60, %v3272_v9 }
 0x254   :  { %v2626_v12 = vpop.eup %2625  ;;  %2645 = vpow2.f32 %v1885_v17 }
 0x255   :  { %2647 = vrcp.f32 %v833_v25  ;;  %v922_v17 = vmul.f32 %v2626_v12, %v3309_v2 }
 0x256   :  { %2649 = vrcp.f32 %v832_v8 }
 0x257   :  { %2651 = vpow2.f32 %v1884_v29 }
 0x258   :  { %2653 = vpow2.f32 %v1887_v53 }
 0x2dd   :  { %v2389_v34 = vpop.f32.mrb[2].mxu0 }
 0x2de   :  { %v1043_v11 = vadd.f32 %v2389_v34, %v3370_v28  ;;  %v1037_v22 = vpop.f32.mrb[3].mxu0 }
 0x2df   :  { %v1038_v40 = vadd.f32 %v3370_v28, %v1037_v22  ;;  %v920_v22 = vmul.f32 %v2620_v24, %v3300_v1  ;;  %v3421_v1 = vadd.f32 %v3272_v9, %v3255_v20 }
 0x2e0   :  { %v1197_v42 = vadd.f32 %v1043_v11, %v917_v52  ;;  %v3405_v52 = vadd.f32 %v3272_v9, %v3251_v58  ;;  %v2628_v11 = vpop.eup %2627 }
 0x2e1   :  { %v1196_v44 = vadd.f32 %v1038_v40, %v916_v14  ;;  %v2392_v50 = vpop.f32.mrb[4].mxu0  ;;  %v921_v14 = vmul.f32 %v2618_v16, %v3295_v63  ;;  %v2630_v58 = vpop.eup %2629  ;;  %v3415_v63 = vadd.f32 %v3253_v59, %v3272_v9  ;;  %v1888_v2 = vmul.f32 -1.442695, %v3421_v1 }
 0x2e2   :  { %v1053_v48 = vadd.f32 %v2392_v50, %v3370_v28  ;;  %v1047_v0 = vpop.f32.mrb[5].mxu0  ;;  %v2632_v40 = vpop.eup %2631  ;;  %v1886_v54 = vmul.f32 -1.442695, %v3405_v52 }
 0x2e3   :  { %v1048_v56 = vadd.f32 %v3370_v28, %v1047_v0  ;;  %2443 = vmatprep.mubr.msk.f32.mxu0 %vm1239_vm6, %v1196_v44  ;;  %v2634_v45 = vpop.eup %2633  ;;  %v834_v44 = vadd.f32 1.0, %v2628_v11  ;;  %v1889_v24 = vmul.f32 -1.442695, %v3415_v63 }
 0x2e4   :  { %v1199_v10 = vadd.f32 %v1053_v48, %v919_v13  ;;  %2444 = vmatmul.mubr.msk.f32.vlgmr.msra.gmra.mrb[34].mxu0 %vm1239_vm6, %v1197_v42  ;;  %v835_v13 = vadd.f32 1.0, %v2624_v57  ;;  %v2636_v16 = vpop.eup %2635  ;;  %v837_v48 = vadd.f32 1.0, %v2630_v58  ;;  %v925_v57 = vmul.f32 %v2632_v40, %v3315_v7 }
 0x2e5   :  { %v1198_v21 = vadd.f32 %v1048_v56, %v918_v5  ;;  %v2395_v30 = vpop.f32.mrb[6].mxu0  ;;  %v2638_v20 = vpop.eup %2637  ;;  %v3437_v56 = vadd.f32 %v3272_v9, %v3259_v61  ;;  %v836_v29 = vadd.f32 1.0, %v2636_v16  ;;  %v924_v12 = vmul.f32 %v2634_v45, %v3320_v27 }
 0x2e6   :  { %v1063_v34 = vadd.f32 %v2395_v30, %v3370_v28  ;;  %v1057_v35 = vpop.f32.mrb[7].mxu0  ;;  %2655 = vrcp.f32 %v835_v13  ;;  %v2640_v25 = vpop.eup %2639  ;;  %v3447_v7 = vadd.f32 %v3261_v62, %v3272_v9 }
 0x2e7   :  { %v1058_v38 = vadd.f32 %v3370_v28, %v1057_v35  ;;  %2446 = vmatprep.mubr.msk.f32.mxu1 %vm1239_vm6, %v1198_v21  ;;  %2657 = vpow2.f32 %v1886_v54  ;;  %v1890_v27 = vmul.f32 -1.442695, %v3437_v56 }
 0x2e8   :  { %v1201_v39 = vadd.f32 %v1063_v34, %v921_v14  ;;  %2447 = vmatmul.mubr.msk.f32.vlgmr.msra.gmra.mrb[34].mxu1 %vm1239_vm6, %v1199_v10  ;;  %v2642_v10 = vpop.eup %2641  ;;  %2659 = vrcp.f32 %v834_v44  ;;  %v839_v14 = vadd.f32 1.0, %v2638_v20  ;;  %v1891_v34 = vmul.f32 -1.442695, %v3431_v23 }
 0x2e9   :  { %v1200_v41 = vadd.f32 %v1058_v38, %v920_v22  ;;  %v2398_v42 = vpop.f32.mrb[8].mxu0  ;;  %v2644_v30 = vpop.eup %2643  ;;  %2661 = vrcp.f32 %v837_v48  ;;  %v3453_v22 = vadd.f32 %v3272_v9, %v3263_v3  ;;  %v1893_v44 = vmul.f32 -1.442695, %v3447_v7 }
 0x2ea   :  { %v1073_v59 = vadd.f32 %v2398_v42, %v3370_v28  ;;  %v1067_v50 = vpop.f32.mrb[9].mxu0  ;;  %v2646_v61 = vpop.eup %2645  ;;  %2663 = vpow2.f32 %v1889_v24  ;;  %v838_v40 = vadd.f32 1.0, %v2644_v30  ;;  %v926_v42 = vmul.f32 %v2642_v10, %v3330_v32 }
 0x2eb   :  { %v1068_v0 = vadd.f32 %v3370_v28, %v1067_v50  ;;  %2449 = vmatprep.mubr.msk.f32.mxu1 %vm1239_vm6, %v1200_v41  ;;  %v2648_v11 = vpop.eup %2647  ;;  %2665 = vpow2.f32 %v1888_v2  ;;  %v841_v45 = vadd.f32 1.0, %v2646_v61  ;;  %v1892_v32 = vmul.f32 -1.442695, %v3453_v22 }
 0x2ec   :  { %v1203_v5 = vadd.f32 %v1073_v59, %v923_v55  ;;  %2450 = vmatmul.mubr.msk.f32.gmra.mrb[36].mxu1 %vm1239_vm6, %v1201_v39  ;;  %v2650_v13 = vpop.eup %2649  ;;  %v927_v39 = vmul.f32 %v2640_v25, %v3325_v31  ;;  %2667 = vrcp.f32 %v836_v29  ;;  %v3463_v31 = vadd.f32 %v3265_v4, %v3272_v9 }
 0x2ed   :  { %v1202_v51 = vadd.f32 %v1068_v0, %v922_v17  ;;  %v2401_v8 = vpop.f32.mrb[10].mxu0  ;;  %v2652_v41 = vpop.eup %2651  ;;  %2669 = vrcp.f32 %v839_v14  ;;  %v3469_v50 = vadd.f32 %v3272_v9, %v3267_v6  ;;  %v929_v0 = vmul.f32 %v2648_v11, %v3335_v36 }
 0x2ee   :  { %v1083_v60 = vadd.f32 %v2401_v8, %v3370_v28  ;;  %v1077_v21 = vpop.f32.mrb[11].mxu0  ;;  %v2654_v3 = vpop.eup %2653  ;;  %2671 = vpow2.f32 %v1891_v34  ;;  %v840_v20 = vadd.f32 1.0, %v2652_v41  ;;  %v928_v25 = vmul.f32 %v2650_v13, %v3340_v37 }
 0x2ef   :  { %v1078_v53 = vadd.f32 %v3370_v28, %v1077_v21  ;;  %2452 = vmatprep.mubr.msk.f32.mxu1 %vm1239_vm6, %v1202_v51  ;;  %2673 = vpow2.f32 %v1890_v27  ;;  %v843_v2 = vadd.f32 1.0, %v2654_v3  ;;  %v1895_v9 = vmul.f32 -1.442695, %v3463_v31 }
 0x2f0   :  { %v1205_v35 = vadd.f32 %v1083_v60, %v925_v57  ;;  %2453 = vmatmul.mubr.msk.f32.gmra.mrb[38].mxu1 %vm1239_vm6, %v1203_v5  ;;  %v2656_v48 = vpop.eup %2655  ;;  %2675 = vrcp.f32 %v838_v40  ;;  %v1894_v10 = vmul.f32 -1.442695, %v3469_v50 }
 0x2f1   :  { %v1204_v38 = vadd.f32 %v1078_v53, %v924_v12  ;;  %v2404_v58 = vpop.f32.mrb[12].mxu0  ;;  %v2658_v5 = vpop.eup %2657  ;;  %2677 = vrcp.f32 %v841_v45  ;;  %v931_v60 = vmul.f32 %v2656_v48, %v3346_v43 }
 0x2f2   :  { %v1093_v62 = vadd.f32 %v2404_v58, %v3370_v28  ;;  %v1087_v54 = vpop.f32.mrb[13].mxu0  ;;  %v2660_v6 = vpop.eup %2659  ;;  %2679 = vpow2.f32 %v1893_v44  ;;  %v842_v21 = vadd.f32 1.0, %v2658_v5 }
 0x2f3   :  { %v1088_v55 = vadd.f32 %v3370_v28, %v1087_v54  ;;  %2455 = vmatprep.mubr.msk.f32.mxu1 %vm1239_vm6, %v1204_v38  ;;  %v2662_v36 = vpop.eup %2661  ;;  %2681 = vpow2.f32 %v1892_v32  ;;  %v930_v53 = vmul.f32 %v2660_v6, %v3350_v47 }
 0x2f4   :  { %v1207_v59 = vadd.f32 %v1093_v62, %v927_v39  ;;  %2456 = vmatmul.mubr.msk.f32.gmra.mrb[40].mxu1 %vm1239_vm6, %v1205_v35  ;;  %v2664_v37 = vpop.eup %2663  ;;  %2683 = vrcp.f32 %v840_v20  ;;  %v933_v13 = vmul.f32 %v2662_v36, %v3354_v15 }
 0x2f5   :  { %v1206_v16 = vadd.f32 %v1088_v55, %v926_v42  ;;  %v2407_v17 = vpop.f32.mrb[14].mxu0  ;;  %v2666_v14 = vpop.eup %2665  ;;  %2685 = vrcp.f32 %v843_v2  ;;  %v845_v43 = vadd.f32 1.0, %v2664_v37 }
 0x2f6   :  { %v1103_v4 = vadd.f32 %v2407_v17, %v3370_v28  ;;  %v1097_v24 = vpop.f32.mrb[15].mxu0  ;;  %v2668_v34 = vpop.eup %2667  ;;  %2687 = vpow2.f32 %v1895_v9  ;;  %v844_v47 = vadd.f32 1.0, %v2666_v14 }
 0x2f7   :  { %v1098_v51 = vadd.f32 %v3370_v28, %v1097_v24  ;;  %2458 = vmatprep.mubr.msk.f32.mxu1 %vm1239_vm6, %v1206_v16  ;;  %v2670_v11 = vpop.eup %2669  ;;  %2689 = vpow2.f32 %v1894_v10  ;;  %v932_v54 = vmul.f32 %v2668_v34, %v3360_v49 }
 0x2f8   :  { %v1209_v8 = vadd.f32 %v1103_v4, %v929_v0  ;;  %2459 = vmatmul.mubr.msk.f32.gmra.mrb[42].mxu1 %vm1239_vm6, %v1207_v59  ;;  %v2672_v58 = vpop.eup %2671  ;;  %2691 = vrcp.f32 %v842_v21  ;;  %v935_v32 = vmul.f32 %v2670_v11, %v3365_v26 }
 0x2f9   :  { %v1208_v57 = vadd.f32 %v1098_v51, %v928_v25  ;;  %v2410_v29 = vpop.f32.mrb[16].mxu0  ;;  %v2674_v62 = vpop.eup %2673  ;;  %2693 = vrcp.f32 %v845_v43  ;;  %v847_v3 = vadd.f32 1.0, %v2672_v58 }
 0x2fa   :  { %v1113_v30 = vadd.f32 %v2410_v29, %v3370_v28  ;;  %v1107_v12 = vpop.f32.mrb[17].mxu0  ;;  %v2676_v42 = vpop.eup %2675  ;;  %2695 = vrcp.f32 %v844_v47  ;;  %v846_v16 = vadd.f32 1.0, %v2674_v62 }
 0x2fb   :  { %v1108_v61 = vadd.f32 %v3370_v28, %v1107_v12  ;;  %2461 = vmatprep.mubr.msk.f32.mxu1 %vm1239_vm6, %v1208_v57  ;;  %v2678_v55 = vpop.eup %2677  ;;  %v934_v0 = vmul.f32 %v2676_v42, %v3377_v33  ;;  %2697 = vrcp.f32 %v847_v3 }
 0x2fc   :  { %v1211_v35 = vadd.f32 %v1113_v30, %v931_v60  ;;  %2462 = vmatmul.mubr.msk.f32.gmra.mrb[44].mxu1 %vm1239_vm6, %v1209_v8  ;;  %v2680_v59 = vpop.eup %2679  ;;  %v937_v6 = vmul.f32 %v2678_v55, %v3382_v19  ;;  %2699 = vrcp.f32 %v846_v16 }
 0x2fd   :  { %v1210_v27 = vadd.f32 %v1108_v61, %v930_v53  ;;  %v2413_v38 = vpop.f32.mrb[18].mxu0  ;;  %v2682_v48 = vpop.eup %2681  ;;  %v849_v25 = vadd.f32 1.0, %v2680_v59 }
 0x2fe   :  { %v1123_v39 = vadd.f32 %v2413_v38, %v3370_v28  ;;  %v1117_v40 = vpop.f32.mrb[19].mxu0  ;;  %v2684_v4 = vpop.eup %2683  ;;  %v848_v9 = vadd.f32 1.0, %v2682_v48 }
 0x2ff   :  { %v1118_v41 = vadd.f32 %v3370_v28, %v1117_v40  ;;  %2464 = vmatprep.mubr.msk.f32.mxu1 %vm1239_vm6, %v1210_v27  ;;  %v2686_v5 = vpop.eup %2685  ;;  %v936_v10 = vmul.f32 %v2684_v4, %v3390_v46  ;;  %2701 = vrcp.f32 %v849_v25 }
 0x300   :  { %v1213_v45 = vadd.f32 %v1123_v39, %v933_v13  ;;  %2465 = vmatmul.mubr.msk.f32.gmra.mrb[46].mxu1 %vm1239_vm6, %v1211_v35  ;;  %v2688_v51 = vpop.eup %2687  ;;  %v939_v30 = vmul.f32 %v2686_v5, %v3395_v18  ;;  %2703 = vrcp.f32 %v848_v9 }
 0x301   :  { %v1212_v15 = vadd.f32 %v1118_v41, %v932_v54  ;;  %v2416_v44 = vpop.f32.mrb[20].mxu0  ;;  %v2690_v36 = vpop.eup %2689  ;;  %v851_v60 = vadd.f32 1.0, %v2688_v51 }
 0x302   :  { %v1133_v49 = vadd.f32 %v2416_v44, %v3370_v28  ;;  %v1127_v17 = vpop.f32.mrb[21].mxu0  ;;  %v2692_v29 = vpop.eup %2691  ;;  %v850_v12 = vadd.f32 1.0, %v2690_v36 }
 0x303   :  { %v1128_v20 = vadd.f32 %v3370_v28, %v1127_v17  ;;  %2467 = vmatprep.mubr.msk.f32.mxu1 %vm1239_vm6, %v1212_v15  ;;  %v2694_v46 = vpop.eup %2693  ;;  %v938_v61 = vmul.f32 %v2692_v29, %v3405_v52  ;;  %2705 = vrcp.f32 %v851_v60 }
 0x304   :  { %v1215_v24 = vadd.f32 %v1133_v49, %v935_v32  ;;  %2468 = vmatmul.mubr.msk.f32.gmra.mrb[48].mxu1 %vm1239_vm6, %v1213_v45  ;;  %v2696_v35 = vpop.eup %2695  ;;  %v941_v18 = vmul.f32 %v2694_v46, %v3415_v63  ;;  %2707 = vrcp.f32 %v850_v12 }
 0x305   :  { %v1214_v26 = vadd.f32 %v1128_v20, %v934_v0  ;;  %v2419_v2 = vpop.f32.mrb[22].mxu0  ;;  %v2698_v13 = vpop.eup %2697  ;;  %v940_v52 = vmul.f32 %v2696_v35, %v3421_v1 }
 0x306   :  { %v1143_v33 = vadd.f32 %v2419_v2, %v3370_v28  ;;  %v1137_v8 = vpop.f32.mrb[23].mxu0  ;;  %v2700_v39 = vpop.eup %2699  ;;  %v943_v41 = vmul.f32 %v2698_v13, %v3431_v23 }
 0x307   :  { %v1138_v57 = vadd.f32 %v3370_v28, %v1137_v8  ;;  %2470 = vmatprep.mubr.msk.f32.mxu1 %vm1239_vm6, %v1214_v26  ;;  %v942_v55 = vmul.f32 %v2700_v39, %v3437_v56 }
 0x308   :  { %v1217_v37 = vadd.f32 %v1143_v33, %v937_v6  ;;  %2471 = vmatmul.mubr.msk.f32.gmra.mrb[50].mxu1 %vm1239_vm6, %v1215_v24 }
 0x309   :  { %v1216_v21 = vadd.f32 %v1138_v57, %v936_v10  ;;  %v2422_v19 = vpop.f32.mrb[24].mxu0  ;;  %v2702_v45 = vpop.eup %2701 }
 0x30a   :  { %v1153_v14 = vadd.f32 %v2422_v19, %v3370_v28  ;;  %v1147_v53 = vpop.f32.mrb[25].mxu0  ;;  %v2704_v3 = vpop.eup %2703  ;;  %v945_v32 = vmul.f32 %v2702_v45, %v3447_v7 }
 0x30b   :  { %v1148_v34 = vadd.f32 %v3370_v28, %v1147_v53  ;;  %2473 = vmatprep.mubr.msk.f32.mxu1 %vm1239_vm6, %v1216_v21  ;;  %v944_v17 = vmul.f32 %v2704_v3, %v3453_v22 }
 0x30c   :  { %v1219_v11 = vadd.f32 %v1153_v14, %v939_v30  ;;  %2474 = vmatmul.mubr.msk.f32.gmra.mrb[52].mxu1 %vm1239_vm6, %v1217_v37 }
 0x30d   :  { %v1218_v43 = vadd.f32 %v1148_v34, %v938_v61  ;;  %v2425_v27 = vpop.f32.mrb[26].mxu0  ;;  %v2706_v49 = vpop.eup %2705 }
 0x30e   :  { %v1163_v38 = vadd.f32 %v2425_v27, %v3370_v28  ;;  %v1157_v58 = vpop.f32.mrb[27].mxu0  ;;  %v2708_v48 = vpop.eup %2707  ;;  %v947_v24 = vmul.f32 %v2706_v49, %v3463_v31  ;;  %v3538_v31 = vld [vmem:[%s3715_s12] ss:$0 sm:$0xff] }
 0x30f   :  { %v1158_v47 = vadd.f32 %v3370_v28, %v1157_v58  ;;  %2476 = vmatprep.mubr.msk.f32.mxu1 %vm1239_vm6, %v1218_v43  ;;  %v946_v25 = vmul.f32 %v2708_v48, %v3469_v50 }
 0x310   :  { %v1221_v40 = vadd.f32 %v1163_v38, %v941_v18  ;;  %2477 = vmatmul.mubr.msk.f32.gmra.mrb[54].mxu1 %vm1239_vm6, %v1219_v11 }
 0x311   :  { %v1220_v62 = vadd.f32 %v1158_v47, %v940_v52  ;;  %v2428_v54 = vpop.f32.mrb[28].mxu0 }
 0x312   :  { %v1173_v63 = vadd.f32 %v2428_v54, %v3370_v28  ;;  %v1167_v42 = vpop.f32.mrb[29].mxu0 }
 0x313   :  { %v1168_v1 = vadd.f32 %v3370_v28, %v1167_v42  ;;  %2479 = vmatprep.mubr.msk.f32.mxu1 %vm1239_vm6, %v1220_v62 }
 0x314   :  { %v1223_v15 = vadd.f32 %v1173_v63, %v943_v41  ;;  %2480 = vmatmul.mubr.msk.f32.gmra.mrb[56].mxu1 %vm1239_vm6, %v1221_v40 }
 0x315   :  { %v1222_v44 = vadd.f32 %v1168_v1, %v942_v55  ;;  %v2431_v59 = vpop.f32.mrb[30].mxu0 }
 0x316   :  { %v1183_v23 = vadd.f32 %v2431_v59, %v3370_v28  ;;  %v1177_v16 = vpop.f32.mrb[31].mxu0 }
 0x317   :  { %v1178_v56 = vadd.f32 %v3370_v28, %v1177_v16  ;;  %2482 = vmatprep.mubr.msk.f32.mxu1 %vm1239_vm6, %v1222_v44 }
 0x318   :  { %v1225_v0 = vadd.f32 %v1183_v23, %v945_v32  ;;  %2483 = vmatmul.mubr.msk.f32.gmra.mrb[58].mxu1 %vm1239_vm6, %v1223_v15 }
 0x319   :  { %v1224_v20 = vadd.f32 %v1178_v56, %v944_v17  ;;  %v2434_v4 = vpop.f32.mrb[32].mxu0 }
 0x31a   :  { %v1193_v7 = vadd.f32 %v2434_v4, %v3370_v28  ;;  %v1187_v5 = vpop.f32.mrb[33].mxu0 }
 0x31b   :  { %v1188_v26 = vadd.f32 %v3370_v28, %v1187_v5  ;;  %2485 = vmatprep.mubr.msk.f32.mxu1 %vm1239_vm6, %v1224_v20 }
 0x31c   :  { %v1227_v22 = vadd.f32 %v1193_v7, %v947_v24  ;;  %2486 = vmatmul.mubr.msk.f32.gmra.mrb[60].mxu1 %vm1239_vm6, %v1225_v0 }
 0x31d   :  { %v1226_v2 = vadd.f32 %v1188_v26, %v946_v25 }
 0x31f   :  { %2488 = vmatprep.mubr.msk.f32.mxu1 %vm1239_vm6, %v1226_v2 }
 0x320   :  { %2489 = vmatmul.mubr.msk.f32.gmra.mrb[62].mxu1 %vm1239_vm6, %v1227_v22 }
 0x3b7   :  { %v2445_v51 = vpop.f32.mrb[34].mxu0 }
 0x3b8   :  { %v3541_v50 = vadd.f32 %v2445_v51, %v3538_v31  ;;  %v1402_v28 = vpop.f32.mrb[35].mxu0 }
 0x3b9   :  { %v3544_v6 = vadd.f32 %v3538_v31, %v1402_v28 }
 0x3ba   :  { %v1931_v9 = vmul.f32 -1.442695, %v3541_v50 }
 0x3bb   :  { %v1930_v33 = vmul.f32 -1.442695, %v3544_v6  ;;  %v2448_v8 = vpop.f32.mrb[34].mxu1 }
 0x3bc   :  { %2709 = vpow2.f32 %v1931_v9  ;;  %v3549_v36 = vadd.f32 %v2448_v8, %v3538_v31  ;;  %v1412_v10 = vpop.f32.mrb[35].mxu1 }
 0x3bd   :  { %2711 = vpow2.f32 %v1930_v33  ;;  %v3552_v57 = vadd.f32 %v3538_v31, %v1412_v10 }
 0x3be   :  { %v1933_v29 = vmul.f32 -1.442695, %v3549_v36 }
 0x3bf   :  { %v1932_v37 = vmul.f32 -1.442695, %v3552_v57  ;;  %v2451_v60 = vpop.f32.mrb[36].mxu1 }
 0x3c0   :  { %2713 = vpow2.f32 %v1933_v29  ;;  %v3557_v21 = vadd.f32 %v2451_v60, %v3538_v31  ;;  %v1422_v19 = vpop.f32.mrb[37].mxu1 }
 0x3c1   :  { %2715 = vpow2.f32 %v1932_v37  ;;  %v3560_v30 = vadd.f32 %v3538_v31, %v1422_v19 }
 0x3c2   :  { %v1935_v12 = vmul.f32 -1.442695, %v3557_v21 }
 0x3c3   :  { %v1934_v14 = vmul.f32 -1.442695, %v3560_v30  ;;  %v2454_v53 = vpop.f32.mrb[38].mxu1 }
 0x3c4   :  { %2717 = vpow2.f32 %v1935_v12  ;;  %v3565_v46 = vadd.f32 %v2454_v53, %v3538_v31  ;;  %v1432_v61 = vpop.f32.mrb[39].mxu1 }
 0x3c5   :  { %2719 = vpow2.f32 %v1934_v14  ;;  %v3568_v34 = vadd.f32 %v3538_v31, %v1432_v61 }
 0x3c6   :  { %v2710_v35 = vpop.eup %2709  ;;  %v1937_v11 = vmul.f32 -1.442695, %v3565_v46 }
 0x3c7   :  { %v2712_v43 = vpop.eup %2711  ;;  %v1658_v27 = vadd.f32 1.0, %v2710_v35  ;;  %v1936_v18 = vmul.f32 -1.442695, %v3568_v34  ;;  %v2457_v38 = vpop.f32.mrb[40].mxu1 }
 0x3c8   :  { %v1657_v58 = vadd.f32 1.0, %v2712_v43  ;;  %2721 = vpow2.f32 %v1937_v11  ;;  %v3573_v13 = vadd.f32 %v2457_v38, %v3538_v31  ;;  %v1442_v52 = vpop.f32.mrb[41].mxu1 }
 0x3c9   :  { %2723 = vrcp.f32 %v1658_v27  ;;  %v3576_v47 = vadd.f32 %v3538_v31, %v1442_v52 }
 0x3ca   :  { %v2714_v39 = vpop.eup %2713  ;;  %2725 = vrcp.f32 %v1657_v58  ;;  %v1939_v40 = vmul.f32 -1.442695, %v3573_v13 }
 0x3cb   :  { %v2716_v62 = vpop.eup %2715  ;;  %v1660_v54 = vadd.f32 1.0, %v2714_v39  ;;  %2727 = vpow2.f32 %v1936_v18  ;;  %v1938_v41 = vmul.f32 -1.442695, %v3576_v47  ;;  %v2460_v63 = vpop.f32.mrb[42].mxu1 }
 0x3cc   :  { %v1659_v42 = vadd.f32 1.0, %v2716_v62  ;;  %2729 = vpow2.f32 %v1939_v40  ;;  %v3581_v45 = vadd.f32 %v2460_v63, %v3538_v31  ;;  %v1452_v55 = vpop.f32.mrb[43].mxu1 }
 0x3cd   :  { %2731 = vrcp.f32 %v1660_v54  ;;  %v3584_v1 = vadd.f32 %v3538_v31, %v1452_v55 }
 0x3ce   :  { %v2718_v3 = vpop.eup %2717  ;;  %2733 = vrcp.f32 %v1659_v42  ;;  %v1941_v15 = vmul.f32 -1.442695, %v3581_v45 }
 0x3cf   :  { %v2720_v44 = vpop.eup %2719  ;;  %v1662_v59 = vadd.f32 1.0, %v2718_v3  ;;  %2735 = vpow2.f32 %v1938_v41  ;;  %v1940_v32 = vmul.f32 -1.442695, %v3584_v1  ;;  %v2463_v23 = vpop.f32.mrb[44].mxu1 }
 0x3d0   :  { %v1661_v16 = vadd.f32 1.0, %v2720_v44  ;;  %2737 = vpow2.f32 %v1941_v15  ;;  %v3589_v49 = vadd.f32 %v2463_v23, %v3538_v31  ;;  %v1462_v17 = vpop.f32.mrb[45].mxu1 }
 0x3d1   :  { %2739 = vrcp.f32 %v1662_v59  ;;  %v3592_v56 = vadd.f32 %v3538_v31, %v1462_v17 }
 0x3d2   :  { %v2722_v48 = vpop.eup %2721  ;;  %2741 = vrcp.f32 %v1661_v16  ;;  %v1943_v0 = vmul.f32 -1.442695, %v3589_v49 }
 0x3d3   :  { %v2724_v20 = vpop.eup %2723  ;;  %v1664_v4 = vadd.f32 1.0, %v2722_v48  ;;  %2743 = vpow2.f32 %v1940_v32  ;;  %v1942_v24 = vmul.f32 -1.442695, %v3592_v56  ;;  %v2466_v7 = vpop.f32.mrb[46].mxu1 }
 0x3d4   :  { %v2726_v5 = vpop.eup %2725  ;;  %v1754_v25 = vmul.f32 %v2724_v20, %v3541_v50  ;;  %2745 = vpow2.f32 %v1943_v0  ;;  %v3598_v26 = vadd.f32 %v2466_v7, %v3538_v31  ;;  %v1472_v22 = vpop.f32.mrb[47].mxu1 }
 0x3d5   :  { %v2728_v2 = vpop.eup %2727  ;;  %v1753_v51 = vmul.f32 %v2726_v5, %v3544_v6  ;;  %v3602_v28 = vadd.f32 %v3538_v31, %v1472_v22  ;;  %2747 = vpow2.f32 %v1942_v24 }
 0x3d6   :  { %v2730_v9 = vpop.eup %2729  ;;  %v1663_v33 = vadd.f32 1.0, %v2728_v2  ;;  %v1945_v8 = vmul.f32 -1.442695, %v3598_v26  ;;  %2749 = vrcp.f32 %v1664_v4 }
 0x3d7   :  { %v2732_v10 = vpop.eup %2731  ;;  %v1785_v29 = vadd.f32 %v1754_v25, %v1753_v51  ;;  %v1666_v50 = vadd.f32 1.0, %v2730_v9  ;;  %v1944_v37 = vmul.f32 -1.442695, %v3602_v28  ;;  %v2469_v60 = vpop.f32.mrb[48].mxu1 }
 0x3d8   :  { %v2734_v19 = vpop.eup %2733  ;;  %2751 = vrcp.f32 %v1663_v33  ;;  %v3607_v12 = vadd.f32 %v2469_v60, %v3538_v31  ;;  %v1482_v6 = vpop.f32.mrb[49].mxu1  ;;  %v1756_v11 = vmul.f32 %v2732_v10, %v3549_v36 }
 0x3d9   :  { %v2736_v14 = vpop.eup %2735  ;;  %v1755_v53 = vmul.f32 %v2734_v19, %v3552_v57  ;;  %2753 = vrcp.f32 %v1666_v50  ;;  %v3611_v61 = vadd.f32 %v3538_v31, %v1482_v6 }
 0x3da   :  { %v2738_v35 = vpop.eup %2737  ;;  %v1665_v43 = vadd.f32 1.0, %v2736_v14  ;;  %2755 = vpow2.f32 %v1945_v8  ;;  %v1947_v27 = vmul.f32 -1.442695, %v3607_v12 }
 0x3db   :  { %v2740_v18 = vpop.eup %2739  ;;  %v1786_v38 = vadd.f32 %v1785_v29, %v1755_v53  ;;  %v1668_v58 = vadd.f32 1.0, %v2738_v35  ;;  %2757 = vpow2.f32 %v1944_v37  ;;  %v1946_v52 = vmul.f32 -1.442695, %v3611_v61  ;;  %v2472_v39 = vpop.f32.mrb[50].mxu1 }
 0x3dc   :  { %v2742_v40 = vpop.eup %2741  ;;  %2759 = vrcp.f32 %v1665_v43  ;;  %v3617_v57 = vadd.f32 %v2472_v39, %v3538_v31  ;;  %v1492_v62 = vpop.f32.mrb[51].mxu1  ;;  %v1758_v15 = vmul.f32 %v2740_v18, %v3557_v21 }
 0x3dd   :  { %v2744_v54 = vpop.eup %2743  ;;  %v1757_v36 = vmul.f32 %v2742_v40, %v3560_v30  ;;  %v1787_v41 = vadd.f32 %v1786_v38, %v1756_v11  ;;  %2761 = vrcp.f32 %v1668_v58  ;;  %v3621_v63 = vadd.f32 %v3538_v31, %v1492_v62 }
 0x3de   :  { %v2746_v42 = vpop.eup %2745  ;;  %v1667_v55 = vadd.f32 1.0, %v2744_v54  ;;  %2763 = vpow2.f32 %v1947_v27  ;;  %v1949_v3 = vmul.f32 -1.442695, %v3617_v57 }
 0x3df   :  { %v1788_v44 = vadd.f32 %v1787_v41, %v1757_v36  ;;  %v1670_v59 = vadd.f32 1.0, %v2746_v42  ;;  %2765 = vpow2.f32 %v1946_v52  ;;  %v2475_v32 = vpop.f32.mrb[52].mxu1  ;;  %v2748_v23 = vpop.eup %2747  ;;  %v1948_v30 = vmul.f32 -1.442695, %v3621_v63 }
 0x3e0   :  { %2767 = vrcp.f32 %v1667_v55  ;;  %v3627_v16 = vadd.f32 %v2475_v32, %v3538_v31  ;;  %v1502_v17 = vpop.f32.mrb[53].mxu1  ;;  %v2750_v48 = vpop.eup %2749  ;;  %v1669_v20 = vadd.f32 1.0, %v2748_v23 }
 0x3e1   :  { %v1789_v0 = vadd.f32 %v1788_v44, %v1758_v15  ;;  %2769 = vrcp.f32 %v1670_v59  ;;  %v3630_v4 = vadd.f32 %v3538_v31, %v1502_v17  ;;  %v1760_v51 = vmul.f32 %v2750_v48, %v3565_v46 }
 0x3e2   :  { %v2752_v21 = vpop.eup %2751  ;;  %2771 = vpow2.f32 %v1949_v3  ;;  %v1951_v24 = vmul.f32 -1.442695, %v3627_v16 }
 0x3e3   :  { %v2754_v7 = vpop.eup %2753  ;;  %v1759_v5 = vmul.f32 %v2752_v21, %v3568_v34  ;;  %2773 = vrcp.f32 %v1669_v20  ;;  %v1950_v25 = vmul.f32 -1.442695, %v3630_v4  ;;  %v2478_v22 = vpop.f32.mrb[54].mxu1 }
 0x3e4   :  { %v2756_v2 = vpop.eup %2755  ;;  %2775 = vpow2.f32 %v1948_v30  ;;  %v3637_v9 = vadd.f32 %v2478_v22, %v3538_v31  ;;  %v1512_v33 = vpop.f32.mrb[55].mxu1  ;;  %v1762_v11 = vmul.f32 %v2754_v7, %v3573_v13 }
 0x3e5   :  { %v2758_v8 = vpop.eup %2757  ;;  %v1790_v10 = vadd.f32 %v1789_v0, %v1759_v5  ;;  %v1672_v29 = vadd.f32 1.0, %v2756_v2  ;;  %2777 = vpow2.f32 %v1951_v24  ;;  %v3640_v50 = vadd.f32 %v3538_v31, %v1512_v33 }
 0x3e6   :  { %v2760_v34 = vpop.eup %2759  ;;  %v1671_v37 = vadd.f32 1.0, %v2758_v8  ;;  %2779 = vpow2.f32 %v1950_v25  ;;  %v1953_v60 = vmul.f32 -1.442695, %v3637_v9 }
 0x3e7   :  { %v2762_v19 = vpop.eup %2761  ;;  %v1761_v46 = vmul.f32 %v2760_v34, %v3576_v47  ;;  %v1791_v6 = vadd.f32 %v1790_v10, %v1760_v51  ;;  %2781 = vrcp.f32 %v1672_v29  ;;  %v1952_v14 = vmul.f32 -1.442695, %v3640_v50  ;;  %v2481_v53 = vpop.f32.mrb[56].mxu1 }
 0x3e8   :  { %v2764_v35 = vpop.eup %2763  ;;  %2783 = vrcp.f32 %v1671_v37  ;;  %v3647_v43 = vadd.f32 %v2481_v53, %v3538_v31  ;;  %v1522_v27 = vpop.f32.mrb[57].mxu1  ;;  %v1764_v55 = vmul.f32 %v2762_v19, %v3581_v45 }
 0x3e9   :  { %v2766_v18 = vpop.eup %2765  ;;  %v1792_v38 = vadd.f32 %v1791_v6, %v1761_v46  ;;  %v1674_v58 = vadd.f32 1.0, %v2764_v35  ;;  %2785 = vpow2.f32 %v1953_v60  ;;  %v3650_v52 = vadd.f32 %v3538_v31, %v1522_v27 }
 0x3ea   :  { %v2768_v47 = vpop.eup %2767  ;;  %v1673_v39 = vadd.f32 1.0, %v2766_v18  ;;  %2787 = vpow2.f32 %v1952_v14  ;;  %v1955_v40 = vmul.f32 -1.442695, %v3647_v43 }
 0x3eb   :  { %v2770_v62 = vpop.eup %2769  ;;  %v1763_v13 = vmul.f32 %v2768_v47, %v3584_v1  ;;  %v1793_v54 = vadd.f32 %v1792_v38, %v1762_v11  ;;  %2789 = vrcp.f32 %v1674_v58  ;;  %v1954_v36 = vmul.f32 -1.442695, %v3650_v52  ;;  %v2484_v41 = vpop.f32.mrb[58].mxu1 }
 0x3ec   :  { %v2772_v42 = vpop.eup %2771  ;;  %2791 = vrcp.f32 %v1673_v39  ;;  %v3657_v3 = vadd.f32 %v2484_v41, %v3538_v31  ;;  %v1532_v15 = vpop.f32.mrb[59].mxu1  ;;  %v1766_v45 = vmul.f32 %v2770_v62, %v3589_v49 }
 0x3ed   :  { %v2774_v44 = vpop.eup %2773  ;;  %v1794_v59 = vadd.f32 %v1793_v54, %v1763_v13  ;;  %v1676_v32 = vadd.f32 1.0, %v2772_v42  ;;  %2793 = vpow2.f32 %v1955_v40  ;;  %v3660_v23 = vadd.f32 %v3538_v31, %v1532_v15 }
 0x3ee   :  { %v2776_v1 = vpop.eup %2775  ;;  %v1765_v30 = vmul.f32 %v2774_v44, %v3592_v56  ;;  %2795 = vpow2.f32 %v1954_v36  ;;  %v1957_v17 = vmul.f32 -1.442695, %v3657_v3 }
 0x3ef   :  { %v2778_v48 = vpop.eup %2777  ;;  %v1795_v0 = vadd.f32 %v1794_v59, %v1764_v55  ;;  %2797 = vrcp.f32 %v1676_v32  ;;  %v1675_v20 = vadd.f32 1.0, %v2776_v1  ;;  %v2487_v21 = vpop.f32.mrb[60].mxu1  ;;  %v1956_v5 = vmul.f32 -1.442695, %v3660_v23 }
 0x3f0   :  { %v2780_v24 = vpop.eup %2779  ;;  %v1678_v7 = vadd.f32 1.0, %v2778_v48  ;;  %2799 = vpow2.f32 %v1957_v17  ;;  %v3667_v25 = vadd.f32 %v2487_v21, %v3538_v31  ;;  %v1542_v22 = vpop.f32.mrb[61].mxu1 }
 0x3f1   :  { %v2782_v56 = vpop.eup %2781  ;;  %v1796_v2 = vadd.f32 %v1795_v0, %v1765_v30  ;;  %2801 = vrcp.f32 %v1675_v20  ;;  %v1677_v51 = vadd.f32 1.0, %v2780_v24  ;;  %v3670_v33 = vadd.f32 %v3538_v31, %v1542_v22 }
 0x3f2   :  { %v2784_v49 = vpop.eup %2783  ;;  %2803 = vrcp.f32 %v1678_v7  ;;  %v1959_v8 = vmul.f32 -1.442695, %v3667_v25  ;;  %v1768_v29 = vmul.f32 %v2782_v56, %v3598_v26 }
 0x3f3   :  { %v2786_v10 = vpop.eup %2785  ;;  %v1767_v34 = vmul.f32 %v2784_v49, %v3602_v28  ;;  %v1797_v37 = vadd.f32 %v1796_v2, %v1766_v45  ;;  %2805 = vrcp.f32 %v1677_v51  ;;  %v2490_v60 = vpop.f32.mrb[62].mxu1  ;;  %v1958_v6 = vmul.f32 -1.442695, %v3670_v33 }
 0x3f4   :  { %v2788_v19 = vpop.eup %2787  ;;  %v1680_v46 = vadd.f32 1.0, %v2786_v10  ;;  %2807 = vpow2.f32 %v1956_v5  ;;  %v3677_v14 = vadd.f32 %v2490_v60, %v3538_v31  ;;  %v1552_v53 = vpop.f32.mrb[63].mxu1 }
 0x3f5   :  { %v2790_v35 = vpop.eup %2789  ;;  %v1798_v11 = vadd.f32 %v1797_v37, %v1767_v34  ;;  %v1679_v27 = vadd.f32 1.0, %v2788_v19  ;;  %2809 = vpow2.f32 %v1959_v8  ;;  %v3680_v26 = vadd.f32 %v3538_v31, %v1552_v53 }
 0x3f6   :  { %v2792_v28 = vpop.eup %2791  ;;  %2811 = vrcp.f32 %v1680_v46  ;;  %v1961_v18 = vmul.f32 -1.442695, %v3677_v14  ;;  %v1770_v40 = vmul.f32 %v2790_v35, %v3607_v12 }
 0x3f7   :  { %v2794_v38 = vpop.eup %2793  ;;  %v1769_v58 = vmul.f32 %v2792_v28, %v3611_v61  ;;  %v1799_v47 = vadd.f32 %v1798_v11, %v1768_v29  ;;  %2813 = vrcp.f32 %v1679_v27  ;;  %v1960_v62 = vmul.f32 -1.442695, %v3680_v26 }
 0x3f8   :  { %v2796_v39 = vpop.eup %2795  ;;  %2815 = vpow2.f32 %v1958_v6  ;;  %v1682_v36 = vadd.f32 1.0, %v2794_v38 }
 0x3f9   :  { %v2798_v13 = vpop.eup %2797  ;;  %v1800_v54 = vadd.f32 %v1799_v47, %v1769_v58  ;;  %v1681_v31 = vadd.f32 1.0, %v2796_v39  ;;  %2817 = vpow2.f32 %v1961_v18 }
 0x3fa   :  { %v2800_v41 = vpop.eup %2799  ;;  %v1772_v32 = vmul.f32 %v2798_v13, %v3617_v57 }
 0x3fb   :  { %v2802_v42 = vpop.eup %2801  ;;  %v1801_v55 = vadd.f32 %v1800_v54, %v1770_v40  ;;  %2819 = vrcp.f32 %v1681_v31  ;;  %v1684_v44 = vadd.f32 1.0, %v2800_v41 }
 0x3fc   :  { %v2804_v15 = vpop.eup %2803  ;;  %v1771_v61 = vmul.f32 %v2802_v42, %v3621_v63  ;;  %2821 = vpow2.f32 %v1960_v62 }
 0x3fd   :  { %v2806_v59 = vpop.eup %2805  ;;  %2823 = vrcp.f32 %v1682_v36  ;;  %v1774_v63 = vmul.f32 %v2804_v15, %v3627_v16 }
 0x3fe   :  { %v2808_v12 = vpop.eup %2807  ;;  %v1802_v1 = vadd.f32 %v1801_v55, %v1771_v61  ;;  %v1773_v30 = vmul.f32 %v2806_v59, %v3630_v4  ;;  %2825 = vrcp.f32 %v1684_v44 }
 0x3ff   :  { %v2810_v17 = vpop.eup %2809  ;;  %v1683_v48 = vadd.f32 1.0, %v2808_v12 }
 0x400   :  { %v2812_v45 = vpop.eup %2811  ;;  %v1803_v0 = vadd.f32 %v1802_v1, %v1772_v32  ;;  %v1686_v20 = vadd.f32 1.0, %v2810_v17 }
 0x401   :  { %v2814_v21 = vpop.eup %2813  ;;  %2827 = vrcp.f32 %v1683_v48  ;;  %v1776_v49 = vmul.f32 %v2812_v45, %v3637_v9 }
 0x402   :  { %v2816_v24 = vpop.eup %2815  ;;  %v1804_v7 = vadd.f32 %v1803_v0, %v1773_v30  ;;  %v1775_v5 = vmul.f32 %v2814_v21, %v3640_v50  ;;  %2829 = vrcp.f32 %v1686_v20 }
 0x403   :  { %v2818_v22 = vpop.eup %2817  ;;  %v1685_v56 = vadd.f32 1.0, %v2816_v24 }
 0x404   :  { %v1805_v57 = vadd.f32 %v1804_v7, %v1774_v63  ;;  %v1688_v2 = vadd.f32 1.0, %v2818_v22 }
 0x405   :  { %v2820_v4 = vpop.eup %2819  ;;  %2831 = vrcp.f32 %v1685_v56 }
 0x406   :  { %v2822_v51 = vpop.eup %2821  ;;  %v1806_v8 = vadd.f32 %v1805_v57, %v1775_v5  ;;  %v1777_v10 = vmul.f32 %v2820_v4, %v3650_v52  ;;  %2833 = vrcp.f32 %v1688_v2 }
 0x407   :  { %v2824_v29 = vpop.eup %2823  ;;  %v1687_v34 = vadd.f32 1.0, %v2822_v51 }
 0x408   :  { %v1807_v37 = vadd.f32 %v1806_v8, %v1776_v49  ;;  %v2826_v16 = vpop.eup %2825  ;;  %v1778_v50 = vmul.f32 %v2824_v29, %v3647_v43 }
 0x409   :  { %2835 = vrcp.f32 %v1687_v34  ;;  %v1780_v35 = vmul.f32 %v2826_v16, %v3657_v3 }
 0x40a   :  { %v1808_v60 = vadd.f32 %v1807_v37, %v1777_v10 }
 0x40b   :  { %v2828_v19 = vpop.eup %2827 }
 0x40c   :  { %v1779_v46 = vmul.f32 %v2828_v19, %v3660_v23  ;;  %v1809_v6 = vadd.f32 %v1808_v60, %v1778_v50  ;;  %v2830_v53 = vpop.eup %2829 }
 0x40d   :  { %v1782_v18 = vmul.f32 %v2830_v53, %v3667_v25 }
 0x40e   :  { %v1810_v9 = vadd.f32 %v1809_v6, %v1779_v46 }
 0x40f   :  { %v2832_v11 = vpop.eup %2831 }
 0x410   :  { %v1781_v52 = vmul.f32 %v2832_v11, %v3670_v33  ;;  %v1811_v27 = vadd.f32 %v1810_v9, %v1780_v35  ;;  %v2834_v28 = vpop.eup %2833 }
 0x411   :  { %v1784_v39 = vmul.f32 %v2834_v28, %v3677_v14 }
 0x412   :  { %v1812_v38 = vadd.f32 %v1811_v27, %v1781_v52 }
 0x413   :  { %v2836_v58 = vpop.eup %2835 }
 0x414   :  { %v1783_v43 = vmul.f32 %v2836_v58, %v3680_v26  ;;  %v1813_v47 = vadd.f32 %v1812_v38, %v1782_v18 }
 0x416   :  { %v1814_v23 = vadd.f32 %v1813_v47, %v1783_v43 }
 0x418   :  { %v1815_v40 = vadd.f32 %v1814_v23, %v1784_v39 }
 0x41a   :  { %v1816_v62 = vrot.slane %v1815_v40, 4 }
 0x41c   :  { %v1817_v13 = vadd.f32 %v1816_v62, %v1815_v40 }
 0x41e   :  { %v1818_v3 = vrot.slane %v1817_v13, 2 }
 0x420   :  { %v1819_v54 = vadd.f32 %v1818_v3, %v1817_v13 }
 0x422   :  { %v1820_v36 = vrot.slane %v1819_v54, 1 }
 0x424   :  { %v1821_v31 = vadd.f32 %v1820_v36, %v1819_v54 }
 0x426   :  { %1822 = vst [vmem:[%s3716_s13] sm:$0x1] %v1821_v31 }

// kernel: predictor_image_forward.3
= control target key start
LH: loop header
LB: loop body
LE: loop exit
PB: predicated region body
PF: predicated region fallthrough
CT: control target
= control target key end

     0   :  { %vm282_vm0 = vcmask 1042432   ;;  %vm185_vm1 = vcmask 220160   ;;  %vm4876_vm2 = vmmov 1   ;;  %vm741_vm4 = vcmask 261120   ;;  %s7144_s3 = inlined_call_operand.vmem [shape: f32[27,32], index: 3, kind: input, shape index: {}]   ;;  %s7145_s0 = inlined_call_operand.vmem [shape: bf16[256,27], index: 0, kind: input, shape index: {}, may-alias: {0,1,2}]   ;;  %s7146_s1 = inlined_call_operand.vmem [shape: bf16[256,27], index: 1, kind: input, shape index: {}, may-alias: {0,1,2}]   ;;  %s7147_s2 = inlined_call_operand.vmem [shape: bf16[256,27], index: 2, kind: input, shape index: {}, may-alias: {0,1,2}]   ;;  %s7148_s5 = inlined_call_operand.vmem [shape: f32[32,128], index: 5, kind: input, shape index: {}]   ;;  %s7149_s4 = inlined_call_operand.vmem [shape: f32[1,32], index: 4, kind: input, shape index: {}]   ;;  %s7150_s6 = inlined_call_operand.vmem [shape: f32[1,128], index: 6, kind: input, shape index: {}]   ;;  %s7151_s7 = inlined_call_operand.vmem [shape: f32[9,128], index: 7, kind: input, shape index: {}]   ;;  %s7152_s8 = inlined_call_operand.vmem [shape: bf16[256,128], index: 8, kind: output, shape index: {0}]   ;;  %s7153_s9 = inlined_call_operand.vmem [shape: f32[1,128], index: 9, kind: output, shape index: {1}]  }
   0x1   :  { %v105_v0 = vld [vmem:[%s7144_s3] sm:$0xff]  ;;  %v106_v1 = vld [vmem:[%s7144_s3 + $0x8] sm:$0xff]  ;;  %v107_v2 = vld [vmem:[%s7144_s3 + $0x10] sm:$0xff] }
   0x2   :  { %v4936_v3 = vpack.c.bf16 %v106_v1, %v105_v0  ;;  %v108_v4 = vld [vmem:[%s7144_s3 + $0x18] sm:$0x7]  ;;  %v3967_v5 = vld [vmem:[%s7145_s0] sm:$0xff]   ;;  %vm4946_vm3 = vmpackc.low %vm282_vm0, %vm4876_vm2 }
   0x3   :  { %v4944_v6 = vpack.c.bf16 %v108_v4, %v107_v2  ;;  %v3968_v8 = vunpack.c.l.bf16 %v3967_v5  ;;  %v4118_v9 = vld [vmem:[%s7145_s0 + $0x8] sm:$0xff]   ;;  %v3969_v10 = vunpack.c.h.bf16 %v3967_v5  ;;  %v4119_v12 = vld [vmem:[%s7145_s0 + $0x10] sm:$0xff]   ;;  %v4120_v15 = vld [vmem:[%s7145_s0 + $0x18] sm:$0xff]  }
   0x4   :  { %4402 = vmatprep.subr.bf16.mxu0 %v4936_v3  ;;  %v3972_v11 = vunpack.c.l.bf16 %v4118_v9  ;;  %v3973_v13 = vunpack.c.h.bf16 %v4118_v9  ;;  %v3976_v14 = vunpack.c.l.bf16 %v4119_v12  ;;  %v3977_v16 = vunpack.c.h.bf16 %v4119_v12  ;;  %v4121_v18 = vld [vmem:[%s7145_s0 + $0x20] sm:$0xff]   ;;  %v4122_v21 = vld [vmem:[%s7145_s0 + $0x28] sm:$0xff]   ;;  %v4123_v24 = vld [vmem:[%s7145_s0 + $0x30] sm:$0xff]  }
   0x5   :  { %4404 = vmatpush3.bf16.msra.mxu0 %v4936_v3  ;;  %4253 = vmatprep.mubr.msk.f32.mxu0 %vm185_vm1, %v3968_v8  ;;  %v3980_v17 = vunpack.c.l.bf16 %v4120_v15  ;;  %v3981_v19 = vunpack.c.h.bf16 %v4120_v15  ;;  %v3984_v20 = vunpack.c.l.bf16 %v4121_v18  ;;  %v3985_v22 = vunpack.c.h.bf16 %v4121_v18  ;;  %v4124_v27 = vld [vmem:[%s7145_s0 + $0x38] sm:$0xff]   ;;  %v4125_v30 = vld [vmem:[%s7145_s0 + $0x40] sm:$0xff]   ;;  %v4126_v33 = vld [vmem:[%s7145_s0 + $0x48] sm:$0xff]  }
   0x6   :  { %4407 = vmatprep.subr.msk.bf16.mxu0 %vm4946_vm3, %v4944_v6  ;;  %v3988_v23 = vunpack.c.l.bf16 %v4122_v21  ;;  %v3989_v25 = vunpack.c.h.bf16 %v4122_v21  ;;  %v3992_v26 = vunpack.c.l.bf16 %v4123_v24  ;;  %v3993_v28 = vunpack.c.h.bf16 %v4123_v24  ;;  %v4127_v36 = vld [vmem:[%s7145_s0 + $0x50] sm:$0xff]   ;;  %v4128_v39 = vld [vmem:[%s7145_s0 + $0x58] sm:$0xff]   ;;  %v4129_v42 = vld [vmem:[%s7145_s0 + $0x60] sm:$0xff]  }
   0x7   :  { %v3996_v29 = vunpack.c.l.bf16 %v4124_v27  ;;  %v3997_v31 = vunpack.c.h.bf16 %v4124_v27  ;;  %v4000_v32 = vunpack.c.l.bf16 %v4125_v30  ;;  %v4001_v34 = vunpack.c.h.bf16 %v4125_v30  ;;  %v4130_v45 = vld [vmem:[%s7145_s0 + $0x68] sm:$0xff]   ;;  %v4131_v48 = vld [vmem:[%s7145_s0 + $0x70] sm:$0xff]   ;;  %v4132_v51 = vld [vmem:[%s7145_s0 + $0x78] sm:$0xff]  }
   0x8   :  { %v4004_v35 = vunpack.c.l.bf16 %v4126_v33  ;;  %v4005_v37 = vunpack.c.h.bf16 %v4126_v33  ;;  %v4008_v38 = vunpack.c.l.bf16 %v4127_v36  ;;  %v4009_v40 = vunpack.c.h.bf16 %v4127_v36  ;;  %v4031_v54 = vld [vmem:[%s7146_s1] sm:$0xff]   ;;  %v4133_v57 = vld [vmem:[%s7147_s2 + $0x78] sm:$0xff]   ;;  %v111_v62 = vld [vmem:[%s7148_s5 + $0x8] sm:$0xff] }
   0x9   :  { %4410 = vmatpush3.bf16.msk.msra.mxu0 %vm4946_vm3, %v4944_v6  ;;  %v4012_v41 = vunpack.c.l.bf16 %v4128_v39  ;;  %v4013_v43 = vunpack.c.h.bf16 %v4128_v39  ;;  %v4016_v44 = vunpack.c.l.bf16 %v4129_v42  ;;  %v4017_v46 = vunpack.c.h.bf16 %v4129_v42  ;;  %v110_v61 = vld [vmem:[%s7148_s5] sm:$0xff]  ;;  %v112_v0 = vld [vmem:[%s7148_s5 + $0x10] sm:$0xff]  ;;  %v113_v1 = vld [vmem:[%s7148_s5 + $0x18] sm:$0xff] }
   0xa   :  { %4420 = vmatprep.subr.bf16.mxu0 %v4936_v3  ;;  %v4020_v47 = vunpack.c.l.bf16 %v4130_v45  ;;  %v4021_v49 = vunpack.c.h.bf16 %v4130_v45  ;;  %v4024_v50 = vunpack.c.l.bf16 %v4131_v48  ;;  %v4025_v52 = vunpack.c.h.bf16 %v4131_v48 }
   0xb   :  { %v4028_v53 = vunpack.c.l.bf16 %v4132_v51  ;;  %v4029_v55 = vunpack.c.h.bf16 %v4132_v51  ;;  %v4032_v56 = vunpack.c.l.bf16 %v4031_v54  ;;  %v4033_v58 = vunpack.c.h.bf16 %v4031_v54 }
   0xc   :  { %4254 = vmatmul.mubr.msk.f32.vlgmr.msra.gmra.mrb[0].mxu0 %vm185_vm1, %v3969_v10  ;;  %v4036_v59 = vunpack.c.l.bf16 %v4133_v57  ;;  %v4037_v60 = vunpack.c.h.bf16 %v4133_v57  ;;  %v5067_v63 = vpack.c.bf16 %v111_v62, %v110_v61  ;;  %v5077_v2 = vpack.c.bf16 %v113_v1, %v112_v0 }
   0xd   :  { %4422 = vmatpush3.bf16.msra.mxu0 %v4936_v3  ;;  %4256 = vmatprep.mubr.msk.f32.mxu0 %vm185_vm1, %v3972_v11 }
   0xe   :  { %4425 = vmatprep.subr.msk.bf16.mxu0 %vm4946_vm3, %v4944_v6  ;;  %4412 = vmatprep.subr.bf16.mxu1 %v5067_v63 }
   0xf   :  { %4414 = vmatpush3.bf16.msra.mxu1 %v5067_v63 }
  0x10   :  { %4257 = vmatmul.mubr.msk.f32.gmra.mrb[2].mxu0 %vm185_vm1, %v3973_v13  ;;  %4416 = vmatprep.subr.bf16.mxu1 %v5077_v2 }
  0x11   :  { %4259 = vmatprep.mubr.msk.f32.mxu0 %vm185_vm1, %v3976_v14  ;;  %4428 = vmatpush3.bf16.msk.msra.mxu0 %vm4946_vm3, %v4944_v6 }
  0x12   :  { %4438 = vmatprep.subr.bf16.mxu0 %v4936_v3 }
  0x13   :  { %4418 = vmatpush3.bf16.msra.mxu1 %v5077_v2 }
  0x14   :  { %4260 = vmatmul.mubr.msk.f32.gmra.mrb[4].mxu0 %vm185_vm1, %v3977_v16  ;;  %4430 = vmatprep.subr.bf16.mxu1 %v5067_v63 }
  0x15   :  { %4262 = vmatprep.mubr.msk.f32.mxu0 %vm185_vm1, %v3980_v17 }
  0x18   :  { %4263 = vmatmul.mubr.msk.f32.gmra.mrb[6].mxu0 %vm185_vm1, %v3981_v19 }
  0x19   :  { %4265 = vmatprep.mubr.msk.f32.mxu0 %vm185_vm1, %v3984_v20 }
  0x1c   :  { %4266 = vmatmul.mubr.msk.f32.gmra.mrb[8].mxu0 %vm185_vm1, %v3985_v22 }
  0x1d   :  { %4268 = vmatprep.mubr.msk.f32.mxu0 %vm185_vm1, %v3988_v23 }
  0x20   :  { %4269 = vmatmul.mubr.msk.f32.gmra.mrb[10].mxu0 %vm185_vm1, %v3989_v25 }
  0x21   :  { %4271 = vmatprep.mubr.msk.f32.mxu0 %vm185_vm1, %v3992_v26 }
  0x24   :  { %4272 = vmatmul.mubr.msk.f32.gmra.mrb[12].mxu0 %vm185_vm1, %v3993_v28 }
  0x25   :  { %4274 = vmatprep.mubr.msk.f32.mxu0 %vm185_vm1, %v3996_v29 }
  0x28   :  { %4275 = vmatmul.mubr.msk.f32.gmra.mrb[14].mxu0 %vm185_vm1, %v3997_v31 }
  0x29   :  { %4277 = vmatprep.mubr.msk.f32.mxu0 %vm185_vm1, %v4000_v32 }
  0x2c   :  { %4278 = vmatmul.mubr.msk.f32.gmra.mrb[16].mxu0 %vm185_vm1, %v4001_v34 }
  0x2d   :  { %4280 = vmatprep.mubr.msk.f32.mxu0 %vm185_vm1, %v4004_v35 }
  0x30   :  { %4281 = vmatmul.mubr.msk.f32.gmra.mrb[18].mxu0 %vm185_vm1, %v4005_v37 }
  0x31   :  { %4283 = vmatprep.mubr.msk.f32.mxu0 %vm185_vm1, %v4008_v38 }
  0x34   :  { %4284 = vmatmul.mubr.msk.f32.gmra.mrb[20].mxu0 %vm185_vm1, %v4009_v40 }
  0x35   :  { %4286 = vmatprep.mubr.msk.f32.mxu0 %vm185_vm1, %v4012_v41 }
  0x38   :  { %4287 = vmatmul.mubr.msk.f32.gmra.mrb[22].mxu0 %vm185_vm1, %v4013_v43 }
  0x39   :  { %4289 = vmatprep.mubr.msk.f32.mxu0 %vm185_vm1, %v4016_v44 }
  0x3c   :  { %4290 = vmatmul.mubr.msk.f32.gmra.mrb[24].mxu0 %vm185_vm1, %v4017_v46 }
  0x3d   :  { %4292 = vmatprep.mubr.msk.f32.mxu0 %vm185_vm1, %v4020_v47 }
  0x40   :  { %4293 = vmatmul.mubr.msk.f32.gmra.mrb[26].mxu0 %vm185_vm1, %v4021_v49 }
  0x41   :  { %4295 = vmatprep.mubr.msk.f32.mxu0 %vm185_vm1, %v4024_v50 }
  0x44   :  { %4296 = vmatmul.mubr.msk.f32.gmra.mrb[28].mxu0 %vm185_vm1, %v4025_v52 }
  0x45   :  { %4298 = vmatprep.mubr.msk.f32.mxu0 %vm185_vm1, %v4028_v53 }
  0x48   :  { %4299 = vmatmul.mubr.msk.f32.gmra.mrb[30].mxu0 %vm185_vm1, %v4029_v55 }
  0x49   :  { %4365 = vmatprep.mubr.msk.f32.mxu0 %vm185_vm1, %v4032_v56 }
  0x4c   :  { %4366 = vmatmul.mubr.msk.f32.vlgmr.msra.gmra.mrb[32].mxu0 %vm185_vm1, %v4033_v58 }
  0x4d   :  { %4440 = vmatpush3.bf16.msra.mxu0 %v4936_v3  ;;  %4387 = vmatprep.mubr.msk.f32.mxu0 %vm185_vm1, %v4036_v59  ;;  %v5085_v3 = vld [vmem:[%s7149_s4] ss:$0 sm:$0xff] }
  0x4e   :  { %4443 = vmatprep.subr.msk.bf16.mxu0 %vm4946_vm3, %v4944_v6 }
  0x51   :  { %4446 = vmatpush3.bf16.msk.msra.mxu0 %vm4946_vm3, %v4944_v6 }
  0x54   :  { %4388 = vmatmul.mubr.msk.f32.vlgmr.msra.gmra.mrb[34].mxu0 %vm185_vm1, %v4037_v60 }
  0xdf   :  { %v4255_v4 = vpop.f32.mrb[0].mxu0 }
  0xe0   :  { %v5088_v5 = vadd.f32 %v4255_v4, %v5085_v3  ;;  %v352_v6 = vpop.f32.mrb[1].mxu0 }
  0xe1   :  { %v5091_v7 = vadd.f32 %v5085_v3, %v352_v6 }
  0xe2   :  { %v3753_v8 = vmul.f32 -1.442695, %v5088_v5 }
  0xe3   :  { %v3752_v9 = vmul.f32 -1.442695, %v5091_v7  ;;  %v4258_v10 = vpop.f32.mrb[2].mxu0 }
  0xe4   :  { %4456 = vpow2.f32 %v3753_v8  ;;  %v5096_v11 = vadd.f32 %v4258_v10, %v5085_v3  ;;  %v362_v12 = vpop.f32.mrb[3].mxu0 }
  0xe5   :  { %4458 = vpow2.f32 %v3752_v9  ;;  %v5099_v13 = vadd.f32 %v5085_v3, %v362_v12 }
  0xe6   :  { %v3755_v14 = vmul.f32 -1.442695, %v5096_v11 }
  0xe7   :  { %v3754_v15 = vmul.f32 -1.442695, %v5099_v13  ;;  %v4261_v16 = vpop.f32.mrb[4].mxu0 }
  0xe8   :  { %4460 = vpow2.f32 %v3755_v14  ;;  %v5104_v17 = vadd.f32 %v4261_v16, %v5085_v3  ;;  %v372_v18 = vpop.f32.mrb[5].mxu0 }
  0xe9   :  { %4462 = vpow2.f32 %v3754_v15  ;;  %v5107_v19 = vadd.f32 %v5085_v3, %v372_v18 }
  0xea   :  { %v3757_v20 = vmul.f32 -1.442695, %v5104_v17 }
  0xeb   :  { %v3756_v21 = vmul.f32 -1.442695, %v5107_v19  ;;  %v4264_v22 = vpop.f32.mrb[6].mxu0 }
  0xec   :  { %4464 = vpow2.f32 %v3757_v20  ;;  %v5112_v23 = vadd.f32 %v4264_v22, %v5085_v3  ;;  %v382_v24 = vpop.f32.mrb[7].mxu0 }
  0xed   :  { %4466 = vpow2.f32 %v3756_v21  ;;  %v5115_v25 = vadd.f32 %v5085_v3, %v382_v24 }
  0xee   :  { %v4457_v26 = vpop.eup %4456  ;;  %v3759_v27 = vmul.f32 -1.442695, %v5112_v23 }
  0xef   :  { %v4459_v28 = vpop.eup %4458  ;;  %v608_v29 = vadd.f32 1.0, %v4457_v26  ;;  %v3758_v30 = vmul.f32 -1.442695, %v5115_v25  ;;  %v4267_v31 = vpop.f32.mrb[8].mxu0 }
  0xf0   :  { %v607_v32 = vadd.f32 1.0, %v4459_v28  ;;  %4468 = vpow2.f32 %v3759_v27  ;;  %v5120_v33 = vadd.f32 %v4267_v31, %v5085_v3  ;;  %v392_v34 = vpop.f32.mrb[9].mxu0 }
  0xf1   :  { %4470 = vrcp.f32 %v608_v29  ;;  %v5123_v35 = vadd.f32 %v5085_v3, %v392_v34 }
  0xf2   :  { %v4461_v36 = vpop.eup %4460  ;;  %4472 = vrcp.f32 %v607_v32  ;;  %v3761_v37 = vmul.f32 -1.442695, %v5120_v33 }
  0xf3   :  { %v4463_v38 = vpop.eup %4462  ;;  %v610_v39 = vadd.f32 1.0, %v4461_v36  ;;  %4474 = vpow2.f32 %v3758_v30  ;;  %v3760_v40 = vmul.f32 -1.442695, %v5123_v35  ;;  %v4270_v41 = vpop.f32.mrb[10].mxu0 }
  0xf4   :  { %v609_v42 = vadd.f32 1.0, %v4463_v38  ;;  %4476 = vpow2.f32 %v3761_v37  ;;  %v5128_v43 = vadd.f32 %v4270_v41, %v5085_v3  ;;  %v402_v44 = vpop.f32.mrb[11].mxu0 }
  0xf5   :  { %4478 = vrcp.f32 %v610_v39  ;;  %v5131_v45 = vadd.f32 %v5085_v3, %v402_v44 }
  0xf6   :  { %v4465_v46 = vpop.eup %4464  ;;  %4480 = vrcp.f32 %v609_v42  ;;  %v3763_v47 = vmul.f32 -1.442695, %v5128_v43 }
  0xf7   :  { %v4467_v48 = vpop.eup %4466  ;;  %v612_v49 = vadd.f32 1.0, %v4465_v46  ;;  %4482 = vpow2.f32 %v3760_v40  ;;  %v3762_v50 = vmul.f32 -1.442695, %v5131_v45  ;;  %v4273_v51 = vpop.f32.mrb[12].mxu0 }
  0xf8   :  { %v611_v52 = vadd.f32 1.0, %v4467_v48  ;;  %4484 = vpow2.f32 %v3763_v47  ;;  %v5136_v53 = vadd.f32 %v4273_v51, %v5085_v3  ;;  %v412_v54 = vpop.f32.mrb[13].mxu0 }
  0xf9   :  { %4486 = vrcp.f32 %v612_v49  ;;  %v5139_v55 = vadd.f32 %v5085_v3, %v412_v54 }
  0xfa   :  { %v4469_v56 = vpop.eup %4468  ;;  %4488 = vrcp.f32 %v611_v52  ;;  %v3765_v57 = vmul.f32 -1.442695, %v5136_v53 }
  0xfb   :  { %v4471_v58 = vpop.eup %4470  ;;  %v614_v59 = vadd.f32 1.0, %v4469_v56  ;;  %4490 = vpow2.f32 %v3762_v50  ;;  %v3764_v60 = vmul.f32 -1.442695, %v5139_v55  ;;  %v4276_v61 = vpop.f32.mrb[14].mxu0 }
  0xfc   :  { %v4473_v62 = vpop.eup %4472  ;;  %4492 = vpow2.f32 %v3765_v57  ;;  %v5144_v0 = vadd.f32 %v4276_v61, %v5085_v3  ;;  %v422_v1 = vpop.f32.mrb[15].mxu0  ;;  %v704_v10 = vmul.f32 %v4471_v58, %v5088_v5 }
  0xfd   :  { %v4475_v4 = vpop.eup %4474  ;;  %v5147_v6 = vadd.f32 %v5085_v3, %v422_v1  ;;  %v703_v8 = vmul.f32 %v4473_v62, %v5091_v7  ;;  %4494 = vpow2.f32 %v3764_v60 }
  0xfe   :  { %v4477_v9 = vpop.eup %4476  ;;  %v613_v12 = vadd.f32 1.0, %v4475_v4  ;;  %v3767_v14 = vmul.f32 -1.442695, %v5144_v0  ;;  %4496 = vrcp.f32 %v614_v59 }
  0xff   :  { %v4479_v15 = vpop.eup %4478  ;;  %v616_v16 = vadd.f32 1.0, %v4477_v9  ;;  %v3766_v18 = vmul.f32 -1.442695, %v5147_v6  ;;  %v4279_v20 = vpop.f32.mrb[16].mxu0  ;;  %4309 = vmatprep.mubr.msk.f32.mxu1 %vm741_vm4, %v703_v8 }
 0x100   :  { %v4481_v21 = vpop.eup %4480  ;;  %4498 = vrcp.f32 %v613_v12  ;;  %v5155_v22 = vadd.f32 %v4279_v20, %v5085_v3  ;;  %v432_v7 = vpop.f32.mrb[17].mxu0  ;;  %4310 = vmatmul.mubr.msk.f32.vlgmr.msra.gmra.mrb[0].mxu1 %vm741_vm4, %v704_v10  ;;  %v706_v28 = vmul.f32 %v4479_v15, %v5096_v11 }
 0x101   :  { %v4483_v5 = vpop.eup %4482  ;;  %v705_v24 = vmul.f32 %v4481_v21, %v5099_v13  ;;  %4500 = vrcp.f32 %v616_v16  ;;  %v5160_v26 = vadd.f32 %v5085_v3, %v432_v7  ;;  %4432 = vmatpush3.bf16.msra.mxu1 %v5067_v63 }
 0x102   :  { %v4485_v27 = vpop.eup %4484  ;;  %v615_v29 = vadd.f32 1.0, %v4483_v5  ;;  %4502 = vpow2.f32 %v3767_v14  ;;  %v3769_v30 = vmul.f32 -1.442695, %v5155_v22  ;;  %4434 = vmatprep.subr.bf16.mxu1 %v5077_v2 }
 0x103   :  { %v4487_v31 = vpop.eup %4486  ;;  %v618_v32 = vadd.f32 1.0, %v4485_v27  ;;  %4504 = vpow2.f32 %v3766_v18  ;;  %v3768_v13 = vmul.f32 -1.442695, %v5160_v26  ;;  %v4282_v34 = vpop.f32.mrb[18].mxu0  ;;  %4312 = vmatprep.mubr.msk.f32.mxu1 %vm741_vm4, %v705_v24 }
 0x104   :  { %v4489_v36 = vpop.eup %4488  ;;  %4506 = vrcp.f32 %v615_v29  ;;  %v5169_v37 = vadd.f32 %v4282_v34, %v5085_v3  ;;  %v442_v11 = vpop.f32.mrb[19].mxu0  ;;  %4313 = vmatmul.mubr.msk.f32.gmra.mrb[2].mxu1 %vm741_vm4, %v706_v28  ;;  %v708_v42 = vmul.f32 %v4487_v31, %v5104_v17 }
 0x105   :  { %v4491_v38 = vpop.eup %4490  ;;  %v707_v39 = vmul.f32 %v4489_v36, %v5107_v19  ;;  %4508 = vrcp.f32 %v618_v32  ;;  %v5174_v40 = vadd.f32 %v5085_v3, %v442_v11  ;;  %4436 = vmatpush3.bf16.msra.mxu1 %v5077_v2 }
 0x106   :  { %v4493_v41 = vpop.eup %4492  ;;  %v617_v44 = vadd.f32 1.0, %v4491_v38  ;;  %4510 = vpow2.f32 %v3769_v30  ;;  %v3771_v46 = vmul.f32 -1.442695, %v5169_v37  ;;  %4448 = vmatprep.subr.bf16.mxu1 %v5067_v63 }
 0x107   :  { %v620_v47 = vadd.f32 1.0, %v4493_v41  ;;  %4512 = vpow2.f32 %v3768_v13  ;;  %v4285_v48 = vpop.f32.mrb[20].mxu0  ;;  %4315 = vmatprep.mubr.msk.f32.mxu1 %vm741_vm4, %v707_v39  ;;  %v4495_v19 = vpop.eup %4494  ;;  %v3770_v49 = vmul.f32 -1.442695, %v5174_v40 }
 0x108   :  { %4514 = vrcp.f32 %v617_v44  ;;  %v5183_v50 = vadd.f32 %v4285_v48, %v5085_v3  ;;  %v452_v51 = vpop.f32.mrb[21].mxu0  ;;  %4316 = vmatmul.mubr.msk.f32.gmra.mrb[4].mxu1 %vm741_vm4, %v708_v42  ;;  %v4497_v17 = vpop.eup %4496  ;;  %v619_v52 = vadd.f32 1.0, %v4495_v19 }
 0x109   :  { %4516 = vrcp.f32 %v620_v47  ;;  %v5187_v54 = vadd.f32 %v5085_v3, %v452_v51  ;;  %v710_v1 = vmul.f32 %v4497_v17, %v5112_v23 }
 0x10a   :  { %v4499_v56 = vpop.eup %4498  ;;  %4518 = vpow2.f32 %v3771_v46  ;;  %v3773_v57 = vmul.f32 -1.442695, %v5183_v50 }
 0x10b   :  { %v4501_v58 = vpop.eup %4500  ;;  %v709_v59 = vmul.f32 %v4499_v56, %v5115_v25  ;;  %4520 = vrcp.f32 %v619_v52  ;;  %v3772_v60 = vmul.f32 -1.442695, %v5187_v54  ;;  %v4288_v61 = vpop.f32.mrb[22].mxu0 }
 0x10c   :  { %v4503_v62 = vpop.eup %4502  ;;  %4522 = vpow2.f32 %v3770_v49  ;;  %v5194_v4 = vadd.f32 %v4288_v61, %v5085_v3  ;;  %v462_v8 = vpop.f32.mrb[23].mxu0  ;;  %v712_v7 = vmul.f32 %v4501_v58, %v5120_v33 }
 0x10d   :  { %v4505_v9 = vpop.eup %4504  ;;  %v622_v10 = vadd.f32 1.0, %v4503_v62  ;;  %4524 = vpow2.f32 %v3773_v57  ;;  %4318 = vmatprep.mubr.msk.f32.mxu1 %vm741_vm4, %v709_v59  ;;  %v5198_v12 = vadd.f32 %v5085_v3, %v462_v8 }
 0x10e   :  { %v4507_v25 = vpop.eup %4506  ;;  %v621_v14 = vadd.f32 1.0, %v4505_v9  ;;  %4526 = vpow2.f32 %v3772_v60  ;;  %v3775_v15 = vmul.f32 -1.442695, %v5194_v4  ;;  %4319 = vmatmul.mubr.msk.f32.gmra.mrb[6].mxu1 %vm741_vm4, %v710_v1 }
 0x10f   :  { %v4509_v23 = vpop.eup %4508  ;;  %v711_v16 = vmul.f32 %v4507_v25, %v5123_v35  ;;  %4528 = vrcp.f32 %v622_v10  ;;  %v3774_v18 = vmul.f32 -1.442695, %v5198_v12  ;;  %v4291_v20 = vpop.f32.mrb[24].mxu0 }
 0x110   :  { %v4511_v21 = vpop.eup %4510  ;;  %4530 = vrcp.f32 %v621_v14  ;;  %v5206_v5 = vadd.f32 %v4291_v20, %v5085_v3  ;;  %v472_v24 = vpop.f32.mrb[25].mxu0  ;;  %v714_v11 = vmul.f32 %v4509_v23, %v5128_v43 }
 0x111   :  { %v4513_v27 = vpop.eup %4512  ;;  %v624_v28 = vadd.f32 1.0, %v4511_v21  ;;  %4532 = vpow2.f32 %v3775_v15  ;;  %4321 = vmatprep.mubr.msk.f32.mxu1 %vm741_vm4, %v711_v16  ;;  %v5210_v29 = vadd.f32 %v5085_v3, %v472_v24 }
 0x112   :  { %v4515_v35 = vpop.eup %4514  ;;  %v623_v30 = vadd.f32 1.0, %v4513_v27  ;;  %4534 = vpow2.f32 %v3774_v18  ;;  %v3777_v31 = vmul.f32 -1.442695, %v5206_v5  ;;  %4322 = vmatmul.mubr.msk.f32.gmra.mrb[8].mxu1 %vm741_vm4, %v712_v7 }
 0x113   :  { %v4517_v33 = vpop.eup %4516  ;;  %v713_v32 = vmul.f32 %v4515_v35, %v5131_v45  ;;  %4536 = vrcp.f32 %v624_v28  ;;  %v3776_v13 = vmul.f32 -1.442695, %v5210_v29  ;;  %v4294_v34 = vpop.f32.mrb[26].mxu0 }
 0x114   :  { %v4519_v36 = vpop.eup %4518  ;;  %4538 = vrcp.f32 %v623_v30  ;;  %v5218_v38 = vadd.f32 %v4294_v34, %v5085_v3  ;;  %v482_v39 = vpop.f32.mrb[27].mxu0  ;;  %v716_v48 = vmul.f32 %v4517_v33, %v5136_v53 }
 0x115   :  { %v4521_v41 = vpop.eup %4520  ;;  %v626_v42 = vadd.f32 1.0, %v4519_v36  ;;  %4540 = vpow2.f32 %v3777_v31  ;;  %4324 = vmatprep.mubr.msk.f32.mxu1 %vm741_vm4, %v713_v32  ;;  %v5222_v44 = vadd.f32 %v5085_v3, %v482_v39 }
 0x116   :  { %v4523_v45 = vpop.eup %4522  ;;  %v715_v46 = vmul.f32 %v4521_v41, %v5139_v55  ;;  %4542 = vpow2.f32 %v3776_v13  ;;  %v3779_v47 = vmul.f32 -1.442695, %v5218_v38  ;;  %4325 = vmatmul.mubr.msk.f32.gmra.mrb[10].mxu1 %vm741_vm4, %v714_v11 }
 0x117   :  { %v4525_v43 = vpop.eup %4524  ;;  %4544 = vrcp.f32 %v626_v42  ;;  %v625_v19 = vadd.f32 1.0, %v4523_v45  ;;  %v4297_v49 = vpop.f32.mrb[28].mxu0  ;;  %v3778_v52 = vmul.f32 -1.442695, %v5222_v44 }
 0x118   :  { %v4527_v51 = vpop.eup %4526  ;;  %v628_v17 = vadd.f32 1.0, %v4525_v43  ;;  %4546 = vpow2.f32 %v3779_v47  ;;  %v5230_v56 = vadd.f32 %v4297_v49, %v5085_v3  ;;  %4327 = vmatprep.mubr.msk.f32.mxu1 %vm741_vm4, %v715_v46  ;;  %v492_v55 = vpop.f32.mrb[29].mxu0 }
 0x119   :  { %v4529_v57 = vpop.eup %4528  ;;  %4548 = vrcp.f32 %v625_v19  ;;  %v627_v58 = vadd.f32 1.0, %v4527_v51  ;;  %v5234_v59 = vadd.f32 %v5085_v3, %v492_v55 }
 0x11a   :  { %v4531_v53 = vpop.eup %4530  ;;  %4550 = vrcp.f32 %v628_v17  ;;  %v3781_v60 = vmul.f32 -1.442695, %v5230_v56  ;;  %4328 = vmatmul.mubr.msk.f32.gmra.mrb[12].mxu1 %vm741_vm4, %v716_v48  ;;  %v718_v62 = vmul.f32 %v4529_v57, %v5144_v0 }
 0x11b   :  { %v4533_v61 = vpop.eup %4532  ;;  %v717_v1 = vmul.f32 %v4531_v53, %v5147_v6  ;;  %4552 = vrcp.f32 %v627_v58  ;;  %v4300_v8 = vpop.f32.mrb[30].mxu0  ;;  %v3780_v25 = vmul.f32 -1.442695, %v5234_v59 }
 0x11c   :  { %v4535_v9 = vpop.eup %4534  ;;  %v630_v10 = vadd.f32 1.0, %v4533_v61  ;;  %4554 = vpow2.f32 %v3778_v52  ;;  %v5242_v14 = vadd.f32 %v4300_v8, %v5085_v3  ;;  %v502_v15 = vpop.f32.mrb[31].mxu0 }
 0x11d   :  { %v4537_v23 = vpop.eup %4536  ;;  %v629_v16 = vadd.f32 1.0, %v4535_v9  ;;  %4556 = vpow2.f32 %v3781_v60  ;;  %4330 = vmatprep.mubr.msk.f32.mxu1 %vm741_vm4, %v717_v1  ;;  %v5246_v0 = vadd.f32 %v5085_v3, %v502_v15 }
 0x11e   :  { %v4539_v6 = vpop.eup %4538  ;;  %4558 = vrcp.f32 %v630_v10  ;;  %v3783_v18 = vmul.f32 -1.442695, %v5242_v14  ;;  %4331 = vmatmul.mubr.msk.f32.gmra.mrb[14].mxu1 %vm741_vm4, %v718_v62  ;;  %v720_v21 = vmul.f32 %v4537_v23, %v5155_v22 }
 0x11f   :  { %v4541_v20 = vpop.eup %4540  ;;  %v719_v7 = vmul.f32 %v4539_v6, %v5160_v26  ;;  %4560 = vrcp.f32 %v629_v16  ;;  %v4367_v24 = vpop.f32.mrb[32].mxu0  ;;  %v3782_v35 = vmul.f32 -1.442695, %v5246_v0 }
 0x120   :  { %v4543_v27 = vpop.eup %4542  ;;  %v632_v28 = vadd.f32 1.0, %v4541_v20  ;;  %4562 = vpow2.f32 %v3780_v25  ;;  %v5254_v30 = vadd.f32 %v4367_v24, %v5085_v3  ;;  %v1401_v31 = vpop.f32.mrb[33].mxu0 }
 0x121   :  { %v4545_v33 = vpop.eup %4544  ;;  %v631_v32 = vadd.f32 1.0, %v4543_v27  ;;  %4564 = vpow2.f32 %v3783_v18  ;;  %4333 = vmatprep.mubr.msk.f32.mxu1 %vm741_vm4, %v719_v7  ;;  %v5258_v22 = vadd.f32 %v5085_v3, %v1401_v31 }
 0x122   :  { %v4547_v26 = vpop.eup %4546  ;;  %4566 = vrcp.f32 %v632_v28  ;;  %v3853_v13 = vmul.f32 -1.442695, %v5254_v30  ;;  %4334 = vmatmul.mubr.msk.f32.gmra.mrb[16].mxu1 %vm741_vm4, %v720_v21  ;;  %v722_v45 = vmul.f32 %v4545_v33, %v5169_v37 }
 0x123   :  { %v4549_v34 = vpop.eup %4548  ;;  %4568 = vrcp.f32 %v631_v32  ;;  %v3852_v36 = vmul.f32 -1.442695, %v5258_v22  ;;  %v634_v41 = vadd.f32 1.0, %v4547_v26 }
 0x124   :  { %v4551_v11 = vpop.eup %4550  ;;  %v721_v39 = vmul.f32 %v4549_v34, %v5174_v40  ;;  %4570 = vpow2.f32 %v3782_v35 }
 0x125   :  { %v4553_v42 = vpop.eup %4552  ;;  %4572 = vpow2.f32 %v3853_v13 }
 0x126   :  { %v4555_v46 = vpop.eup %4554  ;;  %v723_v47 = vmul.f32 %v4553_v42, %v5187_v54  ;;  %4336 = vmatprep.mubr.msk.f32.mxu1 %vm741_vm4, %v721_v39  ;;  %4574 = vpow2.f32 %v3852_v36  ;;  %v724_v54 = vmul.f32 %v4551_v11, %v5183_v50 }
 0x127   :  { %v4557_v43 = vpop.eup %4556  ;;  %v633_v48 = vadd.f32 1.0, %v4555_v46  ;;  %4337 = vmatmul.mubr.msk.f32.gmra.mrb[18].mxu1 %vm741_vm4, %v722_v45  ;;  %v4389_v19 = vpop.f32.mrb[34].mxu0  ;;  %4576 = vrcp.f32 %v634_v41 }
 0x128   :  { %v4559_v49 = vpop.eup %4558  ;;  %v636_v40 = vadd.f32 1.0, %v4557_v43  ;;  %v5269_v51 = vadd.f32 %v4389_v19, %v5085_v3  ;;  %4339 = vmatprep.mubr.msk.f32.mxu1 %vm741_vm4, %v723_v47  ;;  %v1600_v37 = vpop.f32.mrb[35].mxu0  ;;  %v1759_v43 = vlaneseq }
 0x129   :  { %v4561_v17 = vpop.eup %4560  ;;  %4578 = vrcp.f32 %v633_v48  ;;  %v5274_v52 = vadd.f32 %v5085_v3, %v1600_v37  ;;  %v726_v3 = vmul.f32 %v4559_v49, %v5194_v4 }
 0x12a   :  { %v4563_v55 = vpop.eup %4562  ;;  %v725_v57 = vmul.f32 %v4561_v17, %v5198_v12  ;;  %v3864_v58 = vmul.f32 -1.442695, %v5269_v51  ;;  %4580 = vrcp.f32 %v636_v40  ;;  %v5338_v17 = vshrl.u32 %v1759_v43, 7 }
 0x12b   :  { %v4565_v53 = vpop.eup %4564  ;;  %v635_v60 = vadd.f32 1.0, %v4563_v55  ;;  %v3863_v61 = vmul.f32 -1.442695, %v5274_v52  ;;  %4340 = vmatmul.mubr.msk.f32.gmra.mrb[20].mxu1 %vm741_vm4, %v724_v54 }
 0x12c   :  { %v4567_v62 = vpop.eup %4566  ;;  %v638_v1 = vadd.f32 1.0, %v4565_v53  ;;  %4582 = vpow2.f32 %v3864_v58  ;;  %4342 = vmatprep.mubr.msk.f32.mxu1 %vm741_vm4, %v725_v57  ;;  %vm2300_vm5 = vcmp.lt.s32.totalorder %v5338_v17, 1  ;;  %vm2517_vm6 = vcmp.lt.s32.totalorder %v5338_v17, 7 }
 0x12d   :  { %v4569_v50 = vpop.eup %4568  ;;  %4584 = vrcp.f32 %v635_v60  ;;  %v728_v15 = vmul.f32 %v4567_v62, %v5206_v5  ;;  %v2734_v60 = vsub.s32 1, %v5338_v17 }
 0x12e   :  { %v4571_v8 = vpop.eup %4570  ;;  %v727_v12 = vmul.f32 %v4569_v50, %v5210_v29  ;;  %4586 = vpow2.f32 %v3863_v61  ;;  %v2662_v61 = vld [vmem:[%s7151_s7] sm:$0xff] }
 0x12f   :  { %v637_v9 = vadd.f32 1.0, %v4571_v8  ;;  %4343 = vmatmul.mubr.msk.f32.gmra.mrb[22].mxu1 %vm741_vm4, %v726_v3  ;;  %v4573_v10 = vpop.eup %4572  ;;  %4588 = vrcp.f32 %v638_v1  ;;  %v2938_v1 = vsub.s32 4, %v5338_v17 }
 0x130   :  { %4345 = vmatprep.mubr.msk.f32.mxu1 %vm741_vm4, %v727_v12  ;;  %v4575_v25 = vpop.eup %4574  ;;  %v1417_v23 = vadd.f32 1.0, %v4573_v10 }
 0x131   :  { %4590 = vrcp.f32 %v637_v9  ;;  %v4577_v16 = vpop.eup %4576  ;;  %v1416_v6 = vadd.f32 1.0, %v4575_v25  ;;  %v5346_v9 = vrot.slane %v2662_v61, %v2734_v60 }
 0x132   :  { %4592 = vrcp.f32 %v1417_v23  ;;  %v730_v20 = vmul.f32 %v4577_v16, %v5218_v38  ;;  %v1763_v23 = vadd.s32 24, %v5338_v17  ;;  %v1764_v16 = vadd.s32 32, %v5338_v17 }
 0x133   :  { %v4579_v4 = vpop.eup %4578  ;;  %4346 = vmatmul.mubr.msk.f32.gmra.mrb[24].mxu1 %vm741_vm4, %v728_v15  ;;  %4594 = vrcp.f32 %v1416_v6 }
 0x134   :  { %v729_v29 = vmul.f32 %v4579_v4, %v5222_v44  ;;  %v4581_v18 = vpop.eup %4580  ;;  %v5356_v4 = vrot.slane %v2662_v61, %v2938_v1 }
 0x135   :  { %v732_v28 = vmul.f32 %v4581_v18, %v5230_v56  ;;  %v2802_v18 = vsub.s32 2, %v5338_v17 }
 0x136   :  { %v4583_v21 = vpop.eup %4582  ;;  %4348 = vmatprep.mubr.msk.f32.mxu1 %vm741_vm4, %v729_v29  ;;  %v2666_v29 = vsub.s32 0, %v5338_v17 }
 0x137   :  { %v4585_v7 = vpop.eup %4584  ;;  %v1616_v24 = vadd.f32 1.0, %v4583_v21  ;;  %4349 = vmatmul.mubr.msk.f32.gmra.mrb[26].mxu1 %vm741_vm4, %v730_v20 }
 0x138   :  { %v731_v5 = vmul.f32 %v4585_v7, %v5234_v59  ;;  %v4587_v27 = vpop.eup %4586  ;;  %v2870_v7 = vsub.s32 3, %v5338_v17 }
 0x139   :  { %v4589_v35 = vpop.eup %4588  ;;  %v1615_v31 = vadd.f32 1.0, %v4587_v27  ;;  %4596 = vrcp.f32 %v1616_v24  ;;  %v3006_v24 = vsub.s32 5, %v5338_v17  ;;  %v3142_v27 = vsub.s32 7, %v5338_v17 }
 0x13a   :  { %4351 = vmatprep.mubr.msk.f32.mxu1 %vm741_vm4, %v731_v5  ;;  %v734_v32 = vmul.f32 %v4589_v35, %v5242_v14 }
 0x13b   :  { %v4591_v44 = vpop.eup %4590  ;;  %4352 = vmatmul.mubr.msk.f32.gmra.mrb[28].mxu1 %vm741_vm4, %v732_v28  ;;  %4598 = vrcp.f32 %v1615_v31  ;;  %v3074_v28 = vsub.s32 6, %v5338_v17 }
 0x13c   :  { %v733_v38 = vmul.f32 %v4591_v44, %v5246_v0  ;;  %v4593_v33 = vpop.eup %4592 }
 0x13d   :  { %v4595_v26 = vpop.eup %4594  ;;  %v1423_v56 = vmul.f32 %v4593_v33, %v5254_v30  ;;  %v5313_v30 = vld [vmem:[%s7150_s6] ss:$0 sm:$0xff]  ;;  %v1828_v33 = vand.u32 15, %v1764_v16 }
 0x13e   :  { %4354 = vmatprep.mubr.msk.f32.mxu1 %vm741_vm4, %v733_v38  ;;  %v1422_v59 = vmul.f32 %v4595_v26, %v5258_v22  ;;  %v1821_v38 = vand.u32 15, %v1763_v23 }
 0x13f   :  { %4355 = vmatmul.mubr.msk.f32.gmra.mrb[30].mxu1 %vm741_vm4, %v734_v32  ;;  %vm5397_vm7 = vcmp.ne.s32.totalorder %v1828_v33, 0 }
 0x140   :  { %4376 = vmatprep.mubr.msk.f32.mxu1 %vm741_vm4, %v1422_v59  ;;  %v5371_v59 = vrot.slane %v2662_v61, %v2666_v29  ;;  %vm5401_vm8 = vcmp.ne.s32.totalorder %v1821_v38, 15 }
 0x143   :  { %4377 = vmatmul.mubr.msk.f32.vlgmr.msra.gmra.mrb[32].mxu1 %vm741_vm4, %v1423_v56  ;;  %v4597_v0 = vpop.eup %4596  ;;  %v5373_v56 = vrot.slane %v2662_v61, %v2802_v18 }
 0x144   :  { %4450 = vmatpush3.bf16.msra.mxu1 %v5067_v63  ;;  %v1622_v22 = vmul.f32 %v4597_v0, %v5269_v51  ;;  %v5376_v0 = vadd.s32 40, %v5338_v17 }
 0x145   :  { %4452 = vmatprep.subr.bf16.mxu1 %v5077_v2  ;;  %v4599_v13 = vpop.eup %4598 }
 0x146   :  { %v1621_v14 = vmul.f32 %v4599_v13, %v5274_v52  ;;  %v5379_v13 = vadd.s32 48, %v5338_v17 }
 0x148   :  { %4454 = vmatpush3.bf16.msra.mxu1 %v5077_v2  ;;  %4398 = vmatprep.mubr.msk.f32.mxu1 %vm741_vm4, %v1621_v14 }
 0x14b   :  { %4399 = vmatmul.mubr.msk.f32.vlgmr.msra.gmra.mrb[34].mxu1 %vm741_vm4, %v1622_v22  ;;  %v5381_v22 = vrot.slane %v2662_v61, %v2870_v7 }
 0x1d3   :  { %v4311_v63 = vpop.f32.mrb[0].mxu1 }
 0x1d4   :  { %v5316_v34 = vadd.f32 %v4311_v63, %v5313_v30  ;;  %v904_v36 = vpop.f32.mrb[1].mxu1  ;;  %v5383_v63 = vrot.slane %v2662_v61, %v3006_v24 }
 0x1d5   :  { %v5319_v11 = vadd.f32 %v5313_v30, %v904_v36 }
 0x1d6   :  { %v3818_v2 = vmul.f32 -1.442695, %v5316_v34 }
 0x1d7   :  { %v3817_v39 = vmul.f32 -1.442695, %v5319_v11  ;;  %v4314_v41 = vpop.f32.mrb[2].mxu1 }
 0x1d8   :  { %4600 = vpow2.f32 %v3818_v2  ;;  %v5324_v42 = vadd.f32 %v4314_v41, %v5313_v30  ;;  %v914_v45 = vpop.f32.mrb[3].mxu1  ;;  %v5390_v41 = vrot.slane %v2662_v61, %v3142_v27 }
 0x1d9   :  { %4602 = vpow2.f32 %v3817_v39  ;;  %v5327_v46 = vadd.f32 %v5313_v30, %v914_v45  ;;  %v5392_v45 = vrot.slane %v2662_v61, %v3074_v28  ;;  %v5422_v61 = vadd.s32 56, %v5338_v17 }
 0x1da   :  { %v3820_v47 = vmul.f32 -1.442695, %v5324_v42 }
 0x1db   :  { %v3819_v48 = vmul.f32 -1.442695, %v5327_v46  ;;  %v4317_v19 = vpop.f32.mrb[4].mxu1 }
 0x1dc   :  { %4604 = vpow2.f32 %v3820_v47  ;;  %v5332_v49 = vadd.f32 %v4317_v19, %v5313_v30  ;;  %v924_v40 = vpop.f32.mrb[5].mxu1 }
 0x1dd   :  { %4606 = vpow2.f32 %v3819_v48  ;;  %v5335_v51 = vadd.f32 %v5313_v30, %v924_v40 }
 0x1de   :  { %v3822_v37 = vmul.f32 -1.442695, %v5332_v49 }
 0x1df   :  { %v3821_v54 = vmul.f32 -1.442695, %v5335_v51 }
 0x1e0   :  { %4608 = vpow2.f32 %v3822_v37 }
 0x1e1   :  { %v4320_v52 = vpop.f32.mrb[6].mxu1  ;;  %4610 = vpow2.f32 %v3821_v54 }
 0x1e2   :  { %v4601_v55 = vpop.eup %4600  ;;  %v934_v57 = vpop.f32.mrb[7].mxu1  ;;  %v5349_v25 = vadd.f32 %v4320_v52, %v5313_v30 }
 0x1e3   :  { %v4603_v58 = vpop.eup %4602  ;;  %v1160_v53 = vadd.f32 1.0, %v4601_v55  ;;  %v5354_v6 = vadd.f32 %v5313_v30, %v934_v57  ;;  %v1842_v55 = vand.u32 15, %v5379_v13 }
 0x1e4   :  { %v1159_v62 = vadd.f32 1.0, %v4603_v58  ;;  %v3824_v31 = vmul.f32 -1.442695, %v5349_v25 }
 0x1e5   :  { %4612 = vrcp.f32 %v1160_v53  ;;  %v4323_v50 = vpop.f32.mrb[8].mxu1  ;;  %v3823_v32 = vmul.f32 -1.442695, %v5354_v6  ;;  %vm5494_vm9 = vcmp.ne.s32.totalorder %v1842_v55, 0 }
 0x1e6   :  { %v4605_v3 = vpop.eup %4604  ;;  %4614 = vrcp.f32 %v1159_v62  ;;  %v944_v8 = vpop.f32.mrb[9].mxu1  ;;  %v5369_v26 = vadd.f32 %v4323_v50, %v5313_v30 }
 0x1e7   :  { %v4607_v12 = vpop.eup %4606  ;;  %v1162_v10 = vadd.f32 1.0, %v4605_v3  ;;  %v5386_v36 = vadd.f32 %v5313_v30, %v944_v8  ;;  %v5430_v8 = vadd.s32 64, %v5338_v17 }
 0x1e8   :  { %v1161_v15 = vadd.f32 1.0, %v4607_v12  ;;  %v3826_v37 = vmul.f32 -1.442695, %v5369_v26 }
 0x1e9   :  { %4616 = vrcp.f32 %v1162_v10  ;;  %v4326_v20 = vpop.f32.mrb[10].mxu1  ;;  %v3825_v62 = vmul.f32 -1.442695, %v5386_v36 }
 0x1ea   :  { %v4609_v21 = vpop.eup %4608  ;;  %4618 = vrcp.f32 %v1161_v15  ;;  %v954_v5 = vpop.f32.mrb[11].mxu1  ;;  %v5407_v54 = vadd.f32 %v4326_v20, %v5313_v30  ;;  %v5436_v15 = vadd.s32 72, %v5338_v17 }
 0x1eb   :  { %v1164_v35 = vadd.f32 1.0, %v4609_v21  ;;  %v4611_v44 = vpop.eup %4610  ;;  %v5415_v57 = vadd.f32 %v5313_v30, %v954_v5 }
 0x1ec   :  { %v1163_v47 = vadd.f32 1.0, %v4611_v44  ;;  %v3828_v23 = vmul.f32 -1.442695, %v5407_v54 }
 0x1ed   :  { %v4329_v14 = vpop.f32.mrb[12].mxu1  ;;  %4620 = vrcp.f32 %v1164_v35  ;;  %v3827_v18 = vmul.f32 -1.442695, %v5415_v57  ;;  %v5468_v35 = vadd.s32 80, %v5338_v17 }
 0x1ee   :  { %v5388_v2 = vpop.f32.mrb[13].mxu1  ;;  %4622 = vpow2.f32 %v3824_v31 }
 0x1ef   :  { %v4613_v39 = vpop.eup %4612  ;;  %4624 = vpow2.f32 %v3823_v32 }
 0x1f0   :  { %v4615_v43 = vpop.eup %4614  ;;  %v5395_v48 = vmul.f32 %v4613_v39, %v5316_v34  ;;  %v1835_v34 = vand.u32 15, %v5376_v0  ;;  %4626 = vrcp.f32 %v1163_v47  ;;  %v5476_v39 = vadd.f32 %v4329_v14, %v5313_v30 }
 0x1f1   :  { %v5410_v52 = vmul.f32 %v4615_v43, %v5319_v11  ;;  %v5417_v58 = vpop.f32.mrb[14].mxu1  ;;  %4628 = vpow2.f32 %v3826_v37 }
 0x1f2   :  { %7215 = vst [vmem:[#allocation3_spill] sm:$0xff] %v5395_v48  ;;  %v2267_v53 = vrot.slane %v5395_v48, 7  ;;  %v2484_v60 = vrot.slane %v5395_v48, 1  ;;  %v5425_v11 = vpop.f32.mrb[15].mxu1  ;;  %v2739_v21 = vmul.f32 %v5346_v9, %v5395_v48  ;;  %4630 = vpow2.f32 %v3825_v62 }
 0x1f3   :  { %7220 = vst [vmem:[#allocation4_spill] sm:$0xff] %v5410_v52  ;;  %v4617_v1 = vpop.eup %4616  ;;  %v7155_v50 = vrot.slane %v5410_v52, 7  ;;  %v7154_v3 = vrot.slane %v5410_v52, 1  ;;  %4632 = vpow2.f32 %v3828_v23  ;;  %vm5498_vm10 = vcmp.ne.s32.totalorder %v1835_v34, 15 }
 0x1f4   :  { %v4619_v12 = vpop.eup %4618  ;;  %v5433_v10 = vmul.f32 %v4617_v1, %v5324_v42  ;;  %4634 = vpow2.f32 %v3827_v18 }
 0x1f5   :  { %v5443_v16 = vsel %vm2300_vm5, %v7155_v50, %v2267_v53  ;;  %v5449_v29 = vsel %vm2517_vm6, %v7154_v3, %v2484_v60  ;;  %v5452_v42 = vmul.f32 %v4619_v12, %v5327_v46  ;;  %v5455_v20 = vpop.f32.mrb[16].mxu1 }
 0x1f6   :  { %7221 = vst [vmem:[#allocation5_spill] sm:$0xff] %v5433_v10  ;;  %7222 = vst [vmem:[#allocation6_spill] sm:$0xff] %v5443_v16  ;;  %v2671_v7 = vmul.f32 %v5371_v59, %v5443_v16  ;;  %v5462_v5 = vpop.f32.mrb[17].mxu1  ;;  %v7157_v27 = vrot.slane %v5433_v10, 7  ;;  %v7156_v46 = vrot.slane %v5433_v10, 1  ;;  %v2741_v0 = vmul.f32 %v5346_v9, %v5433_v10 }
 0x1f7   :  { %7223 = vst [vmem:[#allocation7_spill] sm:$0xff] %v5449_v29  ;;  %7224 = vst [vmem:[#allocation8_spill] sm:$0xff] %v5452_v42  ;;  %v4621_v31 = vpop.eup %4620  ;;  %v2268_v38 = vrot.slane %v5452_v42, 7  ;;  %v2485_v33 = vrot.slane %v5452_v42, 1  ;;  %v2740_v19 = vmul.f32 %v5346_v9, %v5452_v42 }
 0x1f8   :  { %v2771_v44 = vadd.f32 %v2739_v21, %v2671_v7  ;;  %v4623_v32 = vpop.eup %4622 }
 0x1f9   :  { %v4625_v47 = vpop.eup %4624  ;;  %v5482_v43 = vsel %vm2300_vm5, %v2268_v38, %v7157_v27  ;;  %v2332_v37 = vsel %vm2300_vm5, %v2267_v53, %v2268_v38  ;;  %v5490_v62 = vsel %vm2517_vm6, %v2485_v33, %v7156_v46  ;;  %v2549_v14 = vsel %vm2517_vm6, %v2484_v60, %v2485_v33 }
 0x1fa   :  { %7225 = vst [vmem:[#allocation9_spill] sm:$0xff] %v5482_v43  ;;  %7226 = vst [vmem:[#allocation10_spill] sm:$0xff] %v5490_v62  ;;  %v5502_v23 = vpop.f32.mrb[18].mxu1  ;;  %v5506_v53 = vsel %vm5397_vm7, %v2332_v37, 0.0  ;;  %v5510_v18 = vsel %vm5401_vm8, %v2549_v14, 0.0  ;;  %v2673_v55 = vmul.f32 %v5371_v59, %v5482_v43  ;;  %v5515_v60 = vmul.f32 %v4621_v31, %v5332_v49  ;;  %v4627_v38 = vpop.eup %4626 }
 0x1fb   :  { %7231 = vst [vmem:[#allocation11_spill] sm:$0xff] %v5506_v53  ;;  %7232 = vst [vmem:[#allocation12_spill] sm:$0xff] %v5510_v18  ;;  %v5517_v34 = vpop.f32.mrb[19].mxu1  ;;  %v2672_v21 = vmul.f32 %v5371_v59, %v5506_v53  ;;  %v2807_v7 = vmul.f32 %v5373_v56, %v5510_v18  ;;  %v1166_v40 = vadd.f32 1.0, %v4623_v32  ;;  %v1165_v37 = vadd.f32 1.0, %v4625_v47  ;;  %v4629_v31 = vpop.eup %4628 }
 0x1fc   :  { %v2773_v33 = vadd.f32 %v2741_v0, %v2673_v55  ;;  %v5528_v49 = vadd.f32 %v5313_v30, %v5388_v2  ;;  %v2808_v50 = vmul.f32 %v5373_v56, %v5490_v62  ;;  %v2875_v24 = vmul.f32 %v5381_v22, %v5482_v43 }
 0x1fd   :  { %v2772_v3 = vadd.f32 %v2740_v19, %v2672_v21  ;;  %v2839_v13 = vadd.f32 %v2807_v7, %v2771_v44  ;;  %v2943_v32 = vmul.f32 %v5356_v4, %v5433_v10  ;;  %v3830_v2 = vmul.f32 -1.442695, %v5476_v39  ;;  %v4631_v21 = vpop.eup %4630 }
 0x1fe   :  { %v5534_v28 = vpop.f32.mrb[20].mxu1  ;;  %v5544_v44 = vmul.f32 %v4627_v38, %v5335_v51  ;;  %4636 = vrcp.f32 %v1166_v40  ;;  %v1168_v7 = vadd.f32 1.0, %v4629_v31  ;;  %v5547_v46 = vadd.s32 88, %v5338_v17  ;;  %v4633_v47 = vpop.eup %4632 }
 0x1ff   :  { %7233 = vst [vmem:[#allocation13_spill] sm:$0xff] %v5534_v28  ;;  %v5541_v55 = vpop.f32.mrb[21].mxu1  ;;  %v2840_v19 = vadd.f32 %v2808_v50, %v2772_v3  ;;  %v2907_v14 = vadd.f32 %v2875_v24, %v2839_v13  ;;  %4638 = vrcp.f32 %v1165_v37  ;;  %v5550_v27 = vadd.s32 96, %v5338_v17  ;;  %v4635_v51 = vpop.eup %4634 }
 0x200   :  { %7234 = vst [vmem:[#allocation14_spill] sm:$0xff] %v5541_v55  ;;  %7235 = vst [vmem:[#allocation15_spill] sm:$0xff] %v5544_v44  ;;  %v2270_v43 = vrot.slane %v5544_v44, 7  ;;  %v2487_v62 = vrot.slane %v5544_v44, 1  ;;  %v3829_v50 = vmul.f32 -1.442695, %v5528_v49  ;;  %v2743_v24 = vmul.f32 %v5346_v9, %v5515_v60 }
 0x201   :  { %v2975_v0 = vadd.f32 %v2943_v32, %v2907_v14  ;;  %v2945_v13 = vmul.f32 %v5356_v4, %v5515_v60  ;;  %v1167_v40 = vadd.f32 1.0, %v4631_v21  ;;  %4640 = vpow2.f32 %v3830_v2 }
 0x202   :  { %v5555_v3 = vpop.f32.mrb[22].mxu1  ;;  %v7238_v37 = vrot.slane %v5515_v60, 7  ;;  %v7239_v31 = vrot.slane %v5433_v10, 7  ;;  %v7240_v18 = vrot.slane %v5515_v60, 1  ;;  %v7242_v2 = vrot.slane %v5433_v10, 1 }
 0x203   :  { %7236 = vst [vmem:[#allocation16_spill] sm:$0xff] %v5555_v3  ;;  %v5561_v38 = vpop.f32.mrb[23].mxu1  ;;  %4642 = vrcp.f32 %v1168_v7  ;;  %v7248_v7 = vand.u32 15, %v5422_v61 }
 0x204   :  { %7237 = vst [vmem:[#allocation17_spill] sm:$0xff] %v5561_v38  ;;  %v2329_v14 = vsel %vm2300_vm5, %v2270_v43, %v7238_v37  ;;  %v2330_v32 = vsel %vm2300_vm5, %v7239_v31, %v2270_v43  ;;  %v5575_v42 = vsel %vm2517_vm6, %v2487_v62, %v7240_v18  ;;  %v2547_v21 = vsel %vm2517_vm6, %v7242_v2, %v2487_v62 }
 0x205   :  { %7241 = vst [vmem:[#allocation18_spill] sm:$0xff] %v5575_v42  ;;  %v5583_v16 = vsel %vm5494_vm9, %v2330_v32, 0.0  ;;  %v5587_v37 = vsel %vm5498_vm10, %v2547_v21, 0.0  ;;  %v2675_v43 = vmul.f32 %v5371_v59, %v2329_v14  ;;  %v2742_v31 = vmul.f32 %v5346_v9, %v5544_v44 }
 0x206   :  { %7243 = vst [vmem:[#allocation19_spill] sm:$0xff] %v5583_v16  ;;  %7244 = vst [vmem:[#allocation20_spill] sm:$0xff] %v5587_v37  ;;  %v2674_v18 = vmul.f32 %v5371_v59, %v5583_v16  ;;  %v2809_v62 = vmul.f32 %v5373_v56, %v5587_v37  ;;  %v2876_v1 = vmul.f32 %v5381_v22, %v5583_v16  ;;  %v7245_v32 = vand.u32 15, %v5430_v8  ;;  %v5610_v21 = vpop.f32.mrb[24].mxu1 }
 0x207   :  { %vm5606_vm12 = vcmp.ne.s32.totalorder %v7248_v7, 15  ;;  %7251 = vst [vmem:[#allocation21_spill] sm:$0xff] %v5610_v21  ;;  %v2775_v10 = vadd.f32 %v2743_v24, %v2675_v43  ;;  %v2810_v53 = vmul.f32 %v5373_v56, %v5575_v42  ;;  %v2944_v16 = vmul.f32 %v5356_v4, %v5544_v44  ;;  %v5622_v28 = vpop.f32.mrb[25].mxu1 }
 0x208   :  { %vm5600_vm11 = vcmp.ne.s32.totalorder %v7245_v32, 0  ;;  %v3011_v8 = vmul.f32 %v5383_v63, %v5587_v37  ;;  %v2774_v32 = vadd.f32 %v2742_v31, %v2674_v18  ;;  %v2841_v29 = vadd.f32 %v2809_v62, %v2773_v33  ;;  %v4637_v24 = vpop.eup %4636 }
 0x209   :  { %v2877_v61 = vmul.f32 %v5381_v22, %v2329_v14  ;;  %v2908_v7 = vadd.f32 %v2876_v1, %v2840_v19  ;;  %v3079_v52 = vmul.f32 %v5392_v45, %v2329_v14  ;;  %v1170_v38 = vadd.f32 1.0, %v4633_v47  ;;  %v4639_v37 = vpop.eup %4638 }
 0x20a   :  { %v3043_v48 = vadd.f32 %v3011_v8, %v2975_v0  ;;  %v1169_v21 = vadd.f32 1.0, %v4635_v51  ;;  %v2842_v43 = vadd.f32 %v2810_v53, %v2774_v32  ;;  %v3012_v44 = vmul.f32 %v5383_v63, %v5575_v42 }
 0x20b   :  { %v2909_v3 = vadd.f32 %v2877_v61, %v2841_v29  ;;  %v2976_v55 = vadd.f32 %v2944_v16, %v2908_v7  ;;  %v3147_v33 = vmul.f32 %v5390_v41, %v5515_v60  ;;  %v5627_v0 = vmul.f32 %v4637_v24, %v5349_v25  ;;  %v4641_v16 = vpop.eup %4640 }
 0x20c   :  { %v3111_v18 = vadd.f32 %v3079_v52, %v3043_v48  ;;  %4644 = vpow2.f32 %v3829_v50  ;;  %v1261_v53 = vmul.f32 %v4639_v37, %v5354_v6  ;;  %v7253_v37 = vrot.slane %v5515_v60, 1 }
 0x20d   :  { %v2977_v47 = vadd.f32 %v2945_v13, %v2909_v3  ;;  %v3044_v19 = vadd.f32 %v3012_v44, %v2976_v55  ;;  %4646 = vrcp.f32 %v1167_v40  ;;  %v7176_v51 = vrot.slane %v5627_v0, 7  ;;  %v4643_v25 = vpop.eup %4642 }
 0x20e   :  { %v3179_v29 = vadd.f32 %v3147_v33, %v3111_v18  ;;  %v7175_v14 = vrot.slane %v5627_v0, 1  ;;  %4648 = vrcp.f32 %v1170_v38  ;;  %v2745_v31 = vmul.f32 %v5346_v9, %v5627_v0 }
 0x20f   :  { %v2272_v48 = vrot.slane %v1261_v53, 7  ;;  %v2489_v52 = vrot.slane %v1261_v53, 1  ;;  %4650 = vrcp.f32 %v1169_v21  ;;  %v2947_v55 = vmul.f32 %v5356_v4, %v5627_v0 }
 0x210   :  { %v3149_v6 = vmul.f32 %v5390_v41, %v5627_v0  ;;  %v2744_v44 = vmul.f32 %v5346_v9, %v1261_v53  ;;  %v2946_v50 = vmul.f32 %v5356_v4, %v1261_v53  ;;  %v7252_v13 = vrot.slane %v5515_v60, 7 }
 0x211   :  { %v2327_v3 = vsel %vm2300_vm5, %v2272_v48, %v7176_v51  ;;  %v2544_v38 = vsel %vm2517_vm6, %v2489_v52, %v7175_v14  ;;  %v2545_v62 = vsel %vm2517_vm6, %v7253_v37, %v2489_v52  ;;  %v3148_v32 = vmul.f32 %v5390_v41, %v1261_v53  ;;  %v5676_v53 = vld [vmem:[%s7151_s7 + $0x8] ss:$0 sm:$0xff] }
 0x212   :  { %v2328_v40 = vsel %vm2300_vm5, %v7252_v13, %v2272_v48  ;;  %v2633_v21 = vsel %vm5606_vm12, %v2545_v62, 0.0  ;;  %v2677_v8 = vmul.f32 %v5371_v59, %v2327_v3  ;;  %v5666_v60 = vmul.f32 %v4643_v25, %v5369_v26 }
 0x213   :  { %v2417_v1 = vsel %vm5600_vm11, %v2328_v40, 0.0  ;;  %v2811_v7 = vmul.f32 %v5373_v56, %v2633_v21  ;;  %v2812_v12 = vmul.f32 %v5373_v56, %v2544_v38  ;;  %v3013_v2 = vmul.f32 %v5383_v63, %v2633_v21 }
 0x214   :  { %v2676_v61 = vmul.f32 %v5371_v59, %v2417_v1  ;;  %v2878_v24 = vmul.f32 %v5381_v22, %v2417_v1  ;;  %v5668_v33 = vadd.f32 %v2745_v31, %v2677_v8  ;;  %v3080_v18 = vmul.f32 %v5392_v45, %v2417_v1 }
 0x215   :  { %v2843_v52 = vadd.f32 %v2811_v7, %v2775_v10  ;;  %v2879_v13 = vmul.f32 %v5381_v22, %v2327_v3  ;;  %v7254_v26 = vand.u32 15, %v5468_v35  ;;  %v7257_v25 = vand.u32 15, %v5436_v15 }
 0x216   :  { %v2776_v48 = vadd.f32 %v2744_v44, %v2676_v61  ;;  %v2910_v40 = vadd.f32 %v2878_v24, %v2842_v43  ;;  %v4645_v62 = vpop.eup %4644  ;;  %v3045_v1 = vadd.f32 %v3013_v2, %v2977_v47  ;;  %v3081_v44 = vmul.f32 %v5392_v45, %v2327_v3 }
 0x217   :  { %vm5681_vm13 = vcmp.ne.s32.totalorder %v7254_v26, 0  ;;  %vm5687_vm14 = vcmp.ne.s32.totalorder %v7257_v25, 15  ;;  %v3112_v10 = vadd.f32 %v3080_v18, %v3044_v19  ;;  %v3215_v8 = vmul.f32 %v5676_v53, %v2633_v21  ;;  %v4647_v43 = vpop.eup %4646 }
 0x218   :  { %v2844_v61 = vadd.f32 %v2812_v12, %v2776_v48  ;;  %v2911_v35 = vadd.f32 %v2879_v13, %v2843_v52  ;;  %v2978_v7 = vadd.f32 %v2946_v50, %v2910_v40  ;;  %v3014_v24 = vmul.f32 %v5383_v63, %v2544_v38  ;;  %v4649_v26 = vpop.eup %4648 }
 0x219   :  { %v3113_v14 = vadd.f32 %v3081_v44, %v3045_v1  ;;  %v3180_v15 = vadd.f32 %v3148_v32, %v3112_v10  ;;  %v3216_v25 = vmul.f32 %v5676_v53, %v2544_v38  ;;  %v5695_v51 = vadd.f32 %v3215_v8, %v3179_v29  ;;  %v4651_v42 = vpop.eup %4650  ;;  %v5741_v44 = vpop.f32.mrb[26].mxu1 }
 0x21a   :  { %v2979_v47 = vadd.f32 %v2947_v55, %v2911_v35  ;;  %v3046_v2 = vadd.f32 %v3014_v24, %v2978_v7  ;;  %v1877_v19 = vand.u32 15, %v5547_v46  ;;  %v1172_v3 = vadd.f32 1.0, %v4641_v16 }
 0x21b   :  { %7260 = vst [vmem:[#allocation22_spill] sm:$0xff] %v5695_v51  ;;  %v3181_v21 = vadd.f32 %v3149_v6, %v3113_v14  ;;  %v5698_v18 = vadd.f32 %v3216_v25, %v3180_v15  ;;  %v1884_v50 = vand.u32 15, %v5550_v27  ;;  %v5701_v12 = vadd.f32 1.0, %v4645_v62 }
 0x21c   :  { %v7179_v48 = vrot.slane %v5666_v60, 7  ;;  %v7178_v32 = vrot.slane %v5666_v60, 1  ;;  %v2747_v29 = vmul.f32 %v5346_v9, %v5666_v60  ;;  %v1263_v55 = vmul.f32 %v4647_v43, %v5386_v36 }
 0x21d   :  { %v3874_v38 = vmul.f32 -1.442695, %v5698_v18  ;;  %v2949_v46 = vmul.f32 %v5356_v4, %v5666_v60  ;;  %v3151_v16 = vmul.f32 %v5390_v41, %v5666_v60  ;;  %v5714_v27 = vmul.f32 %v4649_v26, %v5407_v54 }
 0x21e   :  { %v2274_v14 = vrot.slane %v1263_v55, 7  ;;  %v2491_v6 = vrot.slane %v1263_v55, 1  ;;  %v5717_v52 = vmul.f32 %v4651_v42, %v5415_v57  ;;  %4652 = vrcp.f32 %v1172_v3 }
 0x21f   :  { %4654 = vpow2.f32 %v3874_v38  ;;  %v2746_v36 = vmul.f32 %v5346_v9, %v1263_v55  ;;  %v2948_v13 = vmul.f32 %v5356_v4, %v1263_v55  ;;  %v5723_v40 = vadd.f32 %v5417_v58, %v5313_v30 }
 0x220   :  { %v2325_v54 = vsel %vm2300_vm5, %v2274_v14, %v7179_v48  ;;  %v7261_v62 = vrot.slane %v5627_v0, 7  ;;  %v2542_v42 = vsel %vm2517_vm6, %v2491_v6, %v7178_v32  ;;  %v7262_v1 = vrot.slane %v5627_v0, 1  ;;  %v5769_v48 = vpop.f32.mrb[27].mxu1 }
 0x221   :  { %v2679_v43 = vmul.f32 %v5371_v59, %v2325_v54  ;;  %v3150_v35 = vmul.f32 %v5390_v41, %v1263_v55  ;;  %vm5749_vm15 = vcmp.ne.s32.totalorder %v1884_v50, 0  ;;  %v2277_v31 = vrot.slane %v5714_v27, 7 }
 0x222   :  { %v2326_v57 = vsel %vm2300_vm5, %v7261_v62, %v2274_v14  ;;  %v2543_v58 = vsel %vm2517_vm6, %v7262_v1, %v2491_v6  ;;  %vm5757_vm0 = vcmp.ne.s32.totalorder %v1877_v19, 15  ;;  %v2814_v25 = vmul.f32 %v5373_v56, %v2542_v42 }
 0x223   :  { %v2419_v10 = vsel %vm5681_vm13, %v2326_v57, 0.0  ;;  %v2635_v8 = vsel %vm5687_vm14, %v2543_v58, 0.0  ;;  %v2779_v37 = vadd.f32 %v2747_v29, %v2679_v43  ;;  %v2881_v14 = vmul.f32 %v5381_v22, %v2325_v54 }
 0x224   :  { %v2678_v0 = vmul.f32 %v5371_v59, %v2419_v10  ;;  %v2813_v24 = vmul.f32 %v5373_v56, %v2635_v8  ;;  %v2880_v26 = vmul.f32 %v5381_v22, %v2419_v10  ;;  %v3015_v3 = vmul.f32 %v5383_v63, %v2635_v8 }
 0x225   :  { %v3082_v50 = vmul.f32 %v5392_v45, %v2419_v10  ;;  %v3083_v57 = vmul.f32 %v5392_v45, %v2325_v54  ;;  %v3217_v1 = vmul.f32 %v5676_v53, %v2635_v8  ;;  %v3016_v32 = vmul.f32 %v5383_v63, %v2542_v42 }
 0x226   :  { %v2778_v55 = vadd.f32 %v2746_v36, %v2678_v0  ;;  %v2845_v38 = vadd.f32 %v2813_v24, %v5668_v33  ;;  %v2912_v6 = vadd.f32 %v2880_v26, %v2844_v61  ;;  %v3047_v62 = vadd.f32 %v3015_v3, %v2979_v47 }
 0x227   :  { %v3114_v19 = vadd.f32 %v3082_v50, %v3046_v2  ;;  %v3218_v33 = vmul.f32 %v5676_v53, %v2542_v42  ;;  %v5772_v0 = vadd.f32 %v3217_v1, %v3181_v21  ;;  %v2494_v2 = vrot.slane %v5714_v27, 1 }
 0x228   :  { %v2846_v58 = vadd.f32 %v2814_v25, %v2778_v55  ;;  %v2913_v29 = vadd.f32 %v2881_v14, %v2845_v38  ;;  %v2980_v43 = vadd.f32 %v2948_v13, %v2912_v6  ;;  %v3115_v10 = vadd.f32 %v3083_v57, %v3047_v62  ;;  %v5774_v61 = vpop.eup %4652 }
 0x229   :  { %v3182_v36 = vadd.f32 %v3150_v35, %v3114_v19  ;;  %v2749_v8 = vmul.f32 %v5346_v9, %v5714_v27  ;;  %v4655_v13 = vpop.eup %4654  ;;  %v3875_v25 = vmul.f32 -1.442695, %v5772_v0  ;;  %v2276_v35 = vrot.slane %v5717_v52, 7 }
 0x22a   :  { %v2981_v47 = vadd.f32 %v2949_v46, %v2913_v29  ;;  %v3048_v54 = vadd.f32 %v3016_v32, %v2980_v43  ;;  %v3183_v24 = vadd.f32 %v3151_v16, %v3115_v10  ;;  %v3376_v42 = vadd.f32 1.0, %v4655_v13 }
 0x22b   :  { %v5779_v26 = vadd.f32 %v3218_v33, %v3182_v36  ;;  %v2951_v21 = vmul.f32 %v5356_v4, %v5714_v27  ;;  %v2493_v46 = vrot.slane %v5717_v52, 1  ;;  %v2748_v32 = vmul.f32 %v5346_v9, %v5717_v52 }
 0x22c   :  { %4656 = vpow2.f32 %v3875_v25  ;;  %v2323_v16 = vsel %vm2300_vm5, %v2276_v35, %v2277_v31  ;;  %v7267_v50 = vrot.slane %v5666_v60, 7  ;;  %v7268_v6 = vrot.slane %v5666_v60, 1 }
 0x22d   :  { %v3876_v3 = vmul.f32 -1.442695, %v5779_v26  ;;  %4658 = vrcp.f32 %v3376_v42  ;;  %v2540_v14 = vsel %vm2517_vm6, %v2493_v46, %v2494_v2  ;;  %v2681_v1 = vmul.f32 %v5371_v59, %v2323_v16 }
 0x22e   :  { %v2324_v55 = vsel %vm2300_vm5, %v7267_v50, %v2276_v35  ;;  %v2541_v62 = vsel %vm2517_vm6, %v7268_v6, %v2493_v46  ;;  %v2816_v29 = vmul.f32 %v5373_v56, %v2540_v14  ;;  %v2883_v10 = vmul.f32 %v5381_v22, %v2323_v16  ;;  %v5822_v46 = vpop.f32.mrb[28].mxu1 }
 0x22f   :  { %v2421_v38 = vsel %vm5749_vm15, %v2324_v55, 0.0  ;;  %4660 = vpow2.f32 %v3876_v3  ;;  %v2637_v57 = vsel %vm5757_vm0, %v2541_v62, 0.0  ;;  %v5815_v36 = vadd.f32 %v2749_v8, %v2681_v1  ;;  %v5834_v1 = vpop.f32.mrb[29].mxu1 }
 0x230   :  { %v2680_v19 = vmul.f32 %v5371_v59, %v2421_v38  ;;  %v2815_v7 = vmul.f32 %v5373_v56, %v2637_v57  ;;  %v2882_v43 = vmul.f32 %v5381_v22, %v2421_v38  ;;  %v2950_v33 = vmul.f32 %v5356_v4, %v5717_v52  ;;  %7269 = vst [vmem:[#allocation23_spill] sm:$0xff] %v5834_v1 }
 0x231   :  { %v3017_v15 = vmul.f32 %v5383_v63, %v2637_v57  ;;  %v3018_v35 = vmul.f32 %v5383_v63, %v2540_v14  ;;  %v3084_v42 = vmul.f32 %v5392_v45, %v2421_v38  ;;  %v3152_v8 = vmul.f32 %v5390_v41, %v5717_v52 }
 0x232   :  { %v2780_v60 = vadd.f32 %v2748_v32, %v2680_v19  ;;  %v2847_v13 = vadd.f32 %v2815_v7, %v2779_v37  ;;  %v2914_v25 = vadd.f32 %v2882_v43, %v2846_v58  ;;  %v3085_v32 = vmul.f32 %v5392_v45, %v2323_v16 }
 0x233   :  { %v3049_v50 = vadd.f32 %v3017_v15, %v2981_v47  ;;  %v3116_v62 = vadd.f32 %v3084_v42, %v3048_v54  ;;  %v3219_v37 = vmul.f32 %v5676_v53, %v2637_v57  ;;  %v3153_v58 = vmul.f32 %v5390_v41, %v5714_v27 }
 0x234   :  { %v5824_v3 = vadd.f32 %v2816_v29, %v2780_v60  ;;  %v2915_v55 = vadd.f32 %v2883_v10, %v2847_v13  ;;  %v2982_v6 = vadd.f32 %v2950_v33, %v2914_v25  ;;  %v3220_v38 = vmul.f32 %v5676_v53, %v2540_v14 }
 0x235   :  { %v3117_v19 = vadd.f32 %v3085_v32, %v3049_v50  ;;  %4662 = vrcp.f32 %v5701_v12  ;;  %v3184_v52 = vadd.f32 %v3152_v8, %v3116_v62  ;;  %v5840_v7 = vadd.f32 %v3219_v37, %v3183_v24 }
 0x236   :  { %v5836_v47 = vadd.f32 %v2951_v21, %v2915_v55  ;;  %v5838_v16 = vadd.f32 %v3018_v35, %v2982_v6  ;;  %v4657_v54 = vpop.eup %4656  ;;  %v5846_v57 = vadd.f32 %v5313_v30, %v5425_v11  ;;  %v1773_v60 = vadd.s32 104, %v5338_v17 }
 0x237   :  { %v5842_v29 = vadd.f32 %v3153_v58, %v3117_v19  ;;  %v4659_v43 = vpop.eup %4658  ;;  %v3377_v14 = vadd.f32 1.0, %v4657_v54  ;;  %v5848_v10 = vadd.f32 %v3220_v38, %v3184_v52  ;;  %v3877_v12 = vmul.f32 -1.442695, %v5840_v7 }
 0x238   :  { %v1774_v33 = vadd.s32 112, %v5338_v17  ;;  %v3832_v24 = vmul.f32 -1.442695, %v5723_v40  ;;  %v3831_v15 = vmul.f32 -1.442695, %v5846_v57  ;;  %v5857_v11 = vadd.f32 %v5455_v20, %v5313_v30 }
 0x239   :  { %v4661_v21 = vpop.eup %4660  ;;  %4664 = vrcp.f32 %v3377_v14  ;;  %v5861_v13 = vadd.f32 %v5313_v30, %v5462_v5  ;;  %v5865_v35 = vmul.f32 %v5774_v61, %v5476_v39  ;;  %v3878_v42 = vmul.f32 -1.442695, %v5848_v10 }
 0x23a   :  { %4666 = vpow2.f32 %v3877_v12  ;;  %v3378_v25 = vadd.f32 1.0, %v4661_v21  ;;  %v1891_v50 = vand.u32 15, %v1773_v60  ;;  %v1898_v32 = vand.u32 15, %v1774_v33 }
 0x23b   :  { %4668 = vpow2.f32 %v3832_v24  ;;  %v3834_v8 = vmul.f32 -1.442695, %v5857_v11  ;;  %v5871_v20 = vadd.f32 %v5502_v23, %v5313_v30  ;;  %v3833_v5 = vmul.f32 -1.442695, %v5861_v13 }
 0x23c   :  { %4670 = vpow2.f32 %v3831_v15  ;;  %v7181_v6 = vrot.slane %v5865_v35, 7  ;;  %v7180_v39 = vrot.slane %v5865_v35, 1  ;;  %v2751_v62 = vmul.f32 %v5346_v9, %v5865_v35 }
 0x23d   :  { %4672 = vrcp.f32 %v3378_v25  ;;  %vm5879_vm1 = vcmp.ne.s32.totalorder %v1898_v32, 0  ;;  %vm5883_vm2 = vcmp.ne.s32.totalorder %v1891_v50, 15  ;;  %v3836_v38 = vmul.f32 -1.442695, %v5871_v20 }
 0x23e   :  { %4674 = vpow2.f32 %v3878_v42  ;;  %v5889_v52 = vmul.f32 %v4659_v43, %v5698_v18 }
 0x23f   :  { %v4663_v55 = vpop.eup %4662  ;;  %4676 = vpow2.f32 %v3834_v8 }
 0x240   :  { %v1267_v61 = vmul.f32 %v4663_v55, %v5528_v49  ;;  %7274 = vst [vmem:[#allocation24_spill] sm:$0xff] %v5889_v52  ;;  %v2953_v49 = vmul.f32 %v5356_v4, %v5865_v35  ;;  %4678 = vpow2.f32 %v3833_v5 }
 0x241   :  { %4680 = vpow2.f32 %v3836_v38 }
 0x242   :  { %v2278_v58 = vrot.slane %v1267_v61, 7  ;;  %v2495_v19 = vrot.slane %v1267_v61, 1  ;;  %v2750_v54 = vmul.f32 %v5346_v9, %v1267_v61 }
 0x243   :  { %v4665_v14 = vpop.eup %4664 }
 0x244   :  { %v2321_v12 = vsel %vm2300_vm5, %v2278_v58, %v7181_v6  ;;  %v2322_v21 = vsel %vm2300_vm5, %v2277_v31, %v2278_v58  ;;  %v2538_v18 = vsel %vm2517_vm6, %v2495_v19, %v7180_v39  ;;  %v2539_v43 = vsel %vm2517_vm6, %v2494_v2, %v2495_v19  ;;  %v4667_v60 = vpop.eup %4666 }
 0x245   :  { %v5911_v33 = vmul.f32 %v4665_v14, %v5772_v0  ;;  %v2423_v24 = vsel %vm5879_vm1, %v2322_v21, 0.0  ;;  %v2639_v31 = vsel %vm5883_vm2, %v2539_v43, 0.0  ;;  %v2683_v15 = vmul.f32 %v5371_v59, %v2321_v12  ;;  %v4669_v8 = vpop.eup %4668 }
 0x246   :  { %v3379_v25 = vadd.f32 1.0, %v4667_v60  ;;  %v2682_v42 = vmul.f32 %v5371_v59, %v2423_v24  ;;  %v2817_v27 = vmul.f32 %v5373_v56, %v2639_v31  ;;  %v3155_v0 = vmul.f32 %v5390_v41, %v5865_v35  ;;  %v4671_v23 = vpop.eup %4670 }
 0x247   :  { %7275 = vst [vmem:[#allocation25_spill] sm:$0xff] %v5911_v33  ;;  %v4051_v2 = vpack.c.bf16 %v5911_v33, %v5889_v52  ;;  %v5924_v50 = vadd.f32 %v2751_v62, %v2683_v15  ;;  %v2884_v32 = vmul.f32 %v5381_v22, %v2423_v24  ;;  %v2818_v5 = vmul.f32 %v5373_v56, %v2538_v18  ;;  %v4673_v14 = vpop.eup %4672 }
 0x248   :  { %4682 = vrcp.f32 %v3379_v25  ;;  %v2782_v55 = vadd.f32 %v2750_v54, %v2682_v42  ;;  %v2849_v37 = vadd.f32 %v2817_v27, %v5815_v36  ;;  %v2885_v58 = vmul.f32 %v5381_v22, %v2321_v12  ;;  %v4675_v60 = vpop.eup %4674  ;;  %v5943_v27 = vpop.f32.mrb[30].mxu1 }
 0x249   :  { %4135 = vst [vmem:[%s7152_s8 + $0x10] sm:$0xff] %v4051_v2   ;;  %v2916_v19 = vadd.f32 %v2884_v32, %v5824_v3  ;;  %v2952_v62 = vmul.f32 %v5356_v4, %v1267_v61  ;;  %v3019_v38 = vmul.f32 %v5383_v63, %v2639_v31  ;;  %v3020_v54 = vmul.f32 %v5383_v63, %v2538_v18  ;;  %v4677_v2 = vpop.eup %4676 }
 0x24a   :  { %v5936_v21 = vadd.f32 %v2818_v5, %v2782_v55  ;;  %v3086_v36 = vmul.f32 %v5392_v45, %v2423_v24  ;;  %v3087_v43 = vmul.f32 %v5392_v45, %v2321_v12  ;;  %v2917_v15 = vadd.f32 %v2885_v58, %v2849_v37  ;;  %7276 = vst [vmem:[#allocation26_spill] sm:$0xff] %v5943_v27  ;;  %v4679_v6 = vpop.eup %4678 }
 0x24b   :  { %v2984_v25 = vadd.f32 %v2952_v62, %v2916_v19  ;;  %v3051_v42 = vadd.f32 %v3019_v38, %v5836_v47  ;;  %v3221_v3 = vmul.f32 %v5676_v53, %v2639_v31  ;;  %v3154_v55 = vmul.f32 %v5390_v41, %v1267_v61  ;;  %v5955_v19 = vpop.f32.mrb[31].mxu1 }
 0x24c   :  { %v3118_v32 = vadd.f32 %v3086_v36, %v5838_v16  ;;  %v1174_v5 = vadd.f32 1.0, %v4669_v8  ;;  %v1173_v39 = vadd.f32 1.0, %v4671_v23  ;;  %v5947_v24 = vadd.f32 %v2953_v49, %v2917_v15  ;;  %7277 = vst [vmem:[#allocation27_spill] sm:$0xff] %v5955_v19  ;;  %v4681_v49 = vpop.eup %4680 }
 0x24d   :  { %v5949_v12 = vadd.f32 %v3020_v54, %v2984_v25  ;;  %v3119_v37 = vadd.f32 %v3087_v43, %v3051_v42  ;;  %v5952_v58 = vadd.f32 %v3221_v3, %v5842_v29  ;;  %v3222_v31 = vmul.f32 %v5676_v53, %v2538_v18  ;;  %v7283_v3 = vld [vmem:[#allocation16_spill] sm:$0xff] }
 0x24e   :  { %v3186_v47 = vadd.f32 %v3154_v55, %v3118_v32  ;;  %4684 = vrcp.f32 %v1174_v5  ;;  %v1176_v8 = vadd.f32 1.0, %v4677_v2  ;;  %v1776_v62 = vadd.s32 128, %v5338_v17  ;;  %v7285_v2 = vld [vmem:[#allocation17_spill] sm:$0xff] }
 0x24f   :  { %v5957_v16 = vadd.f32 %v3155_v0, %v3119_v37  ;;  %v3879_v61 = vmul.f32 -1.442695, %v5952_v58  ;;  %4686 = vrcp.f32 %v1173_v39  ;;  %v5965_v29 = vadd.f32 %v5313_v30, %v5517_v34  ;;  %v7278_v0 = vld [vmem:[#allocation13_spill] sm:$0xff]  ;;  %v5979_v34 = vld [vmem:[%s7150_s6] ss:$0 sm:$0xff] }
 0x250   :  { %v5960_v23 = vadd.f32 %v3222_v31, %v3186_v47  ;;  %v3380_v38 = vadd.f32 1.0, %v4675_v60  ;;  %v1775_v18 = vadd.s32 120, %v5338_v17  ;;  %v5970_v54 = vadd.f32 %v7278_v0, %v5313_v30  ;;  %v7280_v60 = vld [vmem:[#allocation14_spill] sm:$0xff]  ;;  %v7287_v5 = vld [vmem:[#allocation21_spill] sm:$0xff] }
 0x251   :  { %4688 = vpow2.f32 %v3879_v61  ;;  %v5973_v39 = vmul.f32 %v4673_v14, %v5779_v26  ;;  %v1175_v15 = vadd.f32 1.0, %v4679_v6  ;;  %v5983_v25 = vadd.f32 %v5979_v34, %v7280_v60 }
 0x252   :  { %v4683_v36 = vpop.eup %4682  ;;  %v3880_v43 = vmul.f32 -1.442695, %v5960_v23  ;;  %4690 = vrcp.f32 %v1176_v8  ;;  %v1178_v30 = vadd.f32 1.0, %v4681_v49  ;;  %v5990_v26 = vadd.f32 %v5979_v34, %v7283_v3 }
 0x253   :  { %7279 = vst [vmem:[#allocation13_spill] sm:$0xff] %v5973_v39  ;;  %7281 = vst [vmem:[#allocation14_spill] sm:$0xff] %v5983_v25  ;;  %v5986_v42 = vmul.f32 %v4683_v36, %v5840_v7  ;;  %v1912_v6 = vand.u32 15, %v1776_v62  ;;  %v3835_v14 = vmul.f32 -1.442695, %v5965_v29  ;;  %v5995_v32 = vadd.f32 %v5979_v34, %v7285_v2 }
 0x254   :  { %7284 = vst [vmem:[#allocation16_spill] sm:$0xff] %v5990_v26  ;;  %4692 = vpow2.f32 %v3880_v43  ;;  %v3838_v7 = vmul.f32 -1.442695, %v5970_v54  ;;  %v6002_v37 = vadd.f32 %v5979_v34, %v7287_v5  ;;  %v1905_v47 = vand.u32 15, %v1775_v18 }
 0x255   :  { %7282 = vst [vmem:[#allocation28_spill] sm:$0xff] %v5986_v42  ;;  %7286 = vst [vmem:[#allocation17_spill] sm:$0xff] %v5995_v32  ;;  %4694 = vrcp.f32 %v3380_v38  ;;  %v4056_v55 = vpack.c.bf16 %v5986_v42, %v5973_v39  ;;  %v6005_v31 = vadd.s32 136, %v5338_v17  ;;  %v3837_v61 = vmul.f32 -1.442695, %v5983_v25 }
 0x256   :  { %7288 = vst [vmem:[#allocation21_spill] sm:$0xff] %v6002_v37  ;;  %4696 = vrcp.f32 %v1175_v15  ;;  %v1778_v8 = vadd.s32 144, %v5338_v17  ;;  %v3840_v49 = vmul.f32 -1.442695, %v5990_v26  ;;  %v3839_v38 = vmul.f32 -1.442695, %v5995_v32 }
 0x257   :  { %4136 = vst [vmem:[%s7152_s8 + $0x18] sm:$0xff] %v4056_v55   ;;  %4698 = vrcp.f32 %v1178_v30  ;;  %vm6017_vm3 = vcmp.ne.s32.totalorder %v1912_v6, 0  ;;  %v3842_v43 = vmul.f32 -1.442695, %v6002_v37  ;;  %v6022_v15 = vpop.f32.mrb[32].mxu1  ;;  %vm6025_vm4 = vcmp.ne.s32.totalorder %v1905_v47, 15 }
 0x258   :  { %v4685_v62 = vpop.eup %4684  ;;  %4700 = vpow2.f32 %v3835_v14  ;;  %7291 = vst [vmem:[#allocation29_spill] sm:$0xff] %v6022_v15  ;;  %v1919_v3 = vand.u32 15, %v6005_v31  ;;  %v1926_v2 = vand.u32 15, %v1778_v8 }
 0x259   :  { %v4687_v18 = vpop.eup %4686  ;;  %v6015_v0 = vmul.f32 %v4685_v62, %v5723_v40  ;;  %4702 = vpow2.f32 %v3838_v7  ;;  %v6032_v62 = vpop.f32.mrb[33].mxu1 }
 0x25a   :  { %v1269_v60 = vmul.f32 %v4687_v18, %v5846_v57  ;;  %4704 = vpow2.f32 %v3837_v61  ;;  %7294 = vst [vmem:[#allocation30_spill] sm:$0xff] %v6032_v62  ;;  %vm6077_vm7 = vcmp.ne.s32.totalorder %v1926_v2, 0  ;;  %vm6087_vm8 = vcmp.ne.s32.totalorder %v1919_v3, 15 }
 0x25b   :  { %v4689_v40 = vpop.eup %4688  ;;  %v7184_v6 = vrot.slane %v6015_v0, 7  ;;  %v7187_v14 = vrot.slane %v6015_v0, 1  ;;  %4706 = vpow2.f32 %v3840_v49  ;;  %v2753_v47 = vmul.f32 %v5346_v9, %v6015_v0 }
 0x25c   :  { %v3381_v55 = vadd.f32 1.0, %v4689_v40  ;;  %v2280_v7 = vrot.slane %v1269_v60, 7  ;;  %v2497_v5 = vrot.slane %v1269_v60, 1  ;;  %4708 = vpow2.f32 %v3839_v38  ;;  %v4691_v57 = vpop.eup %4690 }
 0x25d   :  { %v2955_v31 = vmul.f32 %v5356_v4, %v6015_v0  ;;  %v2752_v61 = vmul.f32 %v5346_v9, %v1269_v60  ;;  %4710 = vpow2.f32 %v3842_v43  ;;  %v7295_v49 = vrot.slane %v5865_v35, 7 }
 0x25e   :  { %v4693_v18 = vpop.eup %4692  ;;  %4712 = vrcp.f32 %v3381_v55  ;;  %v2319_v8 = vsel %vm2300_vm5, %v2280_v7, %v7184_v6  ;;  %v2536_v40 = vsel %vm2517_vm6, %v2497_v5, %v7187_v14  ;;  %v7296_v55 = vrot.slane %v5865_v35, 1 }
 0x25f   :  { %v2320_v38 = vsel %vm2300_vm5, %v7295_v49, %v2280_v7  ;;  %v4695_v42 = vpop.eup %4694  ;;  %v2685_v6 = vmul.f32 %v5371_v59, %v2319_v8  ;;  %v2954_v33 = vmul.f32 %v5356_v4, %v1269_v60  ;;  %v6064_v36 = vmul.f32 %v4691_v57, %v5857_v11 }
 0x260   :  { %v2425_v43 = vsel %vm6017_vm3, %v2320_v38, 0.0  ;;  %v2537_v39 = vsel %vm2517_vm6, %v7296_v55, %v2497_v5  ;;  %v4697_v52 = vpop.eup %4696  ;;  %v3382_v35 = vadd.f32 1.0, %v4693_v18  ;;  %v2820_v55 = vmul.f32 %v5373_v56, %v2536_v40 }
 0x261   :  { %v2641_v7 = vsel %vm6025_vm4, %v2537_v39, 0.0  ;;  %v2684_v49 = vmul.f32 %v5371_v59, %v2425_v43  ;;  %v2886_v14 = vmul.f32 %v5381_v22, %v2425_v43  ;;  %v6066_v38 = vpop.eup %4698  ;;  %v6068_v51 = vadd.f32 %v2753_v47, %v2685_v6 }
 0x262   :  { %v2819_v5 = vmul.f32 %v5373_v56, %v2641_v7  ;;  %v6072_v62 = vpop.eup %4700  ;;  %v2887_v39 = vmul.f32 %v5381_v22, %v2319_v8  ;;  %v3021_v37 = vmul.f32 %v5383_v63, %v2641_v7  ;;  %v3022_v47 = vmul.f32 %v5383_v63, %v2536_v40 }
 0x263   :  { %v2784_v30 = vadd.f32 %v2752_v61, %v2684_v49  ;;  %v2918_v15 = vadd.f32 %v2886_v14, %v5936_v21  ;;  %v6081_v57 = vpop.eup %4702  ;;  %v3088_v18 = vmul.f32 %v5392_v45, %v2425_v43  ;;  %v3223_v61 = vmul.f32 %v5676_v53, %v2641_v7  ;;  %v6102_v7 = vpop.f32.mrb[34].mxu1 }
 0x264   :  { %v2851_v6 = vadd.f32 %v2819_v5, %v5924_v50  ;;  %v6091_v21 = vpop.eup %4704  ;;  %v3053_v19 = vadd.f32 %v3021_v37, %v5947_v24  ;;  %v3089_v27 = vmul.f32 %v5392_v45, %v2319_v8  ;;  %v3156_v43 = vmul.f32 %v5390_v41, %v1269_v60  ;;  %7301 = vst [vmem:[#allocation31_spill] sm:$0xff] %v6102_v7 }
 0x265   :  { %v2852_v14 = vadd.f32 %v2820_v55, %v2784_v30  ;;  %v2986_v2 = vadd.f32 %v2954_v33, %v2918_v15  ;;  %v6095_v1 = vpop.eup %4706  ;;  %v3120_v5 = vadd.f32 %v3088_v18, %v5949_v12  ;;  %v6100_v3 = vadd.f32 %v3223_v61, %v5957_v16 }
 0x266   :  { %v2919_v50 = vadd.f32 %v2887_v39, %v2851_v6  ;;  %v6104_v32 = vpop.eup %4708  ;;  %4714 = vrcp.f32 %v3382_v35  ;;  %v3157_v33 = vmul.f32 %v5390_v41, %v6015_v0  ;;  %v3121_v37 = vadd.f32 %v3089_v27, %v3053_v19 }
 0x267   :  { %v3054_v24 = vadd.f32 %v3022_v47, %v2986_v2  ;;  %v6108_v15 = vpop.eup %4710  ;;  %v3188_v55 = vadd.f32 %v3156_v43, %v3120_v5  ;;  %v3224_v12 = vmul.f32 %v5676_v53, %v2536_v40  ;;  %v3881_v60 = vmul.f32 -1.442695, %v6100_v3  ;;  %v6127_v2 = vpop.f32.mrb[35].mxu1 }
 0x268   :  { %v2987_v8 = vadd.f32 %v2955_v31, %v2919_v50  ;;  %v4713_v16 = vpop.eup %4712  ;;  %v3189_v30 = vadd.f32 %v3157_v33, %v3121_v37  ;;  %v7192_v39 = vrot.slane %v6064_v36, 7  ;;  %v7191_v6 = vrot.slane %v6064_v36, 1  ;;  %7304 = vst [vmem:[#allocation34_spill] sm:$0xff] %v6127_v2 }
 0x269   :  { %v1271_v35 = vmul.f32 %v4697_v52, %v5861_v13  ;;  %v6116_v18 = vmul.f32 %v4695_v42, %v5848_v10  ;;  %v6119_v27 = vmul.f32 %v4713_v16, %v5952_v58  ;;  %v6121_v19 = vadd.f32 %v3224_v12, %v3188_v55 }
 0x26a   :  { %4716 = vpow2.f32 %v3881_v60  ;;  %v2755_v31 = vmul.f32 %v5346_v9, %v6064_v36  ;;  %v2957_v40 = vmul.f32 %v5356_v4, %v6064_v36  ;;  %v3159_v52 = vmul.f32 %v5390_v41, %v6064_v36 }
 0x26b   :  { %7302 = vst [vmem:[#allocation32_spill] sm:$0xff] %v6116_v18  ;;  %7303 = vst [vmem:[#allocation33_spill] sm:$0xff] %v6119_v27  ;;  %v2282_v47 = vrot.slane %v1271_v35, 7  ;;  %v2499_v61 = vrot.slane %v1271_v35, 1  ;;  %v4061_v10 = vpack.c.bf16 %v6119_v27, %v6116_v18  ;;  %v3882_v13 = vmul.f32 -1.442695, %v6121_v19 }
 0x26c   :  { %v2754_v58 = vmul.f32 %v5346_v9, %v1271_v35  ;;  %v7305_v50 = vrot.slane %v6015_v0, 7  ;;  %v2956_v33 = vmul.f32 %v5356_v4, %v1271_v35  ;;  %v7306_v55 = vrot.slane %v6015_v0, 1 }
 0x26d   :  { %v2317_v42 = vsel %vm2300_vm5, %v2282_v47, %v7192_v39  ;;  %v2534_v43 = vsel %vm2517_vm6, %v2499_v61, %v7191_v6  ;;  %4137 = vst [vmem:[%s7152_s8 + $0x20] sm:$0xff] %v4061_v10   ;;  %4718 = vpow2.f32 %v3882_v13  ;;  %v3158_v10 = vmul.f32 %v5390_v41, %v1271_v35 }
 0x26e   :  { %v2318_v5 = vsel %vm2300_vm5, %v7305_v50, %v2282_v47  ;;  %v2535_v12 = vsel %vm2517_vm6, %v7306_v55, %v2499_v61  ;;  %v2687_v60 = vmul.f32 %v5371_v59, %v2317_v42  ;;  %v2822_v0 = vmul.f32 %v5373_v56, %v2534_v43 }
 0x26f   :  { %v2427_v37 = vsel %vm6077_vm7, %v2318_v5, 0.0  ;;  %v2643_v16 = vsel %vm6087_vm8, %v2535_v12, 0.0  ;;  %v2889_v49 = vmul.f32 %v5381_v22, %v2317_v42  ;;  %v3091_v35 = vmul.f32 %v5392_v45, %v2317_v42 }
 0x270   :  { %v2686_v47 = vmul.f32 %v5371_v59, %v2427_v37  ;;  %v2888_v50 = vmul.f32 %v5381_v22, %v2427_v37  ;;  %v6163_v13 = vadd.f32 %v2755_v31, %v2687_v60  ;;  %v2821_v11 = vmul.f32 %v5373_v56, %v2643_v16  ;;  %v6168_v61 = vpop.eup %4714 }
 0x271   :  { %v3023_v5 = vmul.f32 %v5383_v63, %v2643_v16  ;;  %v3090_v6 = vmul.f32 %v5392_v45, %v2427_v37  ;;  %v3225_v31 = vmul.f32 %v5676_v53, %v2643_v16  ;;  %v3024_v2 = vmul.f32 %v5383_v63, %v2534_v43 }
 0x272   :  { %v2786_v55 = vadd.f32 %v2754_v58, %v2686_v47  ;;  %v2920_v12 = vadd.f32 %v2888_v50, %v2852_v14  ;;  %v2853_v39 = vadd.f32 %v2821_v11, %v6068_v51  ;;  %v1177_v14 = vadd.f32 1.0, %v6072_v62 }
 0x273   :  { %v3055_v27 = vadd.f32 %v3023_v5, %v2987_v8  ;;  %v3122_v7 = vadd.f32 %v3090_v6, %v3054_v24  ;;  %v6178_v25 = vadd.f32 %v3225_v31, %v3189_v30  ;;  %v3226_v42 = vmul.f32 %v5676_v53, %v2534_v43 }
 0x274   :  { %v6175_v60 = vadd.f32 %v2822_v0, %v2786_v55  ;;  %v2988_v18 = vadd.f32 %v2956_v33, %v2920_v12  ;;  %v4717_v26 = vpop.eup %4716  ;;  %v2921_v58 = vadd.f32 %v2889_v49, %v2853_v39  ;;  %v1780_v24 = vadd.s32 160, %v5338_v17 }
 0x275   :  { %v3123_v47 = vadd.f32 %v3091_v35, %v3055_v27  ;;  %v3383_v37 = vadd.f32 1.0, %v4717_v26  ;;  %v3190_v8 = vadd.f32 %v3158_v10, %v3122_v7  ;;  %v3883_v33 = vmul.f32 -1.442695, %v6178_v25 }
 0x276   :  { %v6181_v51 = vadd.f32 %v3024_v2, %v2988_v18  ;;  %v6184_v16 = vadd.f32 %v2957_v40, %v2921_v58  ;;  %v1779_v30 = vadd.s32 152, %v5338_v17  ;;  %v1180_v26 = vadd.f32 1.0, %v6081_v57 }
 0x277   :  { %v6186_v50 = vadd.f32 %v3159_v52, %v3123_v47  ;;  %4720 = vrcp.f32 %v3383_v37  ;;  %v6190_v39 = vadd.f32 %v3226_v42, %v3190_v8  ;;  %v4719_v62 = vpop.eup %4718  ;;  %v1940_v6 = vand.u32 15, %v1780_v24 }
 0x278   :  { %4722 = vpow2.f32 %v3883_v33  ;;  %v3384_v53 = vadd.f32 1.0, %v4719_v62  ;;  %v1933_v18 = vand.u32 15, %v1779_v30  ;;  %v1179_v27 = vadd.f32 1.0, %v6091_v21 }
 0x279   :  { %v3884_v7 = vmul.f32 -1.442695, %v6190_v39  ;;  %4724 = vrcp.f32 %v1177_v14  ;;  %v6198_v40 = vadd.f32 %v5979_v34, %v5622_v28  ;;  %v6201_v2 = vadd.s32 168, %v5338_v17 }
 0x27a   :  { %4726 = vrcp.f32 %v1180_v26  ;;  %v1182_v57 = vadd.f32 1.0, %v6095_v1  ;;  %v6206_v52 = vadd.f32 %v5979_v34, %v5741_v44  ;;  %v6209_v43 = vadd.s32 176, %v5338_v17 }
 0x27b   :  { %4728 = vpow2.f32 %v3884_v7  ;;  %v1181_v10 = vadd.f32 1.0, %v6104_v32  ;;  %v6213_v21 = vadd.s32 184, %v5338_v17  ;;  %v6216_v28 = vadd.s32 192, %v5338_v17 }
 0x27c   :  { %4730 = vrcp.f32 %v3384_v53  ;;  %vm6218_vm9 = vcmp.ne.s32.totalorder %v1940_v6, 0  ;;  %v1184_v1 = vadd.f32 1.0, %v6108_v15  ;;  %v6225_v44 = vadd.f32 %v5979_v34, %v5769_v48 }
 0x27d   :  { %v6229_v32 = vmul.f32 %v6066_v38, %v5871_v20  ;;  %4732 = vrcp.f32 %v1179_v27  ;;  %v3841_v0 = vmul.f32 -1.442695, %v6198_v40  ;;  %v6234_v5 = vadd.f32 %v5979_v34, %v5822_v46 }
 0x27e   :  { %vm6236_vm10 = vcmp.ne.s32.totalorder %v1933_v18, 15  ;;  %v1947_v15 = vand.u32 15, %v6201_v2  ;;  %4734 = vrcp.f32 %v1182_v57  ;;  %v3844_v48 = vmul.f32 -1.442695, %v6206_v52 }
 0x27f   :  { %v1954_v20 = vand.u32 15, %v6209_v43  ;;  %4736 = vrcp.f32 %v1181_v10  ;;  %v6247_v46 = vmul.f32 %v6168_v61, %v5960_v23  ;;  %v3843_v58 = vmul.f32 -1.442695, %v6225_v44 }
 0x280   :  { %4738 = vrcp.f32 %v1184_v1  ;;  %v7198_v37 = vrot.slane %v6229_v32, 7  ;;  %v3846_v8 = vmul.f32 -1.442695, %v6234_v5  ;;  %v7197_v23 = vrot.slane %v6229_v32, 1 }
 0x281   :  { %v4721_v49 = vpop.eup %4720  ;;  %7311 = vst [vmem:[#allocation35_spill] sm:$0xff] %v6247_v46  ;;  %4740 = vpow2.f32 %v3841_v0  ;;  %v2959_v24 = vmul.f32 %v5356_v4, %v6229_v32  ;;  %v6264_v30 = vadd.s32 200, %v5338_v17  ;;  %v3161_v62 = vmul.f32 %v5390_v41, %v6229_v32 }
 0x282   :  { %v4723_v35 = vpop.eup %4722  ;;  %v6250_v31 = vmul.f32 %v4721_v49, %v6100_v3  ;;  %4742 = vpow2.f32 %v3844_v48  ;;  %v2757_v3 = vmul.f32 %v5346_v9, %v6229_v32  ;;  %v7313_v43 = vrot.slane %v6064_v36, 7 }
 0x283   :  { %v4725_v47 = vpop.eup %4724  ;;  %v3385_v14 = vadd.f32 1.0, %v4723_v35  ;;  %vm6311_vm11 = vcmp.ne.s32.totalorder %v1954_v20, 0  ;;  %vm6326_vm12 = vcmp.ne.s32.totalorder %v1947_v15, 15 }
 0x284   :  { %7312 = vst [vmem:[#allocation36_spill] sm:$0xff] %v6250_v31  ;;  %v4727_v42 = vpop.eup %4726  ;;  %v4066_v33 = vpack.c.bf16 %v6250_v31, %v6247_v46  ;;  %v1273_v61 = vmul.f32 %v4725_v47, %v5965_v29 }
 0x285   :  { %4744 = vrcp.f32 %v3385_v14  ;;  %v4729_v26 = vpop.eup %4728  ;;  %v6273_v18 = vmul.f32 %v4727_v42, %v5970_v54  ;;  %v7314_v54 = vrot.slane %v6064_v36, 1 }
 0x286   :  { %4138 = vst [vmem:[%s7152_s8 + $0x28] sm:$0xff] %v4066_v33   ;;  %v2284_v29 = vrot.slane %v1273_v61, 7  ;;  %v2501_v7 = vrot.slane %v1273_v61, 1  ;;  %4746 = vpow2.f32 %v3843_v58  ;;  %v3386_v53 = vadd.f32 1.0, %v4729_v26  ;;  %v4731_v27 = vpop.eup %4730 }
 0x287   :  { %v2756_v6 = vmul.f32 %v5346_v9, %v1273_v61  ;;  %4748 = vpow2.f32 %v3846_v8  ;;  %v4733_v48 = vpop.eup %4732  ;;  %v2958_v47 = vmul.f32 %v5356_v4, %v1273_v61  ;;  %v3160_v33 = vmul.f32 %v5390_v41, %v1273_v61 }
 0x288   :  { %v2315_v57 = vsel %vm2300_vm5, %v2284_v29, %v7198_v37  ;;  %v2316_v10 = vsel %vm2300_vm5, %v7313_v43, %v2284_v29  ;;  %v2532_v1 = vsel %vm2517_vm6, %v2501_v7, %v7197_v23  ;;  %v2533_v0 = vsel %vm2517_vm6, %v7314_v54, %v2501_v7  ;;  %v4735_v14 = vpop.eup %4734 }
 0x289   :  { %v2429_v49 = vsel %vm6218_vm9, %v2316_v10, 0.0  ;;  %v2645_v35 = vsel %vm6236_vm10, %v2533_v0, 0.0  ;;  %v2689_v58 = vmul.f32 %v5371_v59, %v2315_v57  ;;  %v4737_v26 = vpop.eup %4736  ;;  %v2824_v11 = vmul.f32 %v5373_v56, %v2532_v1 }
 0x28a   :  { %v2688_v8 = vmul.f32 %v5371_v59, %v2429_v49  ;;  %v2823_v42 = vmul.f32 %v5373_v56, %v2645_v35  ;;  %v2890_v36 = vmul.f32 %v5381_v22, %v2429_v49  ;;  %v2891_v55 = vmul.f32 %v5381_v22, %v2315_v57  ;;  %v6306_v43 = vpop.eup %4738 }
 0x28b   :  { %v6301_v29 = vadd.f32 %v2757_v3, %v2689_v58  ;;  %v3025_v7 = vmul.f32 %v5383_v63, %v2645_v35  ;;  %v3092_v38 = vmul.f32 %v5392_v45, %v2429_v49  ;;  %v4741_v3 = vpop.eup %4740  ;;  %v3026_v58 = vmul.f32 %v5383_v63, %v2532_v1 }
 0x28c   :  { %v2788_v10 = vadd.f32 %v2756_v6, %v2688_v8  ;;  %v2855_v54 = vadd.f32 %v2823_v42, %v6163_v13  ;;  %v2922_v0 = vadd.f32 %v2890_v36, %v6175_v60  ;;  %v3093_v23 = vmul.f32 %v5392_v45, %v2315_v57  ;;  %v6321_v6 = vld [vmem:[%s7151_s7 + $0x8] ss:$0 sm:$0xff]  ;;  %v6330_v20 = vpop.eup %4742 }
 0x28d   :  { %v3057_v12 = vadd.f32 %v3025_v7, %v6184_v16  ;;  %v3227_v13 = vmul.f32 %v6321_v6, %v2645_v35  ;;  %v3124_v57 = vadd.f32 %v3092_v38, %v6181_v51  ;;  %v6334_v36 = vmul.f32 %v4731_v27, %v6121_v19 }
 0x28e   :  { %v2856_v49 = vadd.f32 %v2824_v11, %v2788_v10  ;;  %v2923_v8 = vadd.f32 %v2891_v55, %v2855_v54  ;;  %v2990_v16 = vadd.f32 %v2958_v47, %v2922_v0  ;;  %v3228_v35 = vmul.f32 %v6321_v6, %v2532_v1  ;;  %v7322_v0 = vld [vmem:[#allocation16_spill] sm:$0xff] }
 0x28f   :  { %v4745_v42 = vpop.eup %4744  ;;  %7319 = vst [vmem:[#allocation37_spill] sm:$0xff] %v6334_v36  ;;  %v3125_v7 = vadd.f32 %v3093_v23, %v3057_v12  ;;  %v6338_v2 = vadd.f32 %v3227_v13, %v6186_v50  ;;  %v3192_v47 = vadd.f32 %v3160_v33, %v3124_v57  ;;  %4750 = vrcp.f32 %v3386_v53 }
 0x290   :  { %v6340_v15 = vpop.eup %4746  ;;  %v6343_v37 = vmul.f32 %v4745_v42, %v6178_v25  ;;  %v2991_v11 = vadd.f32 %v2959_v24, %v2923_v8  ;;  %v3058_v55 = vadd.f32 %v3026_v58, %v2990_v16  ;;  %v7200_v38 = vrot.slane %v6273_v18, 7  ;;  %v7321_v25 = vld [vmem:[#allocation14_spill] sm:$0xff]  ;;  %v7323_v8 = vld [vmem:[#allocation17_spill] sm:$0xff] }
 0x291   :  { %v6345_v10 = vpop.eup %4748  ;;  %v3193_v51 = vadd.f32 %v3161_v62, %v3125_v7  ;;  %v3885_v19 = vmul.f32 -1.442695, %v6338_v2  ;;  %v6351_v12 = vadd.f32 %v3228_v35, %v3192_v47  ;;  %v7199_v23 = vrot.slane %v6273_v18, 1 }
 0x292   :  { %7320 = vst [vmem:[#allocation38_spill] sm:$0xff] %v6343_v37  ;;  %v4071_v50 = vpack.c.bf16 %v6343_v37, %v6334_v36  ;;  %v1275_v27 = vmul.f32 %v4733_v48, %v7321_v25  ;;  %v2759_v24 = vmul.f32 %v5346_v9, %v6273_v18  ;;  %v2961_v62 = vmul.f32 %v5356_v4, %v6273_v18 }
 0x293   :  { %4752 = vpow2.f32 %v3885_v19  ;;  %v3163_v53 = vmul.f32 %v5390_v41, %v6273_v18  ;;  %v3886_v1 = vmul.f32 -1.442695, %v6351_v12  ;;  %v6366_v48 = vmul.f32 %v4735_v14, %v7322_v0 }
 0x294   :  { %4139 = vst [vmem:[%s7152_s8 + $0x30] sm:$0xff] %v4071_v50   ;;  %v2286_v33 = vrot.slane %v1275_v27, 7  ;;  %v2503_v54 = vrot.slane %v1275_v27, 1  ;;  %v2758_v58 = vmul.f32 %v5346_v9, %v1275_v27  ;;  %v2960_v13 = vmul.f32 %v5356_v4, %v1275_v27 }
 0x295   :  { %v6371_v16 = vmul.f32 %v4737_v26, %v7323_v8  ;;  %v6373_v57 = vadd.f32 1.0, %v4741_v3  ;;  %4754 = vpow2.f32 %v3886_v1  ;;  %v7324_v7 = vrot.slane %v6229_v32, 7 }
 0x296   :  { %v2313_v42 = vsel %vm2300_vm5, %v2286_v33, %v7200_v38  ;;  %v2530_v35 = vsel %vm2517_vm6, %v2503_v54, %v7199_v23  ;;  %v7325_v3 = vrot.slane %v6229_v32, 1  ;;  %v3162_v50 = vmul.f32 %v5390_v41, %v1275_v27 }
 0x297   :  { %v2314_v14 = vsel %vm2300_vm5, %v7324_v7, %v2286_v33  ;;  %v2691_v19 = vmul.f32 %v5371_v59, %v2313_v42  ;;  %v7326_v61 = vand.u32 15, %v6216_v28  ;;  %v2826_v27 = vmul.f32 %v5373_v56, %v2530_v35 }
 0x298   :  { %v2431_v26 = vsel %vm6311_vm11, %v2314_v14, 0.0  ;;  %v2531_v47 = vsel %vm2517_vm6, %v7325_v3, %v2503_v54  ;;  %v7329_v7 = vand.u32 15, %v6213_v21  ;;  %v2893_v28 = vmul.f32 %v5381_v22, %v2313_v42 }
 0x299   :  { %v2647_v25 = vsel %vm6326_vm12, %v2531_v47, 0.0  ;;  %v2690_v1 = vmul.f32 %v5371_v59, %v2431_v26  ;;  %v2892_v33 = vmul.f32 %v5381_v22, %v2431_v26  ;;  %vm6402_vm13 = vcmp.ne.s32.totalorder %v7326_v61, 0  ;;  %v4751_v23 = vpop.eup %4750 }
 0x29a   :  { %v2791_v54 = vadd.f32 %v2759_v24, %v2691_v19  ;;  %v2825_v8 = vmul.f32 %v5373_v56, %v2647_v25  ;;  %v3027_v60 = vmul.f32 %v5383_v63, %v2647_v25  ;;  %vm6411_vm14 = vcmp.ne.s32.totalorder %v7329_v7, 15 }
 0x29b   :  { %v2790_v3 = vadd.f32 %v2758_v58, %v2690_v1  ;;  %v2924_v47 = vadd.f32 %v2892_v33, %v2856_v49  ;;  %v3094_v61 = vmul.f32 %v5392_v45, %v2431_v26  ;;  %v3095_v38 = vmul.f32 %v5392_v45, %v2313_v42 }
 0x29c   :  { %v2857_v24 = vadd.f32 %v2825_v8, %v6301_v29  ;;  %v3059_v19 = vadd.f32 %v3027_v60, %v2991_v11  ;;  %v3229_v0 = vmul.f32 %v6321_v6, %v2647_v25  ;;  %v3028_v7 = vmul.f32 %v5383_v63, %v2530_v35 }
 0x29d   :  { %v2858_v37 = vadd.f32 %v2826_v27, %v2790_v3  ;;  %v2992_v21 = vadd.f32 %v2960_v13, %v2924_v47  ;;  %v3126_v36 = vadd.f32 %v3094_v61, %v3058_v55  ;;  %v4753_v31 = vpop.eup %4752  ;;  %v3230_v49 = vmul.f32 %v6321_v6, %v2530_v35 }
 0x29e   :  { %v2925_v58 = vadd.f32 %v2893_v28, %v2857_v24  ;;  %v3127_v1 = vadd.f32 %v3095_v38, %v3059_v19  ;;  %v6422_v33 = vadd.f32 %v3229_v0, %v3193_v51  ;;  %v3387_v26 = vadd.f32 1.0, %v4753_v31 }
 0x29f   :  { %v3060_v46 = vadd.f32 %v3028_v7, %v2992_v21  ;;  %v3194_v29 = vadd.f32 %v3162_v50, %v3126_v36  ;;  %v2506_v11 = vrot.slane %v6366_v48, 1  ;;  %v6426_v42 = vmul.f32 %v4751_v23, %v6190_v39  ;;  %v4755_v55 = vpop.eup %4754 }
 0x2a0   :  { %v2993_v25 = vadd.f32 %v2961_v62, %v2925_v58  ;;  %v3195_v13 = vadd.f32 %v3163_v53, %v3127_v1  ;;  %v3887_v8 = vmul.f32 -1.442695, %v6422_v33  ;;  %4756 = vrcp.f32 %v3387_v26 }
 0x2a1   :  { %v6429_v27 = vadd.f32 %v3230_v49, %v3194_v29  ;;  %v2288_v38 = vrot.slane %v6371_v16, 7  ;;  %v2505_v51 = vrot.slane %v6371_v16, 1  ;;  %v3388_v31 = vadd.f32 1.0, %v4755_v55 }
 0x2a2   :  { %4758 = vpow2.f32 %v3887_v8  ;;  %v2761_v36 = vmul.f32 %v5346_v9, %v6366_v48  ;;  %v2963_v39 = vmul.f32 %v5356_v4, %v6366_v48  ;;  %v7332_v62 = vrot.slane %v6366_v48, 7 }
 0x2a3   :  { %v3888_v23 = vmul.f32 -1.442695, %v6429_v27  ;;  %v7333_v35 = vrot.slane %v6273_v18, 7  ;;  %v2528_v0 = vsel %vm2517_vm6, %v2505_v51, %v2506_v11  ;;  %v7334_v3 = vrot.slane %v6273_v18, 1 }
 0x2a4   :  { %v2311_v53 = vsel %vm2300_vm5, %v2288_v38, %v7332_v62  ;;  %v2760_v61 = vmul.f32 %v5346_v9, %v6371_v16  ;;  %v2962_v32 = vmul.f32 %v5356_v4, %v6371_v16  ;;  %v2828_v7 = vmul.f32 %v5373_v56, %v2528_v0 }
 0x2a5   :  { %v2312_v50 = vsel %vm2300_vm5, %v7333_v35, %v2288_v38  ;;  %v2529_v28 = vsel %vm2517_vm6, %v7334_v3, %v2505_v51  ;;  %v2693_v47 = vmul.f32 %v5371_v59, %v2311_v53  ;;  %4760 = vpow2.f32 %v3888_v23 }
 0x2a6   :  { %v2433_v60 = vsel %vm6402_vm13, %v2312_v50, 0.0  ;;  %v2649_v24 = vsel %vm6411_vm14, %v2529_v28, 0.0  ;;  %v2895_v49 = vmul.f32 %v5381_v22, %v2311_v53  ;;  %v3097_v55 = vmul.f32 %v5392_v45, %v2311_v53 }
 0x2a7   :  { %v2692_v19 = vmul.f32 %v5371_v59, %v2433_v60  ;;  %v6464_v21 = vadd.f32 %v2761_v36, %v2693_v47  ;;  %v2827_v18 = vmul.f32 %v5373_v56, %v2649_v24  ;;  %v2894_v58 = vmul.f32 %v5381_v22, %v2433_v60 }
 0x2a8   :  { %v3029_v26 = vmul.f32 %v5383_v63, %v2649_v24  ;;  %v3096_v14 = vmul.f32 %v5392_v45, %v2433_v60  ;;  %v3164_v38 = vmul.f32 %v5390_v41, %v6371_v16  ;;  %v3231_v62 = vmul.f32 %v6321_v6, %v2649_v24 }
 0x2a9   :  { %v2792_v1 = vadd.f32 %v2760_v61, %v2692_v19  ;;  %v2859_v29 = vadd.f32 %v2827_v18, %v2791_v54  ;;  %v2926_v8 = vadd.f32 %v2894_v58, %v2858_v37  ;;  %v3165_v35 = vmul.f32 %v5390_v41, %v6366_v48 }
 0x2aa   :  { %v3061_v36 = vadd.f32 %v3029_v26, %v2993_v25  ;;  %v3128_v23 = vadd.f32 %v3096_v14, %v3060_v46  ;;  %v3030_v60 = vmul.f32 %v5383_v63, %v2528_v0  ;;  %v4757_v54 = vpop.eup %4756  ;;  %v3232_v53 = vmul.f32 %v6321_v6, %v2528_v0 }
 0x2ab   :  { %v6475_v51 = vadd.f32 %v2828_v7, %v2792_v1  ;;  %v2927_v50 = vadd.f32 %v2895_v49, %v2859_v29  ;;  %v2994_v3 = vadd.f32 %v2962_v32, %v2926_v8  ;;  %v6482_v47 = vadd.f32 %v3231_v62, %v3195_v13  ;;  %v7335_v49 = vld [vmem:[#allocation23_spill] sm:$0xff]  ;;  %v7336_v29 = vld [vmem:[#allocation26_spill] sm:$0xff]  ;;  %v7339_v62 = vld [vmem:[#allocation29_spill] sm:$0xff] }
 0x2ac   :  { %v3129_v37 = vadd.f32 %v3097_v55, %v3061_v36  ;;  %v3196_v28 = vadd.f32 %v3164_v38, %v3128_v23  ;;  %v4759_v16 = vpop.eup %4758  ;;  %4762 = vrcp.f32 %v3388_v31  ;;  %v6485_v46 = vmul.f32 %v4757_v54, %v6338_v2  ;;  %v7337_v55 = vld [vmem:[#allocation27_spill] sm:$0xff]  ;;  %v7338_v38 = vld [vmem:[#allocation21_spill] sm:$0xff] }
 0x2ad   :  { %v6487_v25 = vadd.f32 %v2963_v39, %v2927_v50  ;;  %v6489_v61 = vadd.f32 %v3030_v60, %v2994_v3  ;;  %v3389_v24 = vadd.f32 1.0, %v4759_v16  ;;  %v3889_v18 = vmul.f32 -1.442695, %v6482_v47 }
 0x2ae   :  { %v6491_v19 = vadd.f32 %v3165_v35, %v3129_v37  ;;  %v6493_v32 = vadd.f32 %v3232_v53, %v3196_v28  ;;  %v4076_v13 = vpack.c.bf16 %v6485_v46, %v6426_v42  ;;  %4764 = vrcp.f32 %v6373_v57 }
 0x2af   :  { %v1786_v31 = vadd.s32 208, %v5338_v17  ;;  %v4761_v2 = vpop.eup %4760  ;;  %4766 = vrcp.f32 %v3389_v24  ;;  %v1975_v0 = vand.u32 15, %v6264_v30  ;;  %v6506_v1 = vadd.s32 216, %v5338_v17  ;;  %v7344_v24 = vld [vmem:[#allocation30_spill] sm:$0xff] }
 0x2b0   :  { %4140 = vst [vmem:[%s7152_s8 + $0x38] sm:$0xff] %v4076_v13   ;;  %4768 = vpow2.f32 %v3889_v18  ;;  %v3890_v39 = vmul.f32 -1.442695, %v6493_v32  ;;  %v3390_v7 = vadd.f32 1.0, %v4761_v2  ;;  %v6510_v57 = vadd.f32 %v5979_v34, %v7335_v49 }
 0x2b1   :  { %v1982_v58 = vand.u32 15, %v1786_v31  ;;  %v1186_v26 = vadd.f32 1.0, %v6330_v20  ;;  %v1788_v14 = vadd.s32 224, %v5338_v17  ;;  %v6516_v8 = vadd.f32 %v5979_v34, %v7336_v29 }
 0x2b2   :  { %v6520_v30 = vadd.f32 %v5979_v34, %v7337_v55  ;;  %v6524_v36 = vmul.f32 %v6306_v43, %v7338_v38  ;;  %v1185_v23 = vadd.f32 1.0, %v6340_v15  ;;  %v6529_v35 = vadd.f32 %v5979_v34, %v7339_v62 }
 0x2b3   :  { %4770 = vpow2.f32 %v3890_v39  ;;  %vm6531_vm15 = vcmp.ne.s32.totalorder %v1975_v0, 15  ;;  %v1188_v50 = vadd.f32 1.0, %v6345_v10  ;;  %vm6536_vm0 = vcmp.ne.s32.totalorder %v1982_v58, 0 }
 0x2b4   :  { %4772 = vrcp.f32 %v3390_v7  ;;  %v1989_v43 = vand.u32 15, %v6506_v1  ;;  %v3845_v15 = vmul.f32 -1.442695, %v6510_v57  ;;  %v1996_v54 = vand.u32 15, %v1788_v14 }
 0x2b5   :  { %4774 = vrcp.f32 %v1186_v26  ;;  %v3848_v37 = vmul.f32 -1.442695, %v6516_v8  ;;  %v3847_v28 = vmul.f32 -1.442695, %v6520_v30  ;;  %v7206_v16 = vrot.slane %v6524_v36, 7 }
 0x2b6   :  { %v4763_v3 = vpop.eup %4762  ;;  %4776 = vrcp.f32 %v1185_v23  ;;  %v6546_v10 = vmul.f32 -1.442695, %v6529_v35  ;;  %v6550_v18 = vadd.f32 %v5979_v34, %v7344_v24  ;;  %v7205_v31 = vrot.slane %v6524_v36, 1 }
 0x2b7   :  { %v2763_v2 = vmul.f32 %v5346_v9, %v6524_v36  ;;  %4778 = vrcp.f32 %v1188_v50  ;;  %v6557_v7 = vmul.f32 %v4763_v3, %v6351_v12  ;;  %v2965_v34 = vmul.f32 %v5356_v4, %v6524_v36 }
 0x2b8   :  { %v4765_v53 = vpop.eup %4764  ;;  %4780 = vpow2.f32 %v3845_v15  ;;  %v6569_v12 = vmul.f32 -1.442695, %v6550_v18  ;;  %v7347_v29 = vrot.slane %v6366_v48, 7  ;;  %vm6603_vm1 = vcmp.ne.s32.totalorder %v1996_v54, 0 }
 0x2b9   :  { %v4767_v13 = vpop.eup %4766  ;;  %v1279_v39 = vmul.f32 %v4765_v53, %v6198_v40  ;;  %7345 = vst [vmem:[#allocation14_spill] sm:$0xff] %v6557_v7  ;;  %4782 = vpow2.f32 %v3848_v37  ;;  %v3167_v40 = vmul.f32 %v5390_v41, %v6524_v36  ;;  %vm6611_vm2 = vcmp.ne.s32.totalorder %v1989_v43, 15 }
 0x2ba   :  { %v4769_v0 = vpop.eup %4768  ;;  %v6560_v58 = vmul.f32 %v4767_v13, %v6422_v33  ;;  %4784 = vpow2.f32 %v3847_v28 }
 0x2bb   :  { %v3391_v1 = vadd.f32 1.0, %v4769_v0  ;;  %v2290_v49 = vrot.slane %v1279_v39, 7  ;;  %v2507_v26 = vrot.slane %v1279_v39, 1  ;;  %v2762_v38 = vmul.f32 %v5346_v9, %v1279_v39 }
 0x2bc   :  { %7346 = vst [vmem:[#allocation16_spill] sm:$0xff] %v6560_v58  ;;  %v4081_v14 = vpack.c.bf16 %v6560_v58, %v6557_v7  ;;  %v2964_v3 = vmul.f32 %v5356_v4, %v1279_v39  ;;  %v3166_v53 = vmul.f32 %v5390_v41, %v1279_v39 }
 0x2bd   :  { %4786 = vrcp.f32 %v3391_v1  ;;  %v2309_v33 = vsel %vm2300_vm5, %v2290_v49, %v7206_v16  ;;  %v2310_v55 = vsel %vm2300_vm5, %v7347_v29, %v2290_v49  ;;  %v2526_v62 = vsel %vm2517_vm6, %v2507_v26, %v7205_v31  ;;  %v4771_v15 = vpop.eup %4770 }
 0x2be   :  { %4141 = vst [vmem:[%s7152_s8 + $0x40] sm:$0xff] %v4081_v14   ;;  %v2435_v23 = vsel %vm6536_vm0, %v2310_v55, 0.0  ;;  %v2527_v50 = vsel %vm2517_vm6, %v2506_v11, %v2507_v26  ;;  %v2695_v60 = vmul.f32 %v5371_v59, %v2309_v33  ;;  %v4773_v24 = vpop.eup %4772  ;;  %v2830_v48 = vmul.f32 %v5373_v56, %v2526_v62 }
 0x2bf   :  { %v2651_v37 = vsel %vm6531_vm15, %v2527_v50, 0.0  ;;  %v2694_v28 = vmul.f32 %v5371_v59, %v2435_v23  ;;  %v2896_v0 = vmul.f32 %v5381_v22, %v2435_v23  ;;  %v4775_v20 = vpop.eup %4774  ;;  %v2897_v14 = vmul.f32 %v5381_v22, %v2309_v33 }
 0x2c0   :  { %v2829_v13 = vmul.f32 %v5373_v56, %v2651_v37  ;;  %v3031_v11 = vmul.f32 %v5383_v63, %v2651_v37  ;;  %v6607_v26 = vadd.f32 %v2763_v2, %v2695_v60  ;;  %v3098_v39 = vmul.f32 %v5392_v45, %v2435_v23  ;;  %v4777_v55 = vpop.eup %4776 }
 0x2c1   :  { %v2794_v49 = vadd.f32 %v2762_v38, %v2694_v28  ;;  %v2928_v54 = vadd.f32 %v2896_v0, %v6475_v51  ;;  %v3099_v16 = vmul.f32 %v5392_v45, %v2309_v33  ;;  %v6619_v38 = vpop.eup %4778  ;;  %v3032_v28 = vmul.f32 %v5383_v63, %v2526_v62 }
 0x2c2   :  { %v2861_v50 = vadd.f32 %v2829_v13, %v6464_v21  ;;  %v3063_v31 = vadd.f32 %v3031_v11, %v6487_v25  ;;  %v3130_v23 = vadd.f32 %v3098_v39, %v6489_v61  ;;  %v3233_v43 = vmul.f32 %v6321_v6, %v2651_v37  ;;  %v6624_v60 = vpop.eup %4780 }
 0x2c3   :  { %v2862_v2 = vadd.f32 %v2830_v48, %v2794_v49  ;;  %v2996_v7 = vadd.f32 %v2964_v3, %v2928_v54  ;;  %v6627_v51 = vmul.f32 %v4775_v20, %v6206_v52  ;;  %v6629_v25 = vpop.eup %4782  ;;  %v3234_v13 = vmul.f32 %v6321_v6, %v2526_v62 }
 0x2c4   :  { %v2929_v58 = vadd.f32 %v2897_v14, %v2861_v50  ;;  %v3131_v21 = vadd.f32 %v3099_v16, %v3063_v31  ;;  %v3198_v33 = vadd.f32 %v3166_v53, %v3130_v23  ;;  %v6633_v48 = vadd.f32 %v3233_v43, %v6491_v19  ;;  %v6636_v0 = vpop.eup %4784 }
 0x2c5   :  { %v1281_v61 = vmul.f32 %v4777_v55, %v6225_v44  ;;  %v3064_v11 = vadd.f32 %v3032_v28, %v2996_v7  ;;  %v2293_v16 = vrot.slane %v6627_v51, 7  ;;  %v2510_v53 = vrot.slane %v6627_v51, 1 }
 0x2c6   :  { %v2997_v37 = vadd.f32 %v2965_v34, %v2929_v58  ;;  %v3199_v49 = vadd.f32 %v3167_v40, %v3131_v21  ;;  %v6639_v52 = vadd.f32 %v3234_v13, %v3198_v33  ;;  %v3891_v3 = vmul.f32 -1.442695, %v6633_v48 }
 0x2c7   :  { %v4787_v31 = vpop.eup %4786  ;;  %4788 = vpow2.f32 %v6546_v10  ;;  %v6645_v19 = vmul.f32 %v4773_v24, %v6429_v27  ;;  %v3392_v44 = vadd.f32 1.0, %v4771_v15  ;;  %v2292_v7 = vrot.slane %v1281_v61, 7 }
 0x2c8   :  { %v6648_v62 = vmul.f32 %v4787_v31, %v6482_v47  ;;  %4790 = vpow2.f32 %v3891_v3  ;;  %v3892_v58 = vmul.f32 -1.442695, %v6639_v52  ;;  %v2765_v34 = vmul.f32 %v5346_v9, %v6627_v51 }
 0x2c9   :  { %v2509_v40 = vrot.slane %v1281_v61, 1  ;;  %v2967_v10 = vmul.f32 %v5356_v4, %v6627_v51  ;;  %v2307_v27 = vsel %vm2300_vm5, %v2292_v7, %v2293_v16  ;;  %v7352_v47 = vrot.slane %v6524_v36, 7 }
 0x2ca   :  { %v4086_v20 = vpack.c.bf16 %v6648_v62, %v6645_v19  ;;  %4792 = vpow2.f32 %v3892_v58  ;;  %v7353_v39 = vrot.slane %v6524_v36, 1  ;;  %v2697_v54 = vmul.f32 %v5371_v59, %v2307_v27 }
 0x2cb   :  { %v2308_v15 = vsel %vm2300_vm5, %v7352_v47, %v2292_v7  ;;  %v2524_v14 = vsel %vm2517_vm6, %v2509_v40, %v2510_v53  ;;  %v2764_v28 = vmul.f32 %v5346_v9, %v1281_v61  ;;  %v2899_v21 = vmul.f32 %v5381_v22, %v2307_v27 }
 0x2cc   :  { %v2437_v24 = vsel %vm6603_vm1, %v2308_v15, 0.0  ;;  %v2525_v55 = vsel %vm2517_vm6, %v7353_v39, %v2509_v40  ;;  %4142 = vst [vmem:[%s7152_s8 + $0x48] sm:$0xff] %v4086_v20   ;;  %v2832_v36 = vmul.f32 %v5373_v56, %v2524_v14  ;;  %v6687_v13 = vadd.f32 %v2765_v34, %v2697_v54 }
 0x2cd   :  { %v2653_v50 = vsel %vm6611_vm2, %v2525_v55, 0.0  ;;  %v2696_v1 = vmul.f32 %v5371_v59, %v2437_v24  ;;  %v2898_v43 = vmul.f32 %v5381_v22, %v2437_v24  ;;  %v2966_v29 = vmul.f32 %v5356_v4, %v1281_v61 }
 0x2ce   :  { %v2831_v23 = vmul.f32 %v5373_v56, %v2653_v50  ;;  %v3033_v31 = vmul.f32 %v5383_v63, %v2653_v50  ;;  %v3034_v58 = vmul.f32 %v5383_v63, %v2524_v14  ;;  %v3100_v40 = vmul.f32 %v5392_v45, %v2437_v24 }
 0x2cf   :  { %v2796_v33 = vadd.f32 %v2764_v28, %v2696_v1  ;;  %v2930_v7 = vadd.f32 %v2898_v43, %v2862_v2  ;;  %v3101_v15 = vmul.f32 %v5392_v45, %v2307_v27  ;;  %v3235_v39 = vmul.f32 %v6321_v6, %v2653_v50 }
 0x2d0   :  { %v2863_v3 = vadd.f32 %v2831_v23, %v6607_v26  ;;  %v3065_v47 = vadd.f32 %v3033_v31, %v2997_v37  ;;  %v3132_v54 = vadd.f32 %v3100_v40, %v3064_v11  ;;  %v3168_v28 = vmul.f32 %v5390_v41, %v1281_v61 }
 0x2d1   :  { %v6694_v20 = vadd.f32 %v2832_v36, %v2796_v33  ;;  %v4789_v34 = vpop.eup %4788  ;;  %v2998_v1 = vadd.f32 %v2966_v29, %v2930_v7  ;;  %v3169_v26 = vmul.f32 %v5390_v41, %v6627_v51  ;;  %v6701_v23 = vadd.f32 %v3235_v39, %v3199_v49  ;;  %v7355_v39 = vld [vmem:[#allocation34_spill] sm:$0xff] }
 0x2d2   :  { %v2931_v55 = vadd.f32 %v2899_v21, %v2863_v3  ;;  %v3133_v2 = vadd.f32 %v3101_v15, %v3065_v47  ;;  %4794 = vpow2.f32 %v6569_v12  ;;  %v4791_v24 = vpop.eup %4790  ;;  %v3200_v50 = vadd.f32 %v3168_v28, %v3132_v54 }
 0x2d3   :  { %v6706_v27 = vadd.f32 %v3034_v58, %v2998_v1  ;;  %v3236_v36 = vmul.f32 %v6321_v6, %v2524_v14  ;;  %4796 = vrcp.f32 %v3392_v44  ;;  %v3393_v11 = vadd.f32 1.0, %v4791_v24  ;;  %v7354_v58 = vld [vmem:[#allocation31_spill] sm:$0xff] }
 0x2d4   :  { %v6704_v37 = vadd.f32 %v2967_v10, %v2931_v55  ;;  %v6709_v43 = vadd.f32 %v3169_v26, %v3133_v2  ;;  %v3893_v61 = vmul.f32 -1.442695, %v6701_v23  ;;  %v4793_v21 = vpop.eup %4792  ;;  %v1187_v12 = vadd.f32 1.0, %v6624_v60  ;;  %v4874_v60 = vld [vmem:[%s7150_s6] ss:$0 sm:$0xff] }
 0x2d5   :  { %v6712_v33 = vadd.f32 %v3236_v36, %v3200_v50  ;;  %v3394_v49 = vadd.f32 1.0, %v4793_v21  ;;  %4798 = vrcp.f32 %v3393_v11  ;;  %v1190_v29 = vadd.f32 1.0, %v6629_v25 }
 0x2d6   :  { %4800 = vpow2.f32 %v3893_v61  ;;  %v1789_v44 = vadd.s32 232, %v5338_v17  ;;  %v1790_v14 = vadd.s32 240, %v5338_v17  ;;  %v1189_v7 = vadd.f32 1.0, %v6636_v0 }
 0x2d7   :  { %v3894_v10 = vmul.f32 -1.442695, %v6712_v33  ;;  %4802 = vrcp.f32 %v3394_v49  ;;  %v6724_v40 = vadd.f32 %v4874_v60, %v7354_v58  ;;  %v1512_v15 = vadd.f32 1.0, %v4789_v34 }
 0x2d8   :  { %v2003_v3 = vand.u32 15, %v1789_v44  ;;  %v2010_v47 = vand.u32 15, %v1790_v14  ;;  %v6727_v55 = vadd.f32 %v4874_v60, %v7355_v39  ;;  %v1791_v1 = vadd.s32 248, %v5338_v17 }
 0x2d9   :  { %4804 = vpow2.f32 %v3894_v10  ;;  %v1792_v54 = vadd.s32 256, %v5338_v17  ;;  %v6733_v0 = vmul.f32 %v6619_v38, %v6234_v5  ;;  %v6740_v24 = vadd.s32 8, %v5338_v17 }
 0x2da   :  { %4806 = vrcp.f32 %v1187_v12  ;;  %vm6735_vm3 = vcmp.ne.s32.totalorder %v2003_v3, 15  ;;  %v6743_v34 = vadd.s32 16, %v5338_v17  ;;  %v3868_v5 = vmul.f32 -1.442695, %v6724_v40 }
 0x2db   :  { %4808 = vrcp.f32 %v1190_v29  ;;  %vm6752_vm4 = vcmp.ne.s32.totalorder %v2010_v47, 0  ;;  %v3867_v49 = vmul.f32 -1.442695, %v6727_v55  ;;  %v2017_v10 = vand.u32 15, %v1791_v1 }
 0x2dc   :  { %v4795_v31 = vpop.eup %4794  ;;  %4810 = vrcp.f32 %v1189_v7  ;;  %v2024_v29 = vand.u32 15, %v1792_v54  ;;  %v7210_v44 = vrot.slane %v6733_v0, 7  ;;  %v7209_v7 = vrot.slane %v6733_v0, 1 }
 0x2dd   :  { %v4797_v25 = vpop.eup %4796  ;;  %v1511_v28 = vadd.f32 1.0, %v4795_v31  ;;  %4812 = vrcp.f32 %v1512_v15  ;;  %v2767_v60 = vmul.f32 %v5346_v9, %v6733_v0  ;;  %v6775_v47 = vmul.f32 %v5390_v41, %v6733_v0 }
 0x2de   :  { %v6746_v36 = vmul.f32 %v4797_v25, %v6493_v32  ;;  %v6771_v25 = vmul.f32 %v5356_v4, %v6733_v0  ;;  %vm6787_vm7 = vcmp.ne.s32.totalorder %v2024_v29, 0  ;;  %vm6807_vm8 = vcmp.ne.s32.totalorder %v2017_v10, 15 }
 0x2df   :  { %v4799_v26 = vpop.eup %4798  ;;  %4814 = vrcp.f32 %v1511_v28 }
 0x2e0   :  { %v4801_v50 = vpop.eup %4800  ;;  %7358 = vst [vmem:[#allocation17_spill] sm:$0xff] %v6746_v36  ;;  %v6749_v11 = vmul.f32 %v4799_v26, %v6633_v48 }
 0x2e1   :  { %v4803_v38 = vpop.eup %4802  ;;  %v3395_v61 = vadd.f32 1.0, %v4801_v50 }
 0x2e2   :  { %7359 = vst [vmem:[#allocation23_spill] sm:$0xff] %v6749_v11  ;;  %v4091_v32 = vpack.c.bf16 %v6749_v11, %v6746_v36  ;;  %v6781_v39 = vmul.f32 %v4803_v38, %v6639_v52 }
 0x2e3   :  { %v4805_v12 = vpop.eup %4804  ;;  %4816 = vrcp.f32 %v3395_v61 }
 0x2e4   :  { %v4807_v48 = vpop.eup %4806  ;;  %4143 = vst [vmem:[%s7152_s8 + $0x50] sm:$0xff] %v4091_v32   ;;  %4818 = vpow2.f32 %v3868_v5  ;;  %v3396_v1 = vadd.f32 1.0, %v4805_v12 }
 0x2e5   :  { %v4809_v3 = vpop.eup %4808  ;;  %v1283_v58 = vmul.f32 %v4807_v48, %v6510_v57  ;;  %4820 = vpow2.f32 %v3867_v49 }
 0x2e6   :  { %v6778_v15 = vmul.f32 %v4809_v3, %v6516_v8  ;;  %v4811_v3 = vpop.eup %4810  ;;  %4822 = vrcp.f32 %v3396_v1 }
 0x2e7   :  { %v2294_v54 = vrot.slane %v1283_v58, 7  ;;  %v2511_v28 = vrot.slane %v1283_v58, 1  ;;  %v2766_v57 = vmul.f32 %v5346_v9, %v1283_v58  ;;  %v2968_v26 = vmul.f32 %v5356_v4, %v1283_v58 }
 0x2e8   :  { %v3170_v50 = vmul.f32 %v5390_v41, %v1283_v58 }
 0x2e9   :  { %v2305_v8 = vsel %vm2300_vm5, %v2294_v54, %v7210_v44  ;;  %v2306_v52 = vsel %vm2300_vm5, %v2293_v16, %v2294_v54  ;;  %v2522_v38 = vsel %vm2517_vm6, %v2511_v28, %v7209_v7  ;;  %v2523_v49 = vsel %vm2517_vm6, %v2510_v53, %v2511_v28  ;;  %v4813_v54 = vpop.eup %4812 }
 0x2ea   :  { %v2439_v32 = vsel %vm6752_vm4, %v2306_v52, 0.0  ;;  %v2655_v16 = vsel %vm6735_vm3, %v2523_v49, 0.0  ;;  %v2699_v29 = vmul.f32 %v5371_v59, %v2305_v8  ;;  %v2901_v21 = vmul.f32 %v5381_v22, %v2305_v8  ;;  %v4815_v49 = vpop.eup %4814 }
 0x2eb   :  { %v2698_v51 = vmul.f32 %v5371_v59, %v2439_v32  ;;  %v2833_v58 = vmul.f32 %v5373_v56, %v2655_v16  ;;  %v2900_v53 = vmul.f32 %v5381_v22, %v2439_v32  ;;  %v3035_v10 = vmul.f32 %v5383_v63, %v2655_v16 }
 0x2ec   :  { %v3102_v28 = vmul.f32 %v5392_v45, %v2439_v32  ;;  %v3103_v2 = vmul.f32 %v5392_v45, %v2305_v8  ;;  %v3237_v52 = vmul.f32 %v6321_v6, %v2655_v16  ;;  %v3238_v11 = vmul.f32 %v6321_v6, %v2522_v38 }
 0x2ed   :  { %v2798_v14 = vadd.f32 %v2766_v57, %v2698_v51  ;;  %v2865_v31 = vadd.f32 %v2833_v58, %v6687_v13  ;;  %v2932_v7 = vadd.f32 %v2900_v53, %v6694_v20  ;;  %v3067_v48 = vadd.f32 %v3035_v10, %v6704_v37  ;;  %v4817_v44 = vpop.eup %4816 }
 0x2ee   :  { %v3134_v5 = vadd.f32 %v3102_v28, %v6706_v27  ;;  %v6831_v36 = vadd.f32 %v3237_v52, %v6709_v43  ;;  %v1285_v8 = vmul.f32 %v4811_v3, %v6520_v30  ;;  %v4819_v32 = vpop.eup %4818  ;;  %v6835_v16 = vmul.f32 %v4817_v44, %v6701_v23 }
 0x2ef   :  { %v2933_v57 = vadd.f32 %v2901_v21, %v2865_v31  ;;  %v3000_v13 = vadd.f32 %v2968_v26, %v2932_v7  ;;  %v3135_v51 = vadd.f32 %v3103_v2, %v3067_v48  ;;  %v6837_v20 = vpop.eup %4820  ;;  %v2799_v10 = vadd.f32 %v2767_v60, %v2699_v29 }
 0x2f0   :  { %v3202_v37 = vadd.f32 %v3170_v50, %v3134_v5  ;;  %v3895_v58 = vmul.f32 -1.442695, %v6831_v36  ;;  %v2296_v27 = vrot.slane %v1285_v8, 7  ;;  %v2513_v53 = vrot.slane %v1285_v8, 1 }
 0x2f1   :  { %v4096_v43 = vpack.c.bf16 %v6835_v16, %v6781_v39  ;;  %v2834_v30 = vmul.f32 %v5373_v56, %v2522_v38  ;;  %v7366_v23 = vrot.slane %v6778_v15, 7  ;;  %v7367_v31 = vrot.slane %v6733_v0, 7 }
 0x2f2   :  { %v6843_v3 = vadd.f32 %v3238_v11, %v3202_v37  ;;  %4824 = vpow2.f32 %v3895_v58  ;;  %v7368_v11 = vrot.slane %v6778_v15, 1  ;;  %v7369_v26 = vrot.slane %v6733_v0, 1 }
 0x2f3   :  { %v2303_v44 = vsel %vm2300_vm5, %v2296_v27, %v7366_v23  ;;  %v2304_v7 = vsel %vm2300_vm5, %v7367_v31, %v2296_v27  ;;  %4144 = vst [vmem:[%s7152_s8 + $0x58] sm:$0xff] %v4096_v43   ;;  %v2866_v5 = vadd.f32 %v2834_v30, %v2798_v14  ;;  %v2971_v48 = vmul.f32 %v5356_v4, %v6778_v15 }
 0x2f4   :  { %v2441_v60 = vsel %vm6787_vm7, %v2304_v7, 0.0  ;;  %v2520_v1 = vsel %vm2517_vm6, %v2513_v53, %v7368_v11  ;;  %v2521_v50 = vsel %vm2517_vm6, %v7369_v26, %v2513_v53  ;;  %v3896_v29 = vmul.f32 -1.442695, %v6843_v3 }
 0x2f5   :  { %v2657_v61 = vsel %vm6807_vm8, %v2521_v50, 0.0  ;;  %v2902_v21 = vmul.f32 %v5381_v22, %v2441_v60  ;;  %v2903_v2 = vmul.f32 %v5381_v22, %v2303_v44  ;;  %v3001_v0 = vadd.f32 %v6771_v25, %v2933_v57 }
 0x2f6   :  { %v2835_v28 = vmul.f32 %v5373_v56, %v2657_v61  ;;  %v3036_v52 = vmul.f32 %v5383_v63, %v2522_v38  ;;  %4826 = vpow2.f32 %v3896_v29  ;;  %v2970_v37 = vmul.f32 %v5356_v4, %v1285_v8 }
 0x2f7   :  { %v2934_v14 = vadd.f32 %v2902_v21, %v2866_v5  ;;  %v3037_v58 = vmul.f32 %v5383_v63, %v2657_v61  ;;  %v3104_v12 = vmul.f32 %v5392_v45, %v2441_v60  ;;  %v3105_v43 = vmul.f32 %v5392_v45, %v2303_v44  ;;  %v6887_v60 = vpop.eup %4822 }
 0x2f8   :  { %v2867_v27 = vadd.f32 %v2835_v28, %v2799_v10  ;;  %v3068_v53 = vadd.f32 %v3036_v52, %v3000_v13  ;;  %v3203_v31 = vadd.f32 %v6775_v47, %v3135_v51  ;;  %v3239_v25 = vmul.f32 %v6321_v6, %v2657_v61 }
 0x2f9   :  { %v3002_v30 = vadd.f32 %v2970_v37, %v2934_v14  ;;  %v3069_v23 = vadd.f32 %v3037_v58, %v3001_v0  ;;  %v3172_v7 = vmul.f32 %v5390_v41, %v1285_v8  ;;  %v1518_v11 = vmul.f32 %v4813_v54, %v6529_v35 }
 0x2fa   :  { %v2935_v57 = vadd.f32 %v2903_v2, %v2867_v27  ;;  %v3136_v38 = vadd.f32 %v3104_v12, %v3068_v53  ;;  %v6884_v50 = vadd.f32 %v3239_v25, %v3203_v31  ;;  %v1517_v13 = vmul.f32 %v4815_v49, %v6550_v18  ;;  %v7376_v2 = vld [vmem:[#allocation4_spill] sm:$0xff] }
 0x2fb   :  { %v3137_v26 = vadd.f32 %v3105_v43, %v3069_v23  ;;  %v1711_v10 = vadd.f32 1.0, %v4819_v32  ;;  %v3240_v5 = vmul.f32 %v6321_v6, %v2520_v1  ;;  %v1521_v47 = vmul.f32 0.0, %v1518_v11  ;;  %v7380_v11 = vld [vmem:[#allocation7_spill] sm:$0xff] }
 0x2fc   :  { %v3204_v44 = vadd.f32 %v3172_v7, %v3136_v38  ;;  %v6890_v51 = vadd.f32 %v2971_v48, %v2935_v57  ;;  %v4825_v29 = vpop.eup %4824  ;;  %v3897_v61 = vmul.f32 -1.442695, %v6884_v50  ;;  %v7370_v8 = vand.u32 15, %v6743_v34  ;;  %v7379_v38 = vld [vmem:[#allocation3_spill] sm:$0xff] }
 0x2fd   :  { %v6899_v54 = vmul.f32 0.0, %v1517_v13  ;;  %4828 = vrcp.f32 %v1711_v10  ;;  %v3397_v18 = vadd.f32 1.0, %v4825_v29  ;;  %v2265_v32 = vrot.slane %v1521_v47, 7 }
 0x2fe   :  { %vm6895_vm9 = vcmp.ne.s32.totalorder %v7370_v8, 0  ;;  %v6901_v49 = vadd.f32 %v3240_v5, %v3204_v44  ;;  %v2482_v6 = vrot.slane %v1521_v47, 1  ;;  %4830 = vpow2.f32 %v3897_v61  ;;  %v7381_v44 = vld [vmem:[#allocation22_spill] sm:$0xff] }
 0x2ff   :  { %v7373_v48 = vand.u32 15, %v6740_v24  ;;  %v2264_v34 = vrot.slane %v6899_v54, 7  ;;  %v2481_v28 = vrot.slane %v6899_v54, 1  ;;  %v2738_v0 = vmul.f32 %v5346_v9, %v7376_v2 }
 0x300   :  { %4832 = vrcp.f32 %v3397_v18  ;;  %v7377_v52 = vrot.slane %v7376_v2, 7  ;;  %v7378_v37 = vrot.slane %v7376_v2, 1  ;;  %v4827_v58 = vpop.eup %4826  ;;  %v1710_v43 = vadd.f32 1.0, %v6837_v20 }
 0x301   :  { %vm6905_vm10 = vcmp.ne.s32.totalorder %v7373_v48, 15  ;;  %v2335_v53 = vsel %vm2300_vm5, %v2264_v34, %v2265_v32  ;;  %v6933_v12 = vsel %vm2517_vm6, %v2481_v28, %v2482_v6  ;;  %v3173_v23 = vmul.f32 %v5390_v41, %v6778_v15  ;;  %v7382_v48 = vld [vmem:[#allocation11_spill] sm:$0xff] }
 0x302   :  { %v2334_v14 = vsel %vm2300_vm5, %v2265_v32, %v7377_v52  ;;  %v2551_v24 = vsel %vm2517_vm6, %v2482_v6, %v7378_v37  ;;  %v3038_v57 = vmul.f32 %v5383_v63, %v2520_v1  ;;  %v2941_v7 = vmul.f32 %v5356_v4, %v7379_v38  ;;  %v7384_v52 = vld [vmem:[#allocation5_spill] sm:$0xff]  ;;  %v7385_v37 = vld [vmem:[#allocation8_spill] sm:$0xff]  ;;  %v7388_v38 = vld [vmem:[#allocation19_spill] sm:$0xff] }
 0x303   :  { %v6923_v27 = vsel %vm6895_vm9, %v2334_v14, 0.0  ;;  %v2627_v31 = vsel %vm6905_vm10, %v2551_v24, 0.0  ;;  %v2806_v13 = vmul.f32 %v5373_v56, %v7380_v11  ;;  %v2737_v10 = vmul.f32 %v5346_v9, %v1521_v47 }
 0x304   :  { %v2670_v25 = vmul.f32 %v5371_v59, %v6923_v27  ;;  %v2669_v20 = vmul.f32 %v5371_v59, %v2335_v53  ;;  %v3873_v5 = vmul.f32 -1.442695, %v7381_v44  ;;  %v6950_v61 = vadd.f32 %v3038_v57, %v3002_v30  ;;  %v7383_v30 = vld [vmem:[#allocation6_spill] sm:$0xff] }
 0x305   :  { %v6952_v8 = vadd.f32 %v3173_v23, %v3137_v26  ;;  %v2805_v35 = vmul.f32 %v5373_v56, %v2627_v31  ;;  %v1800_v18 = vand.u32 15, %v5338_v17  ;;  %4834 = vrcp.f32 %v1710_v43  ;;  %v7386_v43 = vld [vmem:[#allocation12_spill] sm:$0xff]  ;;  %v7387_v23 = vld [vmem:[#allocation10_spill] sm:$0xff] }
 0x306   :  { %v2770_v29 = vadd.f32 %v2738_v0, %v2670_v25  ;;  %v2769_v1 = vadd.f32 %v2737_v10, %v2669_v20  ;;  %v6958_v32 = vmul.f32 %v5356_v4, %v7376_v2  ;;  %v3398_v47 = vadd.f32 1.0, %v4827_v58 }
 0x307   :  { %v2874_v21 = vmul.f32 %v5381_v22, %v7382_v48  ;;  %v4829_v0 = vpop.eup %4828  ;;  %v2873_v26 = vmul.f32 %v5381_v22, %v7383_v30  ;;  %v3145_v14 = vmul.f32 %v5390_v41, %v7384_v52  ;;  %v2942_v24 = vmul.f32 %v5356_v4, %v7385_v37  ;;  %v7391_v30 = vld [vmem:[#allocation9_spill] sm:$0xff] }
 0x308   :  { %v2838_v6 = vadd.f32 %v2806_v13, %v2770_v29  ;;  %v2837_v53 = vadd.f32 %v2805_v35, %v2769_v1  ;;  %v3009_v2 = vmul.f32 %v5383_v63, %v7386_v43  ;;  %v3010_v58 = vmul.f32 %v5383_v63, %v7387_v23  ;;  %v4831_v57 = vpop.eup %4830 }
 0x309   :  { %v1717_v25 = vmul.f32 %v4829_v0, %v6724_v40  ;;  %v3078_v13 = vmul.f32 %v5392_v45, %v7388_v38  ;;  %4836 = vpow2.f32 %v3873_v5  ;;  %vm6975_vm11 = vcmp.ne.s32.totalorder %v1800_v18, 0 }
 0x30a   :  { %v2906_v31 = vadd.f32 %v2874_v21, %v2838_v6  ;;  %v2905_v10 = vadd.f32 %v2873_v26, %v2837_v53  ;;  %v4833_v4 = vpop.eup %4832  ;;  %4838 = vrcp.f32 %v3398_v47  ;;  %v3399_v29 = vadd.f32 1.0, %v4831_v57 }
 0x30b   :  { %v6979_v1 = vmul.f32 0.0, %v1717_v25  ;;  %v6983_v6 = vmul.f32 %v6887_v60, %v6712_v33  ;;  %v6986_v40 = vmul.f32 %v4833_v4, %v6831_v36  ;;  %v1794_v5 = vadd.s32 272, %v5338_v17  ;;  %v7392_v36 = vld [vmem:[#allocation15_spill] sm:$0xff] }
 0x30c   :  { %v2974_v35 = vadd.f32 %v2942_v24, %v2906_v31  ;;  %v2973_v21 = vadd.f32 %v2941_v7, %v2905_v10  ;;  %4840 = vrcp.f32 %v3399_v29  ;;  %v3077_v26 = vmul.f32 %v5392_v45, %v7391_v30  ;;  %v7393_v31 = vld [vmem:[#allocation18_spill] sm:$0xff]  ;;  %v7394_v29 = vld [vmem:[#allocation20_spill] sm:$0xff] }
 0x30d   :  { %v2299_v0 = vrot.slane %v6979_v1, 7  ;;  %v2516_v47 = vrot.slane %v6979_v1, 1  ;;  %v4101_v52 = vpack.c.bf16 %v6986_v40, %v6983_v6  ;;  %v1793_v60 = vadd.s32 264, %v5338_v17 }
 0x30e   :  { %v3042_v18 = vadd.f32 %v3010_v58, %v2974_v35  ;;  %v3041_v33 = vadd.f32 %v3009_v2, %v2973_v21  ;;  %v3146_v7 = vmul.f32 %v5390_v41, %v7392_v36  ;;  %v7011_v2 = vld [vmem:[%s7151_s7 + $0x8] ss:$0 sm:$0xff]  ;;  %v2038_v38 = vand.u32 15, %v1794_v5 }
 0x30f   :  { %v2336_v53 = vsel %vm2300_vm5, %v2299_v0, %v2264_v34  ;;  %v7006_v43 = vsel %vm2517_vm6, %v2516_v47, %v2481_v28  ;;  %v4835_v58 = vpop.eup %4834  ;;  %v3214_v25 = vmul.f32 %v7011_v2, %v7393_v31  ;;  %4145 = vst [vmem:[%s7152_s8 + $0x60] sm:$0xff] %v4101_v52   ;;  %v3213_v35 = vmul.f32 %v7011_v2, %v7394_v29 }
 0x310   :  { %v3110_v24 = vadd.f32 %v3078_v13, %v3042_v18  ;;  %v3109_v34 = vadd.f32 %v3077_v26, %v3041_v33  ;;  %v2409_v57 = vsel %vm6975_vm11, %v2336_v53, 0.0  ;;  %v2736_v13 = vmul.f32 %v5346_v9, %v6899_v54 }
 0x311   :  { %v2668_v10 = vmul.f32 %v5371_v59, %v2409_v57  ;;  %v1716_v4 = vmul.f32 %v4835_v58, %v6727_v55  ;;  %v1795_v18 = vadd.s32 280, %v5338_v17  ;;  %v2031_v30 = vand.u32 15, %v1793_v60 }
 0x312   :  { %v3178_v28 = vadd.f32 %v3146_v7, %v3110_v24  ;;  %v3177_v21 = vadd.f32 %v3145_v14, %v3109_v34  ;;  %v2804_v20 = vmul.f32 %v5373_v56, %v6933_v12  ;;  %v3008_v9 = vmul.f32 %v5383_v63, %v7380_v11 }
 0x313   :  { %v2768_v5 = vadd.f32 %v2736_v13, %v2668_v10  ;;  %v1719_v52 = vmul.f32 0.0, %v1716_v4  ;;  %v4837_v33 = vpop.eup %4836  ;;  %v2872_v59 = vmul.f32 %v5381_v22, %v6923_v27  ;;  %vm7037_vm12 = vcmp.ne.s32.totalorder %v2038_v38, 0 }
 0x314   :  { %v7027_v26 = vadd.f32 %v3214_v25, %v3178_v28  ;;  %v7035_v55 = vadd.f32 %v3213_v35, %v3177_v21  ;;  %v4839_v14 = vpop.eup %4838  ;;  %v3144_v7 = vmul.f32 %v5390_v41, %v7385_v37  ;;  %v3898_v11 = vmul.f32 -1.442695, %v6901_v49 }
 0x315   :  { %v2836_v36 = vadd.f32 %v2804_v20, %v2768_v5  ;;  %v2298_v56 = vrot.slane %v1719_v52, 7  ;;  %v2515_v12 = vrot.slane %v1719_v52, 1  ;;  %v2045_v24 = vand.u32 15, %v1795_v18 }
 0x316   :  { %v3872_v60 = vmul.f32 -1.442695, %v7027_v26  ;;  %vm7045_vm13 = vcmp.ne.s32.totalorder %v2031_v30, 15  ;;  %v4841_v27 = vpop.eup %4840  ;;  %v7399_v31 = vrot.slane %v6778_v15, 7  ;;  %v7056_v37 = vmul.f32 %v4839_v14, %v6843_v3 }
 0x317   :  { %v2904_v53 = vadd.f32 %v2872_v59, %v2836_v36  ;;  %v2301_v58 = vsel %vm2300_vm5, %v2298_v56, %v2299_v0  ;;  %v7059_v34 = vmul.f32 %v4841_v27, %v6884_v50  ;;  %v2518_v38 = vsel %vm2517_vm6, %v2515_v12, %v2516_v47 }
 0x318   :  { %4842 = vpow2.f32 %v3872_v60  ;;  %v2302_v25 = vsel %vm2300_vm5, %v7399_v31, %v2298_v56  ;;  %v3076_v0 = vmul.f32 %v5392_v45, %v7382_v48  ;;  %v7400_v13 = vrot.slane %v6778_v15, 1 }
 0x319   :  { %v2443_v57 = vsel %vm7037_vm12, %v2302_v25, 0.0  ;;  %v2972_v28 = vadd.f32 %v6958_v32, %v2904_v53  ;;  %v3375_v50 = vadd.f32 1.0, %v4837_v33  ;;  %v4106_v4 = vpack.c.bf16 %v7059_v34, %v7056_v37 }
 0x31a   :  { %v2519_v3 = vsel %vm2517_vm6, %v7400_v13, %v2515_v12  ;;  %v3106_v10 = vmul.f32 %v5392_v45, %v2443_v57  ;;  %vm7075_vm5 = vcmp.ne.s32.totalorder %v2045_v24, 15  ;;  %v3174_v17 = vmul.f32 %v5390_v41, %v1719_v52 }
 0x31b   :  { %v2659_v48 = vsel %vm7045_vm13, %v2519_v3, 0.0  ;;  %v3040_v47 = vadd.f32 %v3008_v9, %v2972_v28  ;;  %4844 = vpow2.f32 %v3898_v11  ;;  %4146 = vst [vmem:[%s7152_s8 + $0x68] sm:$0xff] %v4106_v4   ;;  %v3871_v35 = vmul.f32 -1.442695, %v7035_v55 }
 0x31c   :  { %v3039_v32 = vmul.f32 %v5383_v63, %v2659_v48  ;;  %v3138_v15 = vadd.f32 %v3106_v10, %v6950_v61  ;;  %v3107_v21 = vmul.f32 %v5392_v45, %v2301_v58  ;;  %v3241_v18 = vmul.f32 %v7011_v2, %v2659_v48 }
 0x31d   :  { %v3108_v30 = vadd.f32 %v3076_v0, %v3040_v47  ;;  %v3242_v63 = vmul.f32 %v7011_v2, %v2518_v38  ;;  %v3212_v61 = vmul.f32 %v7011_v2, %v7387_v23  ;;  %4846 = vrcp.f32 %v3375_v50 }
 0x31e   :  { %v3071_v20 = vadd.f32 %v3039_v32, %v6890_v51  ;;  %v3206_v5 = vadd.f32 %v3174_v17, %v3138_v15  ;;  %v2661_v52 = vsel %vm7075_vm5, %v7006_v43, 0.0  ;;  %v3273_v33 = vadd.f32 %v3241_v18, %v6952_v8 }
 0x31f   :  { %v3175_v45 = vmul.f32 %v5390_v41, %v6979_v1  ;;  %v3176_v9 = vadd.f32 %v3144_v7, %v3108_v30  ;;  %4848 = vpow2.f32 %v3871_v35  ;;  %v3243_v60 = vmul.f32 %v7011_v2, %v2661_v52 }
 0x320   :  { %v3139_v59 = vadd.f32 %v3107_v21, %v3071_v20  ;;  %v3274_v54 = vadd.f32 %v3242_v63, %v3206_v5  ;;  %v3899_v51 = vmul.f32 -1.442695, %v3273_v33  ;;  %v7403_v5 = vld [vmem:[#allocation24_spill] sm:$0xff] }
 0x321   :  { %v3244_v36 = vadd.f32 %v3212_v61, %v3176_v9  ;;  %v7404_v61 = vld [vmem:[#allocation25_spill] sm:$0xff]  ;;  %v7406_v9 = vld [vmem:[#allocation28_spill] sm:$0xff] }
 0x322   :  { %v4843_v14 = vpop.eup %4842  ;;  %v3207_v23 = vadd.f32 %v3175_v45, %v3139_v59  ;;  %v3900_v56 = vmul.f32 -1.442695, %v3274_v54  ;;  %4850 = vpow2.f32 %v3899_v51 }
 0x323   :  { %v3374_v12 = vadd.f32 1.0, %v4843_v14  ;;  %v3870_v11 = vmul.f32 -1.442695, %v3244_v36  ;;  %v7408_v14 = vld [vmem:[#allocation33_spill] sm:$0xff] }
 0x324   :  { %v3275_v43 = vadd.f32 %v3243_v60, %v3207_v23  ;;  %4852 = vpow2.f32 %v3900_v56  ;;  %v7410_v56 = vld [vmem:[#allocation36_spill] sm:$0xff] }
 0x325   :  { %4854 = vrcp.f32 %v3374_v12  ;;  %v4845_v24 = vpop.eup %4844 }
 0x326   :  { %v3901_v8 = vmul.f32 -1.442695, %v3275_v43  ;;  %4856 = vpow2.f32 %v3870_v11  ;;  %v3400_v1 = vadd.f32 1.0, %v4845_v24  ;;  %v7411_v11 = vld [vmem:[#allocation37_spill] sm:$0xff] }
 0x327   :  { %v4847_v41 = vpop.eup %4846 }
 0x328   :  { %4858 = vpow2.f32 %v3901_v8  ;;  %v3471_v25 = vmul.f32 %v4847_v41, %v7381_v44  ;;  %v7412_v8 = vld [vmem:[#allocation38_spill] sm:$0xff] }
 0x329   :  { %v4849_v7 = vpop.eup %4848  ;;  %4860 = vrcp.f32 %v3400_v1 }
 0x32a   :  { %v3373_v2 = vadd.f32 1.0, %v4849_v7  ;;  %v7413_v7 = vld [vmem:[#allocation14_spill] sm:$0xff] }
 0x32c   :  { %v4851_v22 = vpop.eup %4850 }
 0x32d   :  { %v3401_v53 = vadd.f32 1.0, %v4851_v22 }
 0x32e   :  { %v4853_v27 = vpop.eup %4852 }
 0x32f   :  { %v4855_v58 = vpop.eup %4854  ;;  %v3402_v31 = vadd.f32 1.0, %v4853_v27  ;;  %4862 = vrcp.f32 %v3401_v53  ;;  %v7414_v27 = vld [vmem:[#allocation16_spill] sm:$0xff] }
 0x330   :  { %v3470_v57 = vmul.f32 %v4855_v58, %v7027_v26  ;;  %v4857_v38 = vpop.eup %4856  ;;  %4864 = vrcp.f32 %v3373_v2 }
 0x331   :  { %v3372_v13 = vadd.f32 1.0, %v4857_v38  ;;  %4866 = vrcp.f32 %v3402_v31  ;;  %v7415_v31 = vld [vmem:[#allocation17_spill] sm:$0xff] }
 0x332   :  { %v4859_v0 = vpop.eup %4858  ;;  %v4046_v28 = vpack.c.bf16 %v3471_v25, %v3470_v57 }
 0x333   :  { %v3403_v3 = vadd.f32 1.0, %v4859_v0  ;;  %4868 = vrcp.f32 %v3372_v13  ;;  %v4861_v10 = vpop.eup %4860 }
 0x334   :  { %4134 = vst [vmem:[%s7152_s8 + $0x8] sm:$0xff] %v4046_v28   ;;  %v3496_v44 = vmul.f32 %v4861_v10, %v6901_v49 }
 0x335   :  { %4870 = vrcp.f32 %v3403_v3 }
 0x339   :  { %v4863_v50 = vpop.eup %4862 }
 0x33a   :  { %v3497_v4 = vmul.f32 %v4863_v50, %v3273_v33  ;;  %v4865_v26 = vpop.eup %4864  ;;  %v7405_v33 = vld [vmem:[#allocation13_spill] sm:$0xff] }
 0x33b   :  { %v4867_v29 = vpop.eup %4866  ;;  %v3469_v15 = vmul.f32 %v4865_v26, %v7035_v55 }
 0x33c   :  { %v4111_v48 = vpack.c.bf16 %v3497_v4, %v3496_v44  ;;  %v3498_v35 = vmul.f32 %v4867_v29, %v3274_v54  ;;  %v7407_v54 = vld [vmem:[#allocation32_spill] sm:$0xff] }
 0x33d   :  { %v4869_v47 = vpop.eup %4868 }
 0x33e   :  { %v3468_v17 = vmul.f32 %v4869_v47, %v3244_v36  ;;  %4147 = vst [vmem:[%s7152_s8 + $0x70] sm:$0xff] %v4111_v48   ;;  %v7409_v36 = vld [vmem:[#allocation35_spill] sm:$0xff] }
 0x33f   :  { %v4871_v32 = vpop.eup %4870 }
 0x340   :  { %v3499_v21 = vmul.f32 %v4871_v32, %v3275_v43  ;;  %v4041_v18 = vpack.c.bf16 %v3469_v15, %v3468_v17  ;;  %v3660_v30 = vadd.f32 %v3469_v15, %v3468_v17 }
 0x342   :  { %v4116_v20 = vpack.c.bf16 %v3499_v21, %v3498_v35  ;;  %4042 = vst [vmem:[%s7152_s8] sm:$0xff] %v4041_v18   ;;  %v3661_v49 = vadd.f32 %v3660_v30, %v3470_v57  ;;  %v7416_v57 = vld [vmem:[#allocation23_spill] sm:$0xff] }
 0x344   :  { %4148 = vst [vmem:[%s7152_s8 + $0x78] sm:$0xff] %v4116_v20   ;;  %v3662_v55 = vadd.f32 %v3661_v49, %v3471_v25 }
 0x346   :  { %v3663_v63 = vadd.f32 %v3662_v55, %v7403_v5 }
 0x348   :  { %v3664_v52 = vadd.f32 %v3663_v63, %v7404_v61 }
 0x34a   :  { %v3665_v45 = vadd.f32 %v3664_v52, %v7405_v33 }
 0x34c   :  { %v3666_v59 = vadd.f32 %v3665_v45, %v7406_v9 }
 0x34e   :  { %v3667_v51 = vadd.f32 %v3666_v59, %v7407_v54 }
 0x350   :  { %v3668_v60 = vadd.f32 %v3667_v51, %v7408_v14 }
 0x352   :  { %v3669_v23 = vadd.f32 %v3668_v60, %v7409_v36 }
 0x354   :  { %v3670_v12 = vadd.f32 %v3669_v23, %v7410_v56 }
 0x356   :  { %v3671_v43 = vadd.f32 %v3670_v12, %v7411_v11 }
 0x358   :  { %v3672_v24 = vadd.f32 %v3671_v43, %v7412_v8 }
 0x35a   :  { %v3673_v41 = vadd.f32 %v3672_v24, %v6426_v42 }
 0x35c   :  { %v3674_v1 = vadd.f32 %v3673_v41, %v6485_v46 }
 0x35e   :  { %v3675_v22 = vadd.f32 %v3674_v1, %v7413_v7 }
 0x360   :  { %v3676_v2 = vadd.f32 %v3675_v22, %v7414_v27 }
 0x362   :  { %v3677_v53 = vadd.f32 %v3676_v2, %v6645_v19 }
 0x364   :  { %v3678_v58 = vadd.f32 %v3677_v53, %v6648_v62 }
 0x366   :  { %v3679_v25 = vadd.f32 %v3678_v58, %v7415_v31 }
 0x368   :  { %v3680_v38 = vadd.f32 %v3679_v25, %v7416_v57 }
 0x36a   :  { %v3681_v0 = vadd.f32 %v3680_v38, %v6781_v39 }
 0x36c   :  { %v3682_v28 = vadd.f32 %v3681_v0, %v6835_v16 }
 0x36e   :  { %v3683_v42 = vadd.f32 %v3682_v28, %v6983_v6 }
 0x370   :  { %v3684_v46 = vadd.f32 %v3683_v42, %v6986_v40 }
 0x372   :  { %v3685_v13 = vadd.f32 %v3684_v46, %v7056_v37 }
 0x374   :  { %v3686_v3 = vadd.f32 %v3685_v13, %v7059_v34 }
 0x376   :  { %v3687_v10 = vadd.f32 %v3686_v3, %v3496_v44 }
 0x378   :  { %v3688_v19 = vadd.f32 %v3687_v10, %v3497_v4 }
 0x37a   :  { %v3689_v50 = vadd.f32 %v3688_v19, %v3498_v35 }
 0x37c   :  { %v3690_v62 = vadd.f32 %v3689_v50, %v3499_v21 }
 0x37e   :  { %v3691_v26 = vrot.slane %v3690_v62, 4 }
 0x380   :  { %v3692_v29 = vadd.f32 %v3691_v26, %v3690_v62 }
 0x382   :  { %v3693_v48 = vrot.slane %v3692_v29, 2 }
 0x384   :  { %v3694_v47 = vadd.f32 %v3693_v48, %v3692_v29 }
 0x386   :  { %v3695_v32 = vrot.slane %v3694_v47, 1 }
 0x388   :  { %v3696_v39 = vadd.f32 %v3695_v32, %v3694_v47 }
 0x38a   :  { %3697 = vst [vmem:[%s7153_s9] sm:$0x1] %v3696_v39 }

</bundles_post_ra>
